<compile_context>
chip_gen: v7x
topology: tpu7x:2x2x1
jax: 0.10.0
libtpu: 0.0.40
codegen_flags: <defaults>
</compile_context>

<pallas_src>
import functools
import math

import jax
import jax.numpy as jnp
from jax.experimental import pallas as pl
from jax.experimental.pallas import tpu as pltpu

# ---- dims from the PyTorch module constants ---------------------------------
NUM_FTRS = 512          # num_ftrs
PROJ_HIDDEN = 512       # proj_hidden_dim
OUT_DIM = 512           # out_dim
PRED_HIDDEN = 128       # pred_hidden_dim
BN_EPS = 1e-5


def _mm(a, w_bf16):
    """MXU matmul: bf16 inputs, f32 accumulation."""
    return jnp.dot(a.astype(jnp.bfloat16), w_bf16,
                   preferred_element_type=jnp.float32)


def _simsiam_kernel(x_ref, w0x_ref, w123_ref, w4_ref, w5_ref,
                    v512_ref, v128_ref,
                    z_ref, p_ref, *, n_valid, n_total):
    """One grid step == one SimSiam view (per-view BN batch statistics)."""
    inv_n = 1.0 / float(n_valid)

    def bn_train(h, gamma=None, beta=None):
        # nn.BatchNorm1d forward, training mode (biased batch stats over dim 0).
        # If the batch was padded, mask the padded rows out of the statistics
        # (their outputs are garbage and are sliced off in the wrapper).
        if n_total != n_valid:
            m = (jax.lax.broadcasted_iota(jnp.int32, h.shape, 0)
                 < n_valid).astype(h.dtype)
            mu = jnp.sum(h * m, axis=0, keepdims=True) * inv_n
            d = h - mu
            var = jnp.sum(d * d * m, axis=0, keepdims=True) * inv_n
        else:
            mu = jnp.mean(h, axis=0, keepdims=True)
            d = h - mu                                  # hoisted: var and norm
            var = jnp.mean(d * d, axis=0, keepdims=True)
        hn = d * jax.lax.rsqrt(var + BN_EPS)
        if gamma is not None:
            hn = hn * gamma + beta
        return hn

    # ---- unpack consolidated parameter slabs ---------------------------------
    v512 = v512_ref[...]                          # (6, 512) f32
    b0, g1, be1 = v512[0:1, :], v512[1:2, :], v512[2:3, :]
    g2, be2, b5 = v512[3:4, :], v512[4:5, :], v512[5:6, :]
    v128 = v128_ref[...]                          # (2, 128) f32
    g4, be4 = v128[0:1, :], v128[1:2, :]

    # ---- stand-in backbone: global avg pool + 1x1 conv fused into ONE matmul
    # (weight rows pre-repeated HW times with the 1/HW scale folded in)
    f = _mm(x_ref[...], w0x_ref[...]) + b0        # (Np, NUM_FTRS) f32

    # ---- SimSiamProjectionHead:
    #      (Linear no-bias -> BN -> ReLU) x2,  Linear no-bias -> BN(affine=False)
    h = _mm(f, w123_ref[0])
    h = jnp.maximum(bn_train(h, g1, be1), 0.0)
    h = _mm(h, w123_ref[1])
    h = jnp.maximum(bn_train(h, g2, be2), 0.0)
    z = _mm(h, w123_ref[2])
    z = bn_train(z)                               # affine=False

    # ---- SimSiamPredictionHead:
    #      Linear no-bias -> BN -> ReLU,  Linear (with bias)
    q = _mm(z, w4_ref[...])
    q = jnp.maximum(bn_train(q, g4, be4), 0.0)
    p = _mm(q, w5_ref[...]) + b5

    z_ref[...] = z        # z is returned detached; forward value is identical
    p_ref[...] = p


def _vmem_limit_bytes():
    # ~75% of physical per-core VMEM: ~48 MiB on v7x, ~96 MiB on v5e/v6e.
    try:
        cap = int(pltpu.get_tpu_info().vmem_capacity_bytes)
    except Exception:
        cap = 64 << 20
    return max(16 << 20, (cap * 3) // 4)


def simsiam_forward_views(x_views, params):
    """x_views: (V, N, C, H, W). Returns (z, p), each (V, N, OUT_DIM).

    Each view is one grid step with its own BN batch statistics (equivalent to
    V separate module forward passes). On v7x the "parallel" view axis is
    sharded across the two TensorCores.
    """
    V, N, C, H, W = x_views.shape
    HW = H * W
    CHW = C * HW
    Np = -(-N // 8) * 8           # pad batch to a sublane multiple of 8
    # (for peak MXU utilization, callers should use N that is a multiple of
    #  128 on v5e / 256 on v6e & v7x)

    xk = x_views.reshape(V, N, CHW).astype(jnp.bfloat16)
    if Np != N:
        xk = jnp.pad(xk, ((0, 0), (0, Np - N), (0, 0)))

    bf16 = jnp.bfloat16
    # fused backbone weight: repeat each w0 row HW times, fold in 1/HW scale
    w0x = jnp.repeat(params["w0"] * (1.0 / HW), HW, axis=0).astype(bf16)   # (C*HW, 512)
    w123 = jnp.stack([params["w1"], params["w2"], params["w3"]],
                     axis=0).astype(bf16)                                  # (3, 512, 512)
    w4 = params["w4"].astype(bf16)                                         # (512, 128)
    w5 = params["w5"].astype(bf16)                                         # (128, 512)
    # consolidated small-vector slabs (f32: tiny, keep full precision)
    v512 = jnp.concatenate([params["b0"], params["g1"], params["be1"],
                            params["g2"], params["be2"], params["b5"]],
                           axis=0).astype(jnp.float32)                     # (6, 512)
    v128 = jnp.concatenate([params["g4"], params["be4"]],
                           axis=0).astype(jnp.float32)                     # (2, 128)

    in_specs = [
        # x: one view per grid step (leading view dim squeezed out)
        pl.BlockSpec((None, Np, CHW), lambda v: (v, 0, 0)),
        # weights / params: view-invariant blocks (DMA'd once, reused)
        pl.BlockSpec((CHW, NUM_FTRS), lambda v: (0, 0)),
        pl.BlockSpec((3, NUM_FTRS, PROJ_HIDDEN), lambda v: (0, 0, 0)),
        pl.BlockSpec((OUT_DIM, PRED_HIDDEN), lambda v: (0, 0)),
        pl.BlockSpec((PRED_HIDDEN, OUT_DIM), lambda v: (0, 0)),
        pl.BlockSpec((6, NUM_FTRS), lambda v: (0, 0)),
        pl.BlockSpec((2, PRED_HIDDEN), lambda v: (0, 0)),
    ]
    out_specs = (pl.BlockSpec((None, Np, OUT_DIM), lambda v: (v, 0, 0)),
                 pl.BlockSpec((None, Np, OUT_DIM), lambda v: (v, 0, 0)))
    out_shape = (jax.ShapeDtypeStruct((V, Np, OUT_DIM), jnp.float32),
                 jax.ShapeDtypeStruct((V, Np, OUT_DIM), jnp.float32))

    kernel = functools.partial(_simsiam_kernel, n_valid=N, n_total=Np)

    z, p = pl.pallas_call(
        kernel,
        out_shape=out_shape,
        grid=(V,),
        in_specs=in_specs,
        out_specs=out_specs,
        compiler_params=pltpu.CompilerParams(
            dimension_semantics=("parallel",),       # views -> both TCs on v7x
            vmem_limit_bytes=_vmem_limit_bytes()),
    )(xk, w0x, w123, w4, w5, v512, v128)

    if Np != N:
        z = z[:, :N]
        p = p[:, :N]
    return z, p


def simsiam_forward(x_nchw, params):
    """Module-equivalent forward: x (N, C, H, W) -> (z, p), each (N, OUT_DIM)."""
    z, p = simsiam_forward_views(x_nchw[None], params)
    return z[0], p[0]


def init_params(key, in_channels):
    """Deterministic PyTorch-style init: Linear ~ U(-1/sqrt(fan_in), +), BN gamma=1, beta=0."""
    ks = jax.random.split(key, 8)

    def linear_w(k, din, dout):
        bound = 1.0 / math.sqrt(din)
        return jax.random.uniform(k, (din, dout), jnp.float32, -bound, bound)

    def linear_b(k, din, dout):
        bound = 1.0 / math.sqrt(din)
        return jax.random.uniform(k, (1, dout), jnp.float32, -bound, bound)

    ones = lambda d: jnp.ones((1, d), jnp.float32)
    zeros = lambda d: jnp.zeros((1, d), jnp.float32)

    return dict(
        # stand-in backbone (1x1 conv == linear) with bias
        w0=linear_w(ks[0], in_channels, NUM_FTRS),
        b0=linear_b(ks[1], in_channels, NUM_FTRS),
        # projection head
        w1=linear_w(ks[2], NUM_FTRS, PROJ_HIDDEN), g1=ones(PROJ_HIDDEN), be1=zeros(PROJ_HIDDEN),
        w2=linear_w(ks[3], PROJ_HIDDEN, PROJ_HIDDEN), g2=ones(PROJ_HIDDEN), be2=zeros(PROJ_HIDDEN),
        w3=linear_w(ks[4], PROJ_HIDDEN, OUT_DIM),                     # BN(affine=False) after
        # prediction head
        w4=linear_w(ks[5], OUT_DIM, PRED_HIDDEN), g4=ones(PRED_HIDDEN), be4=zeros(PRED_HIDDEN),
        w5=linear_w(ks[6], PRED_HIDDEN, OUT_DIM),
        b5=linear_b(ks[7], PRED_HIDDEN, OUT_DIM),
    )


if __name__ == "__main__":
    key = jax.random.PRNGKey(0)
    kx1, kx2, kp = jax.random.split(key, 3)

    # small, module-consistent shapes: batch=2, channels=4, spatial=16x16 (NCHW)
    N, C, H, W = 2, 4, 16, 16
    params = init_params(kp, C)

    # --- single-view forward: exactly SimSiam.forward(x) ----------------------
    x = jax.random.normal(kx1, (N, C, H, W), dtype=jnp.float32)
    z, p = jax.jit(simsiam_forward)(x, params)
    jax.block_until_ready((z, p))
    assert z.shape == (N, OUT_DIM) and p.shape == (N, OUT_DIM)
    assert bool(jnp.all(jnp.isfinite(z))) and bool(jnp.all(jnp.isfinite(p)))

    # --- two SimSiam views stacked on a leading view axis ----------------------
    # one grid step per view (per-view BN statistics, matching two separate
    # module forward passes); on v7x the two steps run on the two TensorCores.
    x2 = jax.random.normal(kx2, (N, C, H, W), dtype=jnp.float32)
    xv = jnp.stack([x, x2], axis=0)
    zv, pv = jax.jit(simsiam_forward_views)(xv, params)
    jax.block_until_ready((zv, pv))
    assert zv.shape == (2, N, OUT_DIM) and pv.shape == (2, N, OUT_DIM)
    assert bool(jnp.all(jnp.isfinite(zv))) and bool(jnp.all(jnp.isfinite(pv)))
    # view 0 of the stacked call must reproduce the single-view call
    assert bool(jnp.allclose(z, zv[0], atol=1e-2, rtol=1e-2))
    assert bool(jnp.allclose(p, pv[0], atol=1e-2, rtol=1e-2))

    print("KERNEL_OK")
</pallas_src>

<mosaic_0001>
module attributes {stable_mosaic.version = 11 : i64} {
  func.func @_simsiam_kernel(%arg0: i32, %arg1: memref<1x8x1024xbf16, #tpu.memory_space<vmem>>, %arg2: memref<1024x512xbf16, #tpu.memory_space<vmem>>, %arg3: memref<3x512x512xbf16, #tpu.memory_space<vmem>>, %arg4: memref<512x128xbf16, #tpu.memory_space<vmem>>, %arg5: memref<128x512xbf16, #tpu.memory_space<vmem>>, %arg6: memref<6x512xf32, #tpu.memory_space<vmem>>, %arg7: memref<2x128xf32, #tpu.memory_space<vmem>>, %arg8: memref<1x8x512xf32, #tpu.memory_space<vmem>>, %arg9: memref<1x8x512xf32, #tpu.memory_space<vmem>>) attributes {dimension_semantics = [#tpu.dimension_semantics<parallel>], iteration_bounds = array<i64: 1>, scalar_prefetch = 0 : i64, scratch_operands = 0 : i64, tpu.core_type = #tpu.core_type<tc>, window_params = [{transform_indices = @transform_0, window_bounds = array<i64: 1, 8, 1024>}, {pipeline_mode = #tpu.pipeline_mode<synchronous>, transform_indices = @transform_1, window_bounds = array<i64: 1024, 512>}, {pipeline_mode = #tpu.pipeline_mode<synchronous>, transform_indices = @transform_2, window_bounds = array<i64: 3, 512, 512>}, {pipeline_mode = #tpu.pipeline_mode<synchronous>, transform_indices = @transform_3, window_bounds = array<i64: 512, 128>}, {pipeline_mode = #tpu.pipeline_mode<synchronous>, transform_indices = @transform_4, window_bounds = array<i64: 128, 512>}, {pipeline_mode = #tpu.pipeline_mode<synchronous>, transform_indices = @transform_5, window_bounds = array<i64: 6, 512>}, {pipeline_mode = #tpu.pipeline_mode<synchronous>, transform_indices = @transform_6, window_bounds = array<i64: 2, 128>}, {transform_indices = @transform_7, window_bounds = array<i64: 1, 8, 512>}, {transform_indices = @transform_8, window_bounds = array<i64: 1, 8, 512>}]} {
    %c0 = arith.constant 0 : index
    %c0_0 = arith.constant 0 : index
    %0 = vector.load %arg6[%c0, %c0_0] : memref<6x512xf32, #tpu.memory_space<vmem>>, vector<6x512xf32>
    %1 = vector.extract_strided_slice %0 {offsets = [0, 0], sizes = [1, 512], strides = [1, 1]} : vector<6x512xf32> to vector<1x512xf32>
    %2 = vector.extract_strided_slice %0 {offsets = [1, 0], sizes = [1, 512], strides = [1, 1]} : vector<6x512xf32> to vector<1x512xf32>
    %3 = vector.extract_strided_slice %0 {offsets = [2, 0], sizes = [1, 512], strides = [1, 1]} : vector<6x512xf32> to vector<1x512xf32>
    %4 = vector.extract_strided_slice %0 {offsets = [3, 0], sizes = [1, 512], strides = [1, 1]} : vector<6x512xf32> to vector<1x512xf32>
    %5 = vector.extract_strided_slice %0 {offsets = [4, 0], sizes = [1, 512], strides = [1, 1]} : vector<6x512xf32> to vector<1x512xf32>
    %6 = vector.extract_strided_slice %0 {offsets = [5, 0], sizes = [1, 512], strides = [1, 1]} : vector<6x512xf32> to vector<1x512xf32>
    %c0_1 = arith.constant 0 : index
    %c0_2 = arith.constant 0 : index
    %7 = vector.load %arg7[%c0_1, %c0_2] : memref<2x128xf32, #tpu.memory_space<vmem>>, vector<2x128xf32>
    %8 = vector.extract_strided_slice %7 {offsets = [0, 0], sizes = [1, 128], strides = [1, 1]} : vector<2x128xf32> to vector<1x128xf32>
    %9 = vector.extract_strided_slice %7 {offsets = [1, 0], sizes = [1, 128], strides = [1, 1]} : vector<2x128xf32> to vector<1x128xf32>
    %c0_3 = arith.constant 0 : index
    %c0_4 = arith.constant 0 : index
    %c0_5 = arith.constant 0 : index
    %10 = vector.load %arg1[%c0_3, %c0_4, %c0_5] : memref<1x8x1024xbf16, #tpu.memory_space<vmem>>, vector<1x8x1024xbf16>
    %11 = vector.shape_cast %10 : vector<1x8x1024xbf16> to vector<8x1024xbf16>
    %c0_6 = arith.constant 0 : index
    %c0_7 = arith.constant 0 : index
    %12 = vector.load %arg2[%c0_6, %c0_7] : memref<1024x512xbf16, #tpu.memory_space<vmem>>, vector<1024x512xbf16>
    %cst = arith.constant dense<0.000000e+00> : vector<8x512xf32>
    %13 = tpu.matmul %11, %12, %cst {dimension_numbers = #tpu.dot_dimension_numbers<[1], [0], [0], [1], [0, 0, 1, 1], [], []>} : vector<8x1024xbf16>, vector<1024x512xbf16>, vector<8x512xf32> -> vector<8x512xf32>
    %14 = vector.broadcast %1 : vector<1x512xf32> to vector<8x512xf32>
    %15 = arith.addf %13, %14 : vector<8x512xf32>
    %c0_8 = arith.constant 0 : index
    %c0_9 = arith.constant 0 : index
    %c0_10 = arith.constant 0 : index
    %16 = vector.load %arg3[%c0_8, %c0_9, %c0_10] : memref<3x512x512xbf16, #tpu.memory_space<vmem>>, vector<1x512x512xbf16>
    %17 = vector.shape_cast %16 : vector<1x512x512xbf16> to vector<512x512xbf16>
    %18 = arith.truncf %15 : vector<8x512xf32> to vector<8x512xbf16>
    %cst_11 = arith.constant dense<0.000000e+00> : vector<8x512xf32>
    %19 = tpu.matmul %18, %17, %cst_11 {dimension_numbers = #tpu.dot_dimension_numbers<[1], [0], [0], [1], [0, 0, 1, 1], [], []>} : vector<8x512xbf16>, vector<512x512xbf16>, vector<8x512xf32> -> vector<8x512xf32>
    %20 = tpu.iota {dimensions = array<i32: 0>} : vector<8x512xi32>
    %c2_i32 = arith.constant 2 : i32
    %21 = vector.broadcast %c2_i32 : i32 to vector<8x512xi32>
    %22 = arith.cmpi slt, %20, %21 : vector<8x512xi32>
    %23 = arith.extui %22 : vector<8x512xi1> to vector<8x512xi32>
    %24 = arith.sitofp %23 : vector<8x512xi32> to vector<8x512xf32>
    %25 = arith.mulf %19, %24 : vector<8x512xf32>
    %cst_12 = arith.constant dense<0.000000e+00> : vector<512xf32>
    %26 = vector.multi_reduction <add>, %25, %cst_12 [0] : vector<8x512xf32> to vector<512xf32>
    %27 = vector.shape_cast %26 : vector<512xf32> to vector<1x512xf32>
    %cst_13 = arith.constant 5.000000e-01 : f32
    %28 = vector.broadcast %cst_13 : f32 to vector<1x512xf32>
    %29 = arith.mulf %27, %28 : vector<1x512xf32>
    %30 = vector.broadcast %29 : vector<1x512xf32> to vector<8x512xf32>
    %31 = arith.subf %19, %30 : vector<8x512xf32>
    %32 = arith.mulf %31, %31 : vector<8x512xf32>
    %33 = arith.mulf %32, %24 : vector<8x512xf32>
    %cst_14 = arith.constant dense<0.000000e+00> : vector<512xf32>
    %34 = vector.multi_reduction <add>, %33, %cst_14 [0] : vector<8x512xf32> to vector<512xf32>
    %35 = vector.shape_cast %34 : vector<512xf32> to vector<1x512xf32>
    %cst_15 = arith.constant 5.000000e-01 : f32
    %36 = vector.broadcast %cst_15 : f32 to vector<1x512xf32>
    %37 = arith.mulf %35, %36 : vector<1x512xf32>
    %cst_16 = arith.constant 9.99999974E-6 : f32
    %38 = vector.broadcast %cst_16 : f32 to vector<1x512xf32>
    %39 = arith.addf %37, %38 : vector<1x512xf32>
    %40 = math.rsqrt %39 : vector<1x512xf32>
    %41 = vector.broadcast %40 : vector<1x512xf32> to vector<8x512xf32>
    %42 = arith.mulf %31, %41 : vector<8x512xf32>
    %43 = vector.broadcast %2 : vector<1x512xf32> to vector<8x512xf32>
    %44 = arith.mulf %42, %43 : vector<8x512xf32>
    %45 = vector.broadcast %3 : vector<1x512xf32> to vector<8x512xf32>
    %46 = arith.addf %44, %45 : vector<8x512xf32>
    %cst_17 = arith.constant 0.000000e+00 : f32
    %47 = vector.broadcast %cst_17 : f32 to vector<8x512xf32>
    %48 = arith.maximumf %46, %47 : vector<8x512xf32>
    %c1 = arith.constant 1 : index
    %c0_18 = arith.constant 0 : index
    %c0_19 = arith.constant 0 : index
    %49 = vector.load %arg3[%c1, %c0_18, %c0_19] : memref<3x512x512xbf16, #tpu.memory_space<vmem>>, vector<1x512x512xbf16>
    %50 = vector.shape_cast %49 : vector<1x512x512xbf16> to vector<512x512xbf16>
    %51 = arith.truncf %48 : vector<8x512xf32> to vector<8x512xbf16>
    %cst_20 = arith.constant dense<0.000000e+00> : vector<8x512xf32>
    %52 = tpu.matmul %51, %50, %cst_20 {dimension_numbers = #tpu.dot_dimension_numbers<[1], [0], [0], [1], [0, 0, 1, 1], [], []>} : vector<8x512xbf16>, vector<512x512xbf16>, vector<8x512xf32> -> vector<8x512xf32>
    %53 = tpu.iota {dimensions = array<i32: 0>} : vector<8x512xi32>
    %c2_i32_21 = arith.constant 2 : i32
    %54 = vector.broadcast %c2_i32_21 : i32 to vector<8x512xi32>
    %55 = arith.cmpi slt, %53, %54 : vector<8x512xi32>
    %56 = arith.extui %55 : vector<8x512xi1> to vector<8x512xi32>
    %57 = arith.sitofp %56 : vector<8x512xi32> to vector<8x512xf32>
    %58 = arith.mulf %52, %57 : vector<8x512xf32>
    %cst_22 = arith.constant dense<0.000000e+00> : vector<512xf32>
    %59 = vector.multi_reduction <add>, %58, %cst_22 [0] : vector<8x512xf32> to vector<512xf32>
    %60 = vector.shape_cast %59 : vector<512xf32> to vector<1x512xf32>
    %cst_23 = arith.constant 5.000000e-01 : f32
    %61 = vector.broadcast %cst_23 : f32 to vector<1x512xf32>
    %62 = arith.mulf %60, %61 : vector<1x512xf32>
    %63 = vector.broadcast %62 : vector<1x512xf32> to vector<8x512xf32>
    %64 = arith.subf %52, %63 : vector<8x512xf32>
    %65 = arith.mulf %64, %64 : vector<8x512xf32>
    %66 = arith.mulf %65, %57 : vector<8x512xf32>
    %cst_24 = arith.constant dense<0.000000e+00> : vector<512xf32>
    %67 = vector.multi_reduction <add>, %66, %cst_24 [0] : vector<8x512xf32> to vector<512xf32>
    %68 = vector.shape_cast %67 : vector<512xf32> to vector<1x512xf32>
    %cst_25 = arith.constant 5.000000e-01 : f32
    %69 = vector.broadcast %cst_25 : f32 to vector<1x512xf32>
    %70 = arith.mulf %68, %69 : vector<1x512xf32>
    %cst_26 = arith.constant 9.99999974E-6 : f32
    %71 = vector.broadcast %cst_26 : f32 to vector<1x512xf32>
    %72 = arith.addf %70, %71 : vector<1x512xf32>
    %73 = math.rsqrt %72 : vector<1x512xf32>
    %74 = vector.broadcast %73 : vector<1x512xf32> to vector<8x512xf32>
    %75 = arith.mulf %64, %74 : vector<8x512xf32>
    %76 = vector.broadcast %4 : vector<1x512xf32> to vector<8x512xf32>
    %77 = arith.mulf %75, %76 : vector<8x512xf32>
    %78 = vector.broadcast %5 : vector<1x512xf32> to vector<8x512xf32>
    %79 = arith.addf %77, %78 : vector<8x512xf32>
    %cst_27 = arith.constant 0.000000e+00 : f32
    %80 = vector.broadcast %cst_27 : f32 to vector<8x512xf32>
    %81 = arith.maximumf %79, %80 : vector<8x512xf32>
    %c2 = arith.constant 2 : index
    %c0_28 = arith.constant 0 : index
    %c0_29 = arith.constant 0 : index
    %82 = vector.load %arg3[%c2, %c0_28, %c0_29] : memref<3x512x512xbf16, #tpu.memory_space<vmem>>, vector<1x512x512xbf16>
    %83 = vector.shape_cast %82 : vector<1x512x512xbf16> to vector<512x512xbf16>
    %84 = arith.truncf %81 : vector<8x512xf32> to vector<8x512xbf16>
    %cst_30 = arith.constant dense<0.000000e+00> : vector<8x512xf32>
    %85 = tpu.matmul %84, %83, %cst_30 {dimension_numbers = #tpu.dot_dimension_numbers<[1], [0], [0], [1], [0, 0, 1, 1], [], []>} : vector<8x512xbf16>, vector<512x512xbf16>, vector<8x512xf32> -> vector<8x512xf32>
    %86 = tpu.iota {dimensions = array<i32: 0>} : vector<8x512xi32>
    %c2_i32_31 = arith.constant 2 : i32
    %87 = vector.broadcast %c2_i32_31 : i32 to vector<8x512xi32>
    %88 = arith.cmpi slt, %86, %87 : vector<8x512xi32>
    %89 = arith.extui %88 : vector<8x512xi1> to vector<8x512xi32>
    %90 = arith.sitofp %89 : vector<8x512xi32> to vector<8x512xf32>
    %91 = arith.mulf %85, %90 : vector<8x512xf32>
    %cst_32 = arith.constant dense<0.000000e+00> : vector<512xf32>
    %92 = vector.multi_reduction <add>, %91, %cst_32 [0] : vector<8x512xf32> to vector<512xf32>
    %93 = vector.shape_cast %92 : vector<512xf32> to vector<1x512xf32>
    %cst_33 = arith.constant 5.000000e-01 : f32
    %94 = vector.broadcast %cst_33 : f32 to vector<1x512xf32>
    %95 = arith.mulf %93, %94 : vector<1x512xf32>
    %96 = vector.broadcast %95 : vector<1x512xf32> to vector<8x512xf32>
    %97 = arith.subf %85, %96 : vector<8x512xf32>
    %98 = arith.mulf %97, %97 : vector<8x512xf32>
    %99 = arith.mulf %98, %90 : vector<8x512xf32>
    %cst_34 = arith.constant dense<0.000000e+00> : vector<512xf32>
    %100 = vector.multi_reduction <add>, %99, %cst_34 [0] : vector<8x512xf32> to vector<512xf32>
    %101 = vector.shape_cast %100 : vector<512xf32> to vector<1x512xf32>
    %cst_35 = arith.constant 5.000000e-01 : f32
    %102 = vector.broadcast %cst_35 : f32 to vector<1x512xf32>
    %103 = arith.mulf %101, %102 : vector<1x512xf32>
    %cst_36 = arith.constant 9.99999974E-6 : f32
    %104 = vector.broadcast %cst_36 : f32 to vector<1x512xf32>
    %105 = arith.addf %103, %104 : vector<1x512xf32>
    %106 = math.rsqrt %105 : vector<1x512xf32>
    %107 = vector.broadcast %106 : vector<1x512xf32> to vector<8x512xf32>
    %108 = arith.mulf %97, %107 : vector<8x512xf32>
    %c0_37 = arith.constant 0 : index
    %c0_38 = arith.constant 0 : index
    %109 = vector.load %arg4[%c0_37, %c0_38] : memref<512x128xbf16, #tpu.memory_space<vmem>>, vector<512x128xbf16>
    %110 = arith.truncf %108 : vector<8x512xf32> to vector<8x512xbf16>
    %cst_39 = arith.constant dense<0.000000e+00> : vector<8x128xf32>
    %111 = tpu.matmul %110, %109, %cst_39 {dimension_numbers = #tpu.dot_dimension_numbers<[1], [0], [0], [1], [0, 0, 1, 1], [], []>} : vector<8x512xbf16>, vector<512x128xbf16>, vector<8x128xf32> -> vector<8x128xf32>
    %112 = tpu.iota {dimensions = array<i32: 0>} : vector<8x128xi32>
    %c2_i32_40 = arith.constant 2 : i32
    %113 = vector.broadcast %c2_i32_40 : i32 to vector<8x128xi32>
    %114 = arith.cmpi slt, %112, %113 : vector<8x128xi32>
    %115 = arith.extui %114 : vector<8x128xi1> to vector<8x128xi32>
    %116 = arith.sitofp %115 : vector<8x128xi32> to vector<8x128xf32>
    %117 = arith.mulf %111, %116 : vector<8x128xf32>
    %cst_41 = arith.constant dense<0.000000e+00> : vector<128xf32>
    %118 = vector.multi_reduction <add>, %117, %cst_41 [0] : vector<8x128xf32> to vector<128xf32>
    %119 = vector.shape_cast %118 : vector<128xf32> to vector<1x128xf32>
    %cst_42 = arith.constant 5.000000e-01 : f32
    %120 = vector.broadcast %cst_42 : f32 to vector<1x128xf32>
    %121 = arith.mulf %119, %120 : vector<1x128xf32>
    %122 = vector.broadcast %121 : vector<1x128xf32> to vector<8x128xf32>
    %123 = arith.subf %111, %122 : vector<8x128xf32>
    %124 = arith.mulf %123, %123 : vector<8x128xf32>
    %125 = arith.mulf %124, %116 : vector<8x128xf32>
    %cst_43 = arith.constant dense<0.000000e+00> : vector<128xf32>
    %126 = vector.multi_reduction <add>, %125, %cst_43 [0] : vector<8x128xf32> to vector<128xf32>
    %127 = vector.shape_cast %126 : vector<128xf32> to vector<1x128xf32>
    %cst_44 = arith.constant 5.000000e-01 : f32
    %128 = vector.broadcast %cst_44 : f32 to vector<1x128xf32>
    %129 = arith.mulf %127, %128 : vector<1x128xf32>
    %cst_45 = arith.constant 9.99999974E-6 : f32
    %130 = vector.broadcast %cst_45 : f32 to vector<1x128xf32>
    %131 = arith.addf %129, %130 : vector<1x128xf32>
    %132 = math.rsqrt %131 : vector<1x128xf32>
    %133 = vector.broadcast %132 : vector<1x128xf32> to vector<8x128xf32>
    %134 = arith.mulf %123, %133 : vector<8x128xf32>
    %135 = vector.broadcast %8 : vector<1x128xf32> to vector<8x128xf32>
    %136 = arith.mulf %134, %135 : vector<8x128xf32>
    %137 = vector.broadcast %9 : vector<1x128xf32> to vector<8x128xf32>
    %138 = arith.addf %136, %137 : vector<8x128xf32>
    %cst_46 = arith.constant 0.000000e+00 : f32
    %139 = vector.broadcast %cst_46 : f32 to vector<8x128xf32>
    %140 = arith.maximumf %138, %139 : vector<8x128xf32>
    %c0_47 = arith.constant 0 : index
    %c0_48 = arith.constant 0 : index
    %141 = vector.load %arg5[%c0_47, %c0_48] : memref<128x512xbf16, #tpu.memory_space<vmem>>, vector<128x512xbf16>
    %142 = arith.truncf %140 : vector<8x128xf32> to vector<8x128xbf16>
    %cst_49 = arith.constant dense<0.000000e+00> : vector<8x512xf32>
    %143 = tpu.matmul %142, %141, %cst_49 {dimension_numbers = #tpu.dot_dimension_numbers<[1], [0], [0], [1], [0, 0, 1, 1], [], []>} : vector<8x128xbf16>, vector<128x512xbf16>, vector<8x512xf32> -> vector<8x512xf32>
    %144 = vector.broadcast %6 : vector<1x512xf32> to vector<8x512xf32>
    %145 = arith.addf %143, %144 : vector<8x512xf32>
    %c0_50 = arith.constant 0 : index
    %c0_51 = arith.constant 0 : index
    %c0_52 = arith.constant 0 : index
    %146 = vector.load %arg8[%c0_50, %c0_51, %c0_52] : memref<1x8x512xf32, #tpu.memory_space<vmem>>, vector<1x8x512xf32>
    %147 = vector.shape_cast %146 : vector<1x8x512xf32> to vector<8x512xf32>
    %148 = vector.shape_cast %108 : vector<8x512xf32> to vector<1x8x512xf32>
    tpu.vector_store %arg8[%c0_50, %c0_51, %c0_52], %148 {strides = array<i32>} : memref<1x8x512xf32, #tpu.memory_space<vmem>>, vector<1x8x512xf32>,
    %c0_53 = arith.constant 0 : index
    %c0_54 = arith.constant 0 : index
    %c0_55 = arith.constant 0 : index
    %149 = vector.load %arg9[%c0_53, %c0_54, %c0_55] : memref<1x8x512xf32, #tpu.memory_space<vmem>>, vector<1x8x512xf32>
    %150 = vector.shape_cast %149 : vector<1x8x512xf32> to vector<8x512xf32>
    %151 = vector.shape_cast %145 : vector<8x512xf32> to vector<1x8x512xf32>
    tpu.vector_store %arg9[%c0_53, %c0_54, %c0_55], %151 {strides = array<i32>} : memref<1x8x512xf32, #tpu.memory_space<vmem>>, vector<1x8x512xf32>,
    return
  }
  func.func @transform_0(%arg0: i32) -> (i32, i32, i32) {
    %c0_i32 = arith.constant 0 : i32
    %c0_i32_0 = arith.constant 0 : i32
    %c0_i32_1 = arith.constant 0 : i32
    return %arg0, %c0_i32, %c0_i32_0 : i32, i32, i32
  }
  func.func @transform_1(%arg0: i32) -> (i32, i32) {
    %c0_i32 = arith.constant 0 : i32
    %c0_i32_0 = arith.constant 0 : i32
    %c0_i32_1 = arith.constant 0 : i32
    return %c0_i32, %c0_i32_0 : i32, i32
  }
  func.func @transform_2(%arg0: i32) -> (i32, i32, i32) {
    %c0_i32 = arith.constant 0 : i32
    %c0_i32_0 = arith.constant 0 : i32
    %c0_i32_1 = arith.constant 0 : i32
    %c0_i32_2 = arith.constant 0 : i32
    return %c0_i32, %c0_i32_0, %c0_i32_1 : i32, i32, i32
  }
  func.func @transform_3(%arg0: i32) -> (i32, i32) {
    %c0_i32 = arith.constant 0 : i32
    %c0_i32_0 = arith.constant 0 : i32
    %c0_i32_1 = arith.constant 0 : i32
    return %c0_i32, %c0_i32_0 : i32, i32
  }
  func.func @transform_4(%arg0: i32) -> (i32, i32) {
    %c0_i32 = arith.constant 0 : i32
    %c0_i32_0 = arith.constant 0 : i32
    %c0_i32_1 = arith.constant 0 : i32
    return %c0_i32, %c0_i32_0 : i32, i32
  }
  func.func @transform_5(%arg0: i32) -> (i32, i32) {
    %c0_i32 = arith.constant 0 : i32
    %c0_i32_0 = arith.constant 0 : i32
    %c0_i32_1 = arith.constant 0 : i32
    return %c0_i32, %c0_i32_0 : i32, i32
  }
  func.func @transform_6(%arg0: i32) -> (i32, i32) {
    %c0_i32 = arith.constant 0 : i32
    %c0_i32_0 = arith.constant 0 : i32
    %c0_i32_1 = arith.constant 0 : i32
    return %c0_i32, %c0_i32_0 : i32, i32
  }
  func.func @transform_7(%arg0: i32) -> (i32, i32, i32) {
    %c0_i32 = arith.constant 0 : i32
    %c0_i32_0 = arith.constant 0 : i32
    %c0_i32_1 = arith.constant 0 : i32
    return %arg0, %c0_i32, %c0_i32_0 : i32, i32, i32
  }
  func.func @transform_8(%arg0: i32) -> (i32, i32, i32) {
    %c0_i32 = arith.constant 0 : i32
    %c0_i32_0 = arith.constant 0 : i32
    %c0_i32_1 = arith.constant 0 : i32
    return %arg0, %c0_i32, %c0_i32_0 : i32, i32, i32
  }
}

</mosaic_0001>

<bundles_post_ra>
// kernel: simsiam_forward.1
= control target key start
LH: loop header
LB: loop body
LE: loop exit
PB: predicated region body
PF: predicated region fallthrough
CT: control target
= control target key end

     0   :  { %s10276_s1 = inlined_call_operand.vmem [shape: bf16[1024,512], index: 1, kind: input, shape index: {}]   ;;  %s10277_s0 = inlined_call_operand.vmem [shape: bf16[1,8,1024], index: 0, kind: input, shape index: {}]   ;;  %s10278_s2 = inlined_call_operand.vmem [shape: bf16[3,512,512], index: 2, kind: input, shape index: {}]   ;;  %s10279_s5 = inlined_call_operand.vmem [shape: f32[6,512], index: 5, kind: input, shape index: {}]   ;;  %s10280_s3 = inlined_call_operand.vmem [shape: bf16[512,128], index: 3, kind: input, shape index: {}]   ;;  %s10281_s7 = inlined_call_operand.vmem [shape: f32[1,8,512], index: 7, kind: output, shape index: {0}]   ;;  %s10282_s4 = inlined_call_operand.vmem [shape: bf16[128,512], index: 4, kind: input, shape index: {}]   ;;  %s10283_s6 = inlined_call_operand.vmem [shape: f32[2,128], index: 6, kind: input, shape index: {}]   ;;  %s10284_s8 = inlined_call_operand.vmem [shape: f32[1,8,512], index: 8, kind: output, shape index: {1}]  }
   0x1   :  { %v6847_v0 = vld [vmem:[%s10276_s1 + $0x4] ss:$16 sps:$4 sm:$0xff]   ;;  %v6849_v1 = vld [vmem:[%s10276_s1 + $0xc] ss:$16 sps:$4 sm:$0xff]   ;;  %v6851_v2 = vld [vmem:[%s10276_s1] ss:$16 sps:$4 sm:$0xff]  }
   0x2   :  { %1618 = vmatprep.subr.bf16.mxu0 %v6847_v0  ;;  %v6852_v3 = vld [vmem:[%s10276_s1 + $0x8] ss:$16 sps:$4 sm:$0xff]   ;;  %1782 = vmatprep.subr.bf16.mxu1 %v6849_v1  ;;  %v6853_v4 = vld [vmem:[%s10276_s1 + $0x24] ss:$16 sps:$4 sm:$0xff]   ;;  %v6855_v5 = vld [vmem:[%s10276_s1 + $0x2c] ss:$16 sps:$4 sm:$0xff]  }
   0x3   :  { %1619 = vmatpush1.bf16.msra.mxu0 %v6851_v2  ;;  %1783 = vmatpush1.bf16.msra.mxu1 %v6852_v3  ;;  %v6857_v6 = vld [vmem:[%s10276_s1 + $0x20] ss:$16 sps:$4 sm:$0xff]   ;;  %v6858_v7 = vld [vmem:[%s10276_s1 + $0x28] ss:$16 sps:$4 sm:$0xff]   ;;  %v6859_v8 = vld [vmem:[%s10276_s1 + $0x44] ss:$16 sps:$4 sm:$0xff]  }
   0x4   :  { %1620 = vmatprep.subr.bf16.mxu0 %v6853_v4  ;;  %1784 = vmatprep.subr.bf16.mxu1 %v6855_v5  ;;  %v6861_v9 = vld [vmem:[%s10276_s1 + $0x4c] ss:$16 sps:$4 sm:$0xff]   ;;  %v6863_v10 = vld [vmem:[%s10276_s1 + $0x40] ss:$16 sps:$4 sm:$0xff]   ;;  %v6864_v11 = vld [vmem:[%s10276_s1 + $0x48] ss:$16 sps:$4 sm:$0xff]  }
   0x5   :  { %v6865_v12 = vld [vmem:[%s10276_s1 + $0x64] ss:$16 sps:$4 sm:$0xff]   ;;  %v6867_v13 = vld [vmem:[%s10276_s1 + $0x6c] ss:$16 sps:$4 sm:$0xff]   ;;  %v6869_v14 = vld [vmem:[%s10276_s1 + $0x60] ss:$16 sps:$4 sm:$0xff]  }
   0x6   :  { %v6870_v15 = vld [vmem:[%s10276_s1 + $0x68] ss:$16 sps:$4 sm:$0xff]   ;;  %v6871_v16 = vld [vmem:[%s10276_s1 + $0x84] ss:$16 sps:$4 sm:$0xff]   ;;  %v6873_v17 = vld [vmem:[%s10276_s1 + $0x8c] ss:$16 sps:$4 sm:$0xff]  }
   0x7   :  { %1621 = vmatpush1.bf16.msra.mxu0 %v6857_v6  ;;  %1785 = vmatpush1.bf16.msra.mxu1 %v6858_v7  ;;  %v6875_v18 = vld [vmem:[%s10276_s1 + $0x80] ss:$16 sps:$4 sm:$0xff]   ;;  %v6876_v19 = vld [vmem:[%s10276_s1 + $0x88] ss:$16 sps:$4 sm:$0xff]   ;;  %v6877_v20 = vld [vmem:[%s10276_s1 + $0xa4] ss:$16 sps:$4 sm:$0xff]  }
   0x8   :  { %1622 = vmatprep.subr.bf16.mxu0 %v6859_v8  ;;  %1786 = vmatprep.subr.bf16.mxu1 %v6861_v9  ;;  %v6879_v21 = vld [vmem:[%s10276_s1 + $0xac] ss:$16 sps:$4 sm:$0xff]   ;;  %v6881_v22 = vld [vmem:[%s10276_s1 + $0xa0] ss:$16 sps:$4 sm:$0xff]   ;;  %v6882_v23 = vld [vmem:[%s10276_s1 + $0xa8] ss:$16 sps:$4 sm:$0xff]  }
   0x9   :  { %v6883_v24 = vld [vmem:[%s10276_s1 + $0xc4] ss:$16 sps:$4 sm:$0xff]   ;;  %v6885_v25 = vld [vmem:[%s10276_s1 + $0xcc] ss:$16 sps:$4 sm:$0xff]   ;;  %v6887_v26 = vld [vmem:[%s10276_s1 + $0xc0] ss:$16 sps:$4 sm:$0xff]  }
   0xa   :  { %v6888_v27 = vld [vmem:[%s10276_s1 + $0xc8] ss:$16 sps:$4 sm:$0xff]   ;;  %v6889_v28 = vld [vmem:[%s10276_s1 + $0xe4] ss:$16 sps:$4 sm:$0xff]   ;;  %v6891_v29 = vld [vmem:[%s10276_s1 + $0xec] ss:$16 sps:$4 sm:$0xff]  }
   0xb   :  { %1623 = vmatpush1.bf16.msra.mxu0 %v6863_v10  ;;  %1787 = vmatpush1.bf16.msra.mxu1 %v6864_v11  ;;  %v6893_v30 = vld [vmem:[%s10276_s1 + $0xe0] ss:$16 sps:$4 sm:$0xff]   ;;  %v6894_v31 = vld [vmem:[%s10276_s1 + $0xe8] ss:$16 sps:$4 sm:$0xff]   ;;  %v6895_v32 = vld [vmem:[%s10276_s1 + $0x104] ss:$16 sps:$4 sm:$0xff]  }
   0xc   :  { %1624 = vmatprep.subr.bf16.mxu0 %v6865_v12  ;;  %1788 = vmatprep.subr.bf16.mxu1 %v6867_v13  ;;  %v6897_v33 = vld [vmem:[%s10276_s1 + $0x10c] ss:$16 sps:$4 sm:$0xff]   ;;  %v6899_v34 = vld [vmem:[%s10276_s1 + $0x100] ss:$16 sps:$4 sm:$0xff]   ;;  %v6900_v35 = vld [vmem:[%s10276_s1 + $0x108] ss:$16 sps:$4 sm:$0xff]  }
   0xd   :  { %v6901_v36 = vld [vmem:[%s10276_s1 + $0x124] ss:$16 sps:$4 sm:$0xff]   ;;  %v6903_v37 = vld [vmem:[%s10276_s1 + $0x12c] ss:$16 sps:$4 sm:$0xff]   ;;  %v6905_v38 = vld [vmem:[%s10276_s1 + $0x120] ss:$16 sps:$4 sm:$0xff]  }
   0xe   :  { %v6906_v39 = vld [vmem:[%s10276_s1 + $0x128] ss:$16 sps:$4 sm:$0xff]   ;;  %v6907_v40 = vld [vmem:[%s10276_s1 + $0x144] ss:$16 sps:$4 sm:$0xff]   ;;  %v6909_v41 = vld [vmem:[%s10276_s1 + $0x14c] ss:$16 sps:$4 sm:$0xff]  }
   0xf   :  { %1625 = vmatpush1.bf16.msra.mxu0 %v6869_v14  ;;  %1789 = vmatpush1.bf16.msra.mxu1 %v6870_v15  ;;  %v6911_v42 = vld [vmem:[%s10276_s1 + $0x140] ss:$16 sps:$4 sm:$0xff]   ;;  %v6912_v43 = vld [vmem:[%s10276_s1 + $0x148] ss:$16 sps:$4 sm:$0xff]   ;;  %v6913_v44 = vld [vmem:[%s10276_s1 + $0x164] ss:$16 sps:$4 sm:$0xff]  }
  0x10   :  { %1626 = vmatprep.subr.bf16.mxu0 %v6871_v16  ;;  %1790 = vmatprep.subr.bf16.mxu1 %v6873_v17  ;;  %v6915_v45 = vld [vmem:[%s10276_s1 + $0x16c] ss:$16 sps:$4 sm:$0xff]   ;;  %v34_v46 = vld [vmem:[%s10277_s0] sm:$0xff]  ;;  %v6918_v49 = vld [vmem:[%s10276_s1 + $0x168] ss:$16 sps:$4 sm:$0xff]  }
  0x11   :  { %v6917_v47 = vld [vmem:[%s10276_s1 + $0x160] ss:$16 sps:$4 sm:$0xff]   ;;  %v5781_v48 = vcombine.high %v34_v46, %v34_v46  ;;  %v6919_v50 = vld [vmem:[%s10276_s1 + $0x184] ss:$16 sps:$4 sm:$0xff]   ;;  %v6921_v51 = vld [vmem:[%s10276_s1 + $0x18c] ss:$16 sps:$4 sm:$0xff]   ;;  %v5780_v4 = vcombine.low %v34_v46, %v34_v46 }
  0x12   :  { %v6923_v52 = vld [vmem:[%s10276_s1 + $0x180] ss:$16 sps:$4 sm:$0xff]   ;;  %v6924_v53 = vld [vmem:[%s10276_s1 + $0x188] ss:$16 sps:$4 sm:$0xff]   ;;  %v6925_v54 = vld [vmem:[%s10276_s1 + $0x1a4] ss:$16 sps:$4 sm:$0xff]  }
  0x13   :  { %1627 = vmatpush1.bf16.msra.mxu0 %v6875_v18  ;;  %1791 = vmatpush1.bf16.msra.mxu1 %v6876_v19  ;;  %v6927_v55 = vld [vmem:[%s10276_s1 + $0x1ac] ss:$16 sps:$4 sm:$0xff]   ;;  %v6929_v56 = vld [vmem:[%s10276_s1 + $0x1a0] ss:$16 sps:$4 sm:$0xff]   ;;  %v6930_v57 = vld [vmem:[%s10276_s1 + $0x1a8] ss:$16 sps:$4 sm:$0xff]  }
  0x14   :  { %1628 = vmatprep.subr.bf16.mxu0 %v6877_v20  ;;  %1792 = vmatprep.subr.bf16.mxu1 %v6879_v21  ;;  %v6931_v58 = vld [vmem:[%s10276_s1 + $0x1c4] ss:$16 sps:$4 sm:$0xff]   ;;  %v6933_v59 = vld [vmem:[%s10276_s1 + $0x1cc] ss:$16 sps:$4 sm:$0xff]   ;;  %v6935_v60 = vld [vmem:[%s10276_s1 + $0x1c0] ss:$16 sps:$4 sm:$0xff]  }
  0x15   :  { %1650 = vmatprep.mubr.bf16.mxu0 %v5781_v48  ;;  %1814 = vmatprep.mubr.bf16.mxu1 %v5781_v48  ;;  %v6936_v61 = vld [vmem:[%s10276_s1 + $0x1c8] ss:$16 sps:$4 sm:$0xff]   ;;  %v6937_v62 = vld [vmem:[%s10276_s1 + $0x1e4] ss:$16 sps:$4 sm:$0xff]   ;;  %v6939_v63 = vld [vmem:[%s10276_s1 + $0x1ec] ss:$16 sps:$4 sm:$0xff]  }
  0x16   :  { %v6941_v0 = vld [vmem:[%s10276_s1 + $0x1e0] ss:$16 sps:$4 sm:$0xff]   ;;  %v6942_v1 = vld [vmem:[%s10276_s1 + $0x1e8] ss:$16 sps:$4 sm:$0xff]   ;;  %v6947_v2 = vld [vmem:[%s10276_s1 + $0x204] ss:$16 sps:$4 sm:$0xff]  }
  0x17   :  { %1629 = vmatpush1.bf16.msra.mxu0 %v6881_v22  ;;  %1793 = vmatpush1.bf16.msra.mxu1 %v6882_v23  ;;  %v6950_v3 = vld [vmem:[%s10276_s1 + $0x20c] ss:$16 sps:$4 sm:$0xff]   ;;  %v6945_v5 = vld [vmem:[%s10276_s1 + $0x200] ss:$16 sps:$4 sm:$0xff]   ;;  %v6948_v6 = vld [vmem:[%s10276_s1 + $0x208] ss:$16 sps:$4 sm:$0xff]  }
  0x18   :  { %1630 = vmatprep.subr.bf16.mxu0 %v6883_v24  ;;  %1794 = vmatprep.subr.bf16.mxu1 %v6885_v25  ;;  %v6953_v7 = vld [vmem:[%s10276_s1 + $0x224] ss:$16 sps:$4 sm:$0xff]   ;;  %v6956_v8 = vld [vmem:[%s10276_s1 + $0x22c] ss:$16 sps:$4 sm:$0xff]   ;;  %v6951_v9 = vld [vmem:[%s10276_s1 + $0x220] ss:$16 sps:$4 sm:$0xff]  }
  0x19   :  { %v6954_v10 = vld [vmem:[%s10276_s1 + $0x228] ss:$16 sps:$4 sm:$0xff]   ;;  %v6959_v11 = vld [vmem:[%s10276_s1 + $0x244] ss:$16 sps:$4 sm:$0xff]   ;;  %v6962_v12 = vld [vmem:[%s10276_s1 + $0x24c] ss:$16 sps:$4 sm:$0xff]  }
  0x1a   :  { %v6957_v13 = vld [vmem:[%s10276_s1 + $0x240] ss:$16 sps:$4 sm:$0xff]   ;;  %v6960_v14 = vld [vmem:[%s10276_s1 + $0x248] ss:$16 sps:$4 sm:$0xff]   ;;  %v6965_v15 = vld [vmem:[%s10276_s1 + $0x264] ss:$16 sps:$4 sm:$0xff]  }
  0x1b   :  { %1631 = vmatpush1.bf16.msra.mxu0 %v6887_v26  ;;  %1795 = vmatpush1.bf16.msra.mxu1 %v6888_v27  ;;  %v6968_v16 = vld [vmem:[%s10276_s1 + $0x26c] ss:$16 sps:$4 sm:$0xff]   ;;  %v6963_v17 = vld [vmem:[%s10276_s1 + $0x260] ss:$16 sps:$4 sm:$0xff]   ;;  %v6966_v18 = vld [vmem:[%s10276_s1 + $0x268] ss:$16 sps:$4 sm:$0xff]  }
  0x1c   :  { %1632 = vmatprep.subr.bf16.mxu0 %v6889_v28  ;;  %1796 = vmatprep.subr.bf16.mxu1 %v6891_v29  ;;  %v6971_v19 = vld [vmem:[%s10276_s1 + $0x284] ss:$16 sps:$4 sm:$0xff]   ;;  %v6974_v20 = vld [vmem:[%s10276_s1 + $0x28c] ss:$16 sps:$4 sm:$0xff]   ;;  %v6969_v21 = vld [vmem:[%s10276_s1 + $0x280] ss:$16 sps:$4 sm:$0xff]  }
  0x1d   :  { %v6972_v22 = vld [vmem:[%s10276_s1 + $0x288] ss:$16 sps:$4 sm:$0xff]   ;;  %v6977_v23 = vld [vmem:[%s10276_s1 + $0x2a4] ss:$16 sps:$4 sm:$0xff]   ;;  %v6980_v24 = vld [vmem:[%s10276_s1 + $0x2ac] ss:$16 sps:$4 sm:$0xff]  }
  0x1e   :  { %v6975_v25 = vld [vmem:[%s10276_s1 + $0x2a0] ss:$16 sps:$4 sm:$0xff]   ;;  %v6978_v26 = vld [vmem:[%s10276_s1 + $0x2a8] ss:$16 sps:$4 sm:$0xff]   ;;  %v6983_v27 = vld [vmem:[%s10276_s1 + $0x2c4] ss:$16 sps:$4 sm:$0xff]  }
  0x1f   :  { %1633 = vmatpush1.bf16.msra.mxu0 %v6893_v30  ;;  %1797 = vmatpush1.bf16.msra.mxu1 %v6894_v31  ;;  %v6986_v28 = vld [vmem:[%s10276_s1 + $0x2cc] ss:$16 sps:$4 sm:$0xff]   ;;  %v6981_v31 = vld [vmem:[%s10276_s1 + $0x2c0] ss:$16 sps:$4 sm:$0xff]   ;;  %v7008_v48 = vld [vmem:[%s10276_s1 + $0x348] ss:$16 sps:$4 sm:$0xff]  }
  0x20   :  { %1634 = vmatprep.subr.bf16.mxu0 %v6895_v32  ;;  %1798 = vmatprep.subr.bf16.mxu1 %v6897_v33  ;;  %v8252_v29 = vld [vmem:[%s10277_s0 + $0x8] sm:$0xff]  ;;  %v6989_v33 = vld [vmem:[%s10276_s1 + $0x2e4] ss:$16 sps:$4 sm:$0xff]  }
  0x21   :  { %v5783_v30 = vcombine.high %v8252_v29, %v8252_v29  ;;  %v6984_v32 = vld [vmem:[%s10276_s1 + $0x2c8] ss:$16 sps:$4 sm:$0xff]   ;;  %v7010_v46 = vld [vmem:[%s10276_s1 + $0x34c] ss:$16 sps:$4 sm:$0xff]  }
  0x23   :  { %1635 = vmatpush1.bf16.msra.mxu0 %v6899_v34  ;;  %1799 = vmatpush1.bf16.msra.mxu1 %v6900_v35  ;;  %v6992_v34 = vld [vmem:[%s10276_s1 + $0x2ec] ss:$16 sps:$4 sm:$0xff]   ;;  %v6987_v35 = vld [vmem:[%s10276_s1 + $0x2e0] ss:$16 sps:$4 sm:$0xff]  }
  0x24   :  { %1636 = vmatprep.subr.bf16.mxu0 %v6901_v36  ;;  %1800 = vmatprep.subr.bf16.mxu1 %v6903_v37  ;;  %v6990_v36 = vld [vmem:[%s10276_s1 + $0x2e8] ss:$16 sps:$4 sm:$0xff]   ;;  %v6995_v37 = vld [vmem:[%s10276_s1 + $0x304] ss:$16 sps:$4 sm:$0xff]  }
  0x27   :  { %1637 = vmatpush1.bf16.msra.mxu0 %v6905_v38  ;;  %1801 = vmatpush1.bf16.msra.mxu1 %v6906_v39  ;;  %v6998_v38 = vld [vmem:[%s10276_s1 + $0x30c] ss:$16 sps:$4 sm:$0xff]   ;;  %v6993_v39 = vld [vmem:[%s10276_s1 + $0x300] ss:$16 sps:$4 sm:$0xff]  }
  0x28   :  { %1638 = vmatprep.subr.bf16.mxu0 %v6907_v40  ;;  %1802 = vmatprep.subr.bf16.mxu1 %v6909_v41  ;;  %v6996_v40 = vld [vmem:[%s10276_s1 + $0x308] ss:$16 sps:$4 sm:$0xff]   ;;  %v7001_v41 = vld [vmem:[%s10276_s1 + $0x324] ss:$16 sps:$4 sm:$0xff]  }
  0x2b   :  { %1639 = vmatpush1.bf16.msra.mxu0 %v6911_v42  ;;  %1803 = vmatpush1.bf16.msra.mxu1 %v6912_v43  ;;  %v7004_v42 = vld [vmem:[%s10276_s1 + $0x32c] ss:$16 sps:$4 sm:$0xff]   ;;  %v6999_v43 = vld [vmem:[%s10276_s1 + $0x320] ss:$16 sps:$4 sm:$0xff]  }
  0x2c   :  { %1640 = vmatprep.subr.bf16.mxu0 %v6913_v44  ;;  %1804 = vmatprep.subr.bf16.mxu1 %v6915_v45  ;;  %v7002_v44 = vld [vmem:[%s10276_s1 + $0x328] ss:$16 sps:$4 sm:$0xff]   ;;  %v7007_v45 = vld [vmem:[%s10276_s1 + $0x344] ss:$16 sps:$4 sm:$0xff]  }
  0x2f   :  { %1641 = vmatpush1.bf16.msra.mxu0 %v6917_v47  ;;  %1805 = vmatpush1.bf16.msra.mxu1 %v6918_v49  ;;  %v7005_v47 = vld [vmem:[%s10276_s1 + $0x340] ss:$16 sps:$4 sm:$0xff]   ;;  %v7013_v49 = vld [vmem:[%s10276_s1 + $0x364] ss:$16 sps:$4 sm:$0xff]  }
  0x30   :  { %1642 = vmatprep.subr.bf16.mxu0 %v6919_v50  ;;  %1806 = vmatprep.subr.bf16.mxu1 %v6921_v51  ;;  %v7016_v50 = vld [vmem:[%s10276_s1 + $0x36c] ss:$16 sps:$4 sm:$0xff]   ;;  %v7011_v51 = vld [vmem:[%s10276_s1 + $0x360] ss:$16 sps:$4 sm:$0xff]  }
  0x33   :  { %1643 = vmatpush1.bf16.msra.mxu0 %v6923_v52  ;;  %1807 = vmatpush1.bf16.msra.mxu1 %v6924_v53  ;;  %v7014_v52 = vld [vmem:[%s10276_s1 + $0x368] ss:$16 sps:$4 sm:$0xff]   ;;  %v7019_v53 = vld [vmem:[%s10276_s1 + $0x384] ss:$16 sps:$4 sm:$0xff]  }
  0x34   :  { %1644 = vmatprep.subr.bf16.mxu0 %v6925_v54  ;;  %1808 = vmatprep.subr.bf16.mxu1 %v6927_v55  ;;  %v7022_v54 = vld [vmem:[%s10276_s1 + $0x38c] ss:$16 sps:$4 sm:$0xff]   ;;  %v7017_v55 = vld [vmem:[%s10276_s1 + $0x380] ss:$16 sps:$4 sm:$0xff]  }
  0x37   :  { %1645 = vmatpush1.bf16.msra.mxu0 %v6929_v56  ;;  %1809 = vmatpush1.bf16.msra.mxu1 %v6930_v57  ;;  %v7020_v56 = vld [vmem:[%s10276_s1 + $0x388] ss:$16 sps:$4 sm:$0xff]   ;;  %v7025_v57 = vld [vmem:[%s10276_s1 + $0x3a4] ss:$16 sps:$4 sm:$0xff]  }
  0x38   :  { %1646 = vmatprep.subr.bf16.mxu0 %v6931_v58  ;;  %1810 = vmatprep.subr.bf16.mxu1 %v6933_v59  ;;  %v7028_v58 = vld [vmem:[%s10276_s1 + $0x3ac] ss:$16 sps:$4 sm:$0xff]   ;;  %v7023_v59 = vld [vmem:[%s10276_s1 + $0x3a0] ss:$16 sps:$4 sm:$0xff]  }
  0x3b   :  { %1647 = vmatpush1.bf16.msra.mxu0 %v6935_v60  ;;  %1811 = vmatpush1.bf16.msra.mxu1 %v6936_v61  ;;  %v7026_v60 = vld [vmem:[%s10276_s1 + $0x3a8] ss:$16 sps:$4 sm:$0xff]   ;;  %v7031_v61 = vld [vmem:[%s10276_s1 + $0x3c4] ss:$16 sps:$4 sm:$0xff]  }
  0x3c   :  { %1648 = vmatprep.subr.bf16.mxu0 %v6937_v62  ;;  %1812 = vmatprep.subr.bf16.mxu1 %v6939_v63  ;;  %v7034_v62 = vld [vmem:[%s10276_s1 + $0x3cc] ss:$16 sps:$4 sm:$0xff]   ;;  %v7029_v63 = vld [vmem:[%s10276_s1 + $0x3c0] ss:$16 sps:$4 sm:$0xff]  }
  0x3f   :  { %1649 = vmatpush1.bf16.msra.mxu0 %v6941_v0  ;;  %1813 = vmatpush1.bf16.msra.mxu1 %v6942_v1  ;;  %v7032_v0 = vld [vmem:[%s10276_s1 + $0x3c8] ss:$16 sps:$4 sm:$0xff]   ;;  %v7037_v1 = vld [vmem:[%s10276_s1 + $0x3e4] ss:$16 sps:$4 sm:$0xff]  }
  0x40   :  { %1659 = vmatprep.subr.bf16.mxu0 %v6947_v2  ;;  %1823 = vmatprep.subr.bf16.mxu1 %v6950_v3  ;;  %v7040_v2 = vld [vmem:[%s10276_s1 + $0x3ec] ss:$16 sps:$4 sm:$0xff]   ;;  %v7035_v3 = vld [vmem:[%s10276_s1 + $0x3e0] ss:$16 sps:$4 sm:$0xff]  }
  0x42   :  { %1651 = vmatmul.mubr.bf16.vlgmr.msra.gmra.mrb[0].mxu0 %v5780_v4  ;;  %1815 = vmatmul.mubr.bf16.vlgmr.msra.gmra.mrb[0].mxu1 %v5780_v4  ;;  %v7038_v4 = vld [vmem:[%s10276_s1 + $0x3e8] ss:$16 sps:$4 sm:$0xff]  }
  0x43   :  { %1660 = vmatpush1.bf16.msra.mxu0 %v6945_v5  ;;  %1824 = vmatpush1.bf16.msra.mxu1 %v6948_v6  ;;  %v7045_v5 = vld [vmem:[%s10276_s1 + $0x404] ss:$16 sps:$4 sm:$0xff]   ;;  %v7048_v6 = vld [vmem:[%s10276_s1 + $0x40c] ss:$16 sps:$4 sm:$0xff]  }
  0x44   :  { %1661 = vmatprep.subr.bf16.mxu0 %v6953_v7  ;;  %1825 = vmatprep.subr.bf16.mxu1 %v6956_v8  ;;  %v5782_v7 = vcombine.low %v8252_v29, %v8252_v29  ;;  %v7043_v8 = vld [vmem:[%s10276_s1 + $0x400] ss:$16 sps:$4 sm:$0xff]   ;;  %v7078_v29 = vld [vmem:[%s10276_s1 + $0x4ac] ss:$16 sps:$4 sm:$0xff]  }
  0x45   :  { %1691 = vmatprep.mubr.bf16.mxu0 %v5783_v30  ;;  %1855 = vmatprep.mubr.bf16.mxu1 %v5783_v30  ;;  %v7073_v30 = vld [vmem:[%s10276_s1 + $0x4a0] ss:$16 sps:$4 sm:$0xff]  }
  0x47   :  { %1662 = vmatpush1.bf16.msra.mxu0 %v6951_v9  ;;  %1826 = vmatpush1.bf16.msra.mxu1 %v6954_v10  ;;  %v7046_v9 = vld [vmem:[%s10276_s1 + $0x408] ss:$16 sps:$4 sm:$0xff]   ;;  %v7051_v10 = vld [vmem:[%s10276_s1 + $0x424] ss:$16 sps:$4 sm:$0xff]  }
  0x48   :  { %1663 = vmatprep.subr.bf16.mxu0 %v6959_v11  ;;  %1827 = vmatprep.subr.bf16.mxu1 %v6962_v12  ;;  %v8390_v11 = vld [vmem:[%s10277_s0 + $0x10] sm:$0xff]  ;;  %v7054_v12 = vld [vmem:[%s10276_s1 + $0x42c] ss:$16 sps:$4 sm:$0xff]  }
  0x4b   :  { %1664 = vmatpush1.bf16.msra.mxu0 %v6957_v13  ;;  %1828 = vmatpush1.bf16.msra.mxu1 %v6960_v14  ;;  %v5785_v13 = vcombine.high %v8390_v11, %v8390_v11  ;;  %v7049_v14 = vld [vmem:[%s10276_s1 + $0x420] ss:$16 sps:$4 sm:$0xff]  }
  0x4c   :  { %1665 = vmatprep.subr.bf16.mxu0 %v6965_v15  ;;  %1829 = vmatprep.subr.bf16.mxu1 %v6968_v16  ;;  %v7052_v15 = vld [vmem:[%s10276_s1 + $0x428] ss:$16 sps:$4 sm:$0xff]   ;;  %v7057_v16 = vld [vmem:[%s10276_s1 + $0x444] ss:$16 sps:$4 sm:$0xff]  }
  0x4f   :  { %1666 = vmatpush1.bf16.msra.mxu0 %v6963_v17  ;;  %1830 = vmatpush1.bf16.msra.mxu1 %v6966_v18  ;;  %v7060_v17 = vld [vmem:[%s10276_s1 + $0x44c] ss:$16 sps:$4 sm:$0xff]   ;;  %v7055_v18 = vld [vmem:[%s10276_s1 + $0x440] ss:$16 sps:$4 sm:$0xff]  }
  0x50   :  { %1667 = vmatprep.subr.bf16.mxu0 %v6971_v19  ;;  %1831 = vmatprep.subr.bf16.mxu1 %v6974_v20  ;;  %v7058_v19 = vld [vmem:[%s10276_s1 + $0x448] ss:$16 sps:$4 sm:$0xff]   ;;  %v7063_v20 = vld [vmem:[%s10276_s1 + $0x464] ss:$16 sps:$4 sm:$0xff]  }
  0x53   :  { %1668 = vmatpush1.bf16.msra.mxu0 %v6969_v21  ;;  %1832 = vmatpush1.bf16.msra.mxu1 %v6972_v22  ;;  %v7066_v21 = vld [vmem:[%s10276_s1 + $0x46c] ss:$16 sps:$4 sm:$0xff]   ;;  %v7061_v22 = vld [vmem:[%s10276_s1 + $0x460] ss:$16 sps:$4 sm:$0xff]  }
  0x54   :  { %1669 = vmatprep.subr.bf16.mxu0 %v6977_v23  ;;  %1833 = vmatprep.subr.bf16.mxu1 %v6980_v24  ;;  %v7064_v23 = vld [vmem:[%s10276_s1 + $0x468] ss:$16 sps:$4 sm:$0xff]   ;;  %v7069_v24 = vld [vmem:[%s10276_s1 + $0x484] ss:$16 sps:$4 sm:$0xff]  }
  0x57   :  { %1670 = vmatpush1.bf16.msra.mxu0 %v6975_v25  ;;  %1834 = vmatpush1.bf16.msra.mxu1 %v6978_v26  ;;  %v7072_v25 = vld [vmem:[%s10276_s1 + $0x48c] ss:$16 sps:$4 sm:$0xff]   ;;  %v7067_v26 = vld [vmem:[%s10276_s1 + $0x480] ss:$16 sps:$4 sm:$0xff]  }
  0x58   :  { %1671 = vmatprep.subr.bf16.mxu0 %v6983_v27  ;;  %1835 = vmatprep.subr.bf16.mxu1 %v6986_v28  ;;  %v7070_v27 = vld [vmem:[%s10276_s1 + $0x488] ss:$16 sps:$4 sm:$0xff]   ;;  %v7075_v28 = vld [vmem:[%s10276_s1 + $0x4a4] ss:$16 sps:$4 sm:$0xff]  }
  0x5b   :  { %1672 = vmatpush1.bf16.msra.mxu0 %v6981_v31  ;;  %1836 = vmatpush1.bf16.msra.mxu1 %v6984_v32  ;;  %v7076_v31 = vld [vmem:[%s10276_s1 + $0x4a8] ss:$16 sps:$4 sm:$0xff]   ;;  %v7081_v32 = vld [vmem:[%s10276_s1 + $0x4c4] ss:$16 sps:$4 sm:$0xff]  }
  0x5c   :  { %1673 = vmatprep.subr.bf16.mxu0 %v6989_v33  ;;  %1837 = vmatprep.subr.bf16.mxu1 %v6992_v34  ;;  %v7084_v33 = vld [vmem:[%s10276_s1 + $0x4cc] ss:$16 sps:$4 sm:$0xff]   ;;  %v7079_v34 = vld [vmem:[%s10276_s1 + $0x4c0] ss:$16 sps:$4 sm:$0xff]  }
  0x5f   :  { %1674 = vmatpush1.bf16.msra.mxu0 %v6987_v35  ;;  %1838 = vmatpush1.bf16.msra.mxu1 %v6990_v36  ;;  %v7082_v35 = vld [vmem:[%s10276_s1 + $0x4c8] ss:$16 sps:$4 sm:$0xff]   ;;  %v7087_v36 = vld [vmem:[%s10276_s1 + $0x4e4] ss:$16 sps:$4 sm:$0xff]  }
  0x60   :  { %1675 = vmatprep.subr.bf16.mxu0 %v6995_v37  ;;  %1839 = vmatprep.subr.bf16.mxu1 %v6998_v38  ;;  %v7090_v37 = vld [vmem:[%s10276_s1 + $0x4ec] ss:$16 sps:$4 sm:$0xff]   ;;  %v7085_v38 = vld [vmem:[%s10276_s1 + $0x4e0] ss:$16 sps:$4 sm:$0xff]  }
  0x63   :  { %1676 = vmatpush1.bf16.msra.mxu0 %v6993_v39  ;;  %1840 = vmatpush1.bf16.msra.mxu1 %v6996_v40  ;;  %v7088_v39 = vld [vmem:[%s10276_s1 + $0x4e8] ss:$16 sps:$4 sm:$0xff]   ;;  %v7093_v40 = vld [vmem:[%s10276_s1 + $0x504] ss:$16 sps:$4 sm:$0xff]  }
  0x64   :  { %1677 = vmatprep.subr.bf16.mxu0 %v7001_v41  ;;  %1841 = vmatprep.subr.bf16.mxu1 %v7004_v42  ;;  %v7096_v41 = vld [vmem:[%s10276_s1 + $0x50c] ss:$16 sps:$4 sm:$0xff]   ;;  %v7091_v42 = vld [vmem:[%s10276_s1 + $0x500] ss:$16 sps:$4 sm:$0xff]  }
  0x67   :  { %1678 = vmatpush1.bf16.msra.mxu0 %v6999_v43  ;;  %1842 = vmatpush1.bf16.msra.mxu1 %v7002_v44  ;;  %v7094_v43 = vld [vmem:[%s10276_s1 + $0x508] ss:$16 sps:$4 sm:$0xff]   ;;  %v7099_v44 = vld [vmem:[%s10276_s1 + $0x524] ss:$16 sps:$4 sm:$0xff]  }
  0x68   :  { %1679 = vmatprep.subr.bf16.mxu0 %v7007_v45  ;;  %1843 = vmatprep.subr.bf16.mxu1 %v7010_v46  ;;  %v7102_v45 = vld [vmem:[%s10276_s1 + $0x52c] ss:$16 sps:$4 sm:$0xff]   ;;  %v7097_v46 = vld [vmem:[%s10276_s1 + $0x520] ss:$16 sps:$4 sm:$0xff]  }
  0x6b   :  { %1680 = vmatpush1.bf16.msra.mxu0 %v7005_v47  ;;  %1844 = vmatpush1.bf16.msra.mxu1 %v7008_v48  ;;  %v7100_v47 = vld [vmem:[%s10276_s1 + $0x528] ss:$16 sps:$4 sm:$0xff]   ;;  %v7105_v48 = vld [vmem:[%s10276_s1 + $0x544] ss:$16 sps:$4 sm:$0xff]  }
  0x6c   :  { %1681 = vmatprep.subr.bf16.mxu0 %v7013_v49  ;;  %1845 = vmatprep.subr.bf16.mxu1 %v7016_v50  ;;  %v7108_v49 = vld [vmem:[%s10276_s1 + $0x54c] ss:$16 sps:$4 sm:$0xff]   ;;  %v7103_v50 = vld [vmem:[%s10276_s1 + $0x540] ss:$16 sps:$4 sm:$0xff]  }
  0x6f   :  { %1682 = vmatpush1.bf16.msra.mxu0 %v7011_v51  ;;  %1846 = vmatpush1.bf16.msra.mxu1 %v7014_v52  ;;  %v7106_v51 = vld [vmem:[%s10276_s1 + $0x548] ss:$16 sps:$4 sm:$0xff]   ;;  %v7111_v52 = vld [vmem:[%s10276_s1 + $0x564] ss:$16 sps:$4 sm:$0xff]  }
  0x70   :  { %1683 = vmatprep.subr.bf16.mxu0 %v7019_v53  ;;  %1847 = vmatprep.subr.bf16.mxu1 %v7022_v54  ;;  %v7114_v53 = vld [vmem:[%s10276_s1 + $0x56c] ss:$16 sps:$4 sm:$0xff]   ;;  %v7109_v54 = vld [vmem:[%s10276_s1 + $0x560] ss:$16 sps:$4 sm:$0xff]  }
  0x73   :  { %1684 = vmatpush1.bf16.msra.mxu0 %v7017_v55  ;;  %1848 = vmatpush1.bf16.msra.mxu1 %v7020_v56  ;;  %v7112_v55 = vld [vmem:[%s10276_s1 + $0x568] ss:$16 sps:$4 sm:$0xff]   ;;  %v7117_v56 = vld [vmem:[%s10276_s1 + $0x584] ss:$16 sps:$4 sm:$0xff]  }
  0x74   :  { %1685 = vmatprep.subr.bf16.mxu0 %v7025_v57  ;;  %1849 = vmatprep.subr.bf16.mxu1 %v7028_v58  ;;  %v7120_v57 = vld [vmem:[%s10276_s1 + $0x58c] ss:$16 sps:$4 sm:$0xff]   ;;  %v7115_v58 = vld [vmem:[%s10276_s1 + $0x580] ss:$16 sps:$4 sm:$0xff]  }
  0x77   :  { %1686 = vmatpush1.bf16.msra.mxu0 %v7023_v59  ;;  %1850 = vmatpush1.bf16.msra.mxu1 %v7026_v60  ;;  %v7118_v59 = vld [vmem:[%s10276_s1 + $0x588] ss:$16 sps:$4 sm:$0xff]   ;;  %v7123_v60 = vld [vmem:[%s10276_s1 + $0x5a4] ss:$16 sps:$4 sm:$0xff]  }
  0x78   :  { %1687 = vmatprep.subr.bf16.mxu0 %v7031_v61  ;;  %1851 = vmatprep.subr.bf16.mxu1 %v7034_v62  ;;  %v7126_v61 = vld [vmem:[%s10276_s1 + $0x5ac] ss:$16 sps:$4 sm:$0xff]   ;;  %v7121_v62 = vld [vmem:[%s10276_s1 + $0x5a0] ss:$16 sps:$4 sm:$0xff]  }
  0x7b   :  { %1688 = vmatpush1.bf16.msra.mxu0 %v7029_v63  ;;  %1852 = vmatpush1.bf16.msra.mxu1 %v7032_v0  ;;  %v7124_v63 = vld [vmem:[%s10276_s1 + $0x5a8] ss:$16 sps:$4 sm:$0xff]   ;;  %v7129_v0 = vld [vmem:[%s10276_s1 + $0x5c4] ss:$16 sps:$4 sm:$0xff]  }
  0x7c   :  { %1689 = vmatprep.subr.bf16.mxu0 %v7037_v1  ;;  %1853 = vmatprep.subr.bf16.mxu1 %v7040_v2  ;;  %v7132_v1 = vld [vmem:[%s10276_s1 + $0x5cc] ss:$16 sps:$4 sm:$0xff]   ;;  %v7127_v2 = vld [vmem:[%s10276_s1 + $0x5c0] ss:$16 sps:$4 sm:$0xff]  }
  0x7f   :  { %1690 = vmatpush1.bf16.msra.mxu0 %v7035_v3  ;;  %1854 = vmatpush1.bf16.msra.mxu1 %v7038_v4  ;;  %v7130_v3 = vld [vmem:[%s10276_s1 + $0x5c8] ss:$16 sps:$4 sm:$0xff]   ;;  %v7135_v4 = vld [vmem:[%s10276_s1 + $0x5e4] ss:$16 sps:$4 sm:$0xff]  }
  0x80   :  { %1700 = vmatprep.subr.bf16.mxu0 %v7045_v5  ;;  %1864 = vmatprep.subr.bf16.mxu1 %v7048_v6  ;;  %v7138_v5 = vld [vmem:[%s10276_s1 + $0x5ec] ss:$16 sps:$4 sm:$0xff]   ;;  %v7133_v6 = vld [vmem:[%s10276_s1 + $0x5e0] ss:$16 sps:$4 sm:$0xff]  }
  0x82   :  { %1692 = vmatmul.mubr.bf16.vlgmr.msra.gmra.mrb[0].mxu0 %v5782_v7  ;;  %1856 = vmatmul.mubr.bf16.vlgmr.msra.gmra.mrb[0].mxu1 %v5782_v7  ;;  %v7136_v7 = vld [vmem:[%s10276_s1 + $0x5e8] ss:$16 sps:$4 sm:$0xff]  }
  0x83   :  { %1701 = vmatpush1.bf16.msra.mxu0 %v7043_v8  ;;  %1865 = vmatpush1.bf16.msra.mxu1 %v7046_v9  ;;  %v7143_v8 = vld [vmem:[%s10276_s1 + $0x604] ss:$16 sps:$4 sm:$0xff]   ;;  %v7146_v9 = vld [vmem:[%s10276_s1 + $0x60c] ss:$16 sps:$4 sm:$0xff]  }
  0x84   :  { %1702 = vmatprep.subr.bf16.mxu0 %v7051_v10  ;;  %1866 = vmatprep.subr.bf16.mxu1 %v7054_v12  ;;  %v7141_v10 = vld [vmem:[%s10276_s1 + $0x600] ss:$16 sps:$4 sm:$0xff]   ;;  %v5784_v12 = vcombine.low %v8390_v11, %v8390_v11  ;;  %v7152_v11 = vld [vmem:[%s10276_s1 + $0x62c] ss:$16 sps:$4 sm:$0xff]  }
  0x85   :  { %1732 = vmatprep.mubr.bf16.mxu0 %v5785_v13  ;;  %1896 = vmatprep.mubr.bf16.mxu1 %v5785_v13  ;;  %v7144_v13 = vld [vmem:[%s10276_s1 + $0x608] ss:$16 sps:$4 sm:$0xff]  }
  0x87   :  { %1703 = vmatpush1.bf16.msra.mxu0 %v7049_v14  ;;  %1867 = vmatpush1.bf16.msra.mxu1 %v7052_v15  ;;  %v8588_v14 = vld [vmem:[%s10277_s0 + $0x18] sm:$0xff]  ;;  %v7149_v15 = vld [vmem:[%s10276_s1 + $0x624] ss:$16 sps:$4 sm:$0xff]  }
  0x88   :  { %1704 = vmatprep.subr.bf16.mxu0 %v7057_v16  ;;  %1868 = vmatprep.subr.bf16.mxu1 %v7060_v17  ;;  %v5787_v16 = vcombine.high %v8588_v14, %v8588_v14  ;;  %v7147_v17 = vld [vmem:[%s10276_s1 + $0x620] ss:$16 sps:$4 sm:$0xff]  }
  0x8b   :  { %1705 = vmatpush1.bf16.msra.mxu0 %v7055_v18  ;;  %1869 = vmatpush1.bf16.msra.mxu1 %v7058_v19  ;;  %v7150_v18 = vld [vmem:[%s10276_s1 + $0x628] ss:$16 sps:$4 sm:$0xff]   ;;  %v7155_v19 = vld [vmem:[%s10276_s1 + $0x644] ss:$16 sps:$4 sm:$0xff]  }
  0x8c   :  { %1706 = vmatprep.subr.bf16.mxu0 %v7063_v20  ;;  %1870 = vmatprep.subr.bf16.mxu1 %v7066_v21  ;;  %v7158_v20 = vld [vmem:[%s10276_s1 + $0x64c] ss:$16 sps:$4 sm:$0xff]   ;;  %v7153_v21 = vld [vmem:[%s10276_s1 + $0x640] ss:$16 sps:$4 sm:$0xff]  }
  0x8f   :  { %1707 = vmatpush1.bf16.msra.mxu0 %v7061_v22  ;;  %1871 = vmatpush1.bf16.msra.mxu1 %v7064_v23  ;;  %v7156_v22 = vld [vmem:[%s10276_s1 + $0x648] ss:$16 sps:$4 sm:$0xff]   ;;  %v7161_v23 = vld [vmem:[%s10276_s1 + $0x664] ss:$16 sps:$4 sm:$0xff]  }
  0x90   :  { %1708 = vmatprep.subr.bf16.mxu0 %v7069_v24  ;;  %1872 = vmatprep.subr.bf16.mxu1 %v7072_v25  ;;  %v7164_v24 = vld [vmem:[%s10276_s1 + $0x66c] ss:$16 sps:$4 sm:$0xff]   ;;  %v7159_v25 = vld [vmem:[%s10276_s1 + $0x660] ss:$16 sps:$4 sm:$0xff]  }
  0x93   :  { %1709 = vmatpush1.bf16.msra.mxu0 %v7067_v26  ;;  %1873 = vmatpush1.bf16.msra.mxu1 %v7070_v27  ;;  %v7162_v26 = vld [vmem:[%s10276_s1 + $0x668] ss:$16 sps:$4 sm:$0xff]   ;;  %v7167_v27 = vld [vmem:[%s10276_s1 + $0x684] ss:$16 sps:$4 sm:$0xff]  }
  0x94   :  { %1710 = vmatprep.subr.bf16.mxu0 %v7075_v28  ;;  %1874 = vmatprep.subr.bf16.mxu1 %v7078_v29  ;;  %v7170_v28 = vld [vmem:[%s10276_s1 + $0x68c] ss:$16 sps:$4 sm:$0xff]   ;;  %v7165_v29 = vld [vmem:[%s10276_s1 + $0x680] ss:$16 sps:$4 sm:$0xff]  }
  0x97   :  { %1711 = vmatpush1.bf16.msra.mxu0 %v7073_v30  ;;  %1875 = vmatpush1.bf16.msra.mxu1 %v7076_v31  ;;  %v7168_v30 = vld [vmem:[%s10276_s1 + $0x688] ss:$16 sps:$4 sm:$0xff]   ;;  %v7173_v31 = vld [vmem:[%s10276_s1 + $0x6a4] ss:$16 sps:$4 sm:$0xff]  }
  0x98   :  { %1712 = vmatprep.subr.bf16.mxu0 %v7081_v32  ;;  %1876 = vmatprep.subr.bf16.mxu1 %v7084_v33  ;;  %v7176_v32 = vld [vmem:[%s10276_s1 + $0x6ac] ss:$16 sps:$4 sm:$0xff]   ;;  %v7171_v33 = vld [vmem:[%s10276_s1 + $0x6a0] ss:$16 sps:$4 sm:$0xff]  }
  0x9b   :  { %1713 = vmatpush1.bf16.msra.mxu0 %v7079_v34  ;;  %1877 = vmatpush1.bf16.msra.mxu1 %v7082_v35  ;;  %v7174_v34 = vld [vmem:[%s10276_s1 + $0x6a8] ss:$16 sps:$4 sm:$0xff]   ;;  %v7179_v35 = vld [vmem:[%s10276_s1 + $0x6c4] ss:$16 sps:$4 sm:$0xff]  }
  0x9c   :  { %1714 = vmatprep.subr.bf16.mxu0 %v7087_v36  ;;  %1878 = vmatprep.subr.bf16.mxu1 %v7090_v37  ;;  %v7182_v36 = vld [vmem:[%s10276_s1 + $0x6cc] ss:$16 sps:$4 sm:$0xff]   ;;  %v7177_v37 = vld [vmem:[%s10276_s1 + $0x6c0] ss:$16 sps:$4 sm:$0xff]  }
  0x9f   :  { %1715 = vmatpush1.bf16.msra.mxu0 %v7085_v38  ;;  %1879 = vmatpush1.bf16.msra.mxu1 %v7088_v39  ;;  %v7180_v38 = vld [vmem:[%s10276_s1 + $0x6c8] ss:$16 sps:$4 sm:$0xff]   ;;  %v7185_v39 = vld [vmem:[%s10276_s1 + $0x6e4] ss:$16 sps:$4 sm:$0xff]  }
  0xa0   :  { %1716 = vmatprep.subr.bf16.mxu0 %v7093_v40  ;;  %1880 = vmatprep.subr.bf16.mxu1 %v7096_v41  ;;  %v7188_v40 = vld [vmem:[%s10276_s1 + $0x6ec] ss:$16 sps:$4 sm:$0xff]   ;;  %v7183_v41 = vld [vmem:[%s10276_s1 + $0x6e0] ss:$16 sps:$4 sm:$0xff]  }
  0xa3   :  { %1717 = vmatpush1.bf16.msra.mxu0 %v7091_v42  ;;  %1881 = vmatpush1.bf16.msra.mxu1 %v7094_v43  ;;  %v7186_v42 = vld [vmem:[%s10276_s1 + $0x6e8] ss:$16 sps:$4 sm:$0xff]   ;;  %v7191_v43 = vld [vmem:[%s10276_s1 + $0x704] ss:$16 sps:$4 sm:$0xff]  }
  0xa4   :  { %1718 = vmatprep.subr.bf16.mxu0 %v7099_v44  ;;  %1882 = vmatprep.subr.bf16.mxu1 %v7102_v45  ;;  %v7194_v44 = vld [vmem:[%s10276_s1 + $0x70c] ss:$16 sps:$4 sm:$0xff]   ;;  %v7189_v45 = vld [vmem:[%s10276_s1 + $0x700] ss:$16 sps:$4 sm:$0xff]  }
  0xa7   :  { %1719 = vmatpush1.bf16.msra.mxu0 %v7097_v46  ;;  %1883 = vmatpush1.bf16.msra.mxu1 %v7100_v47  ;;  %v7192_v46 = vld [vmem:[%s10276_s1 + $0x708] ss:$16 sps:$4 sm:$0xff]   ;;  %v7197_v47 = vld [vmem:[%s10276_s1 + $0x724] ss:$16 sps:$4 sm:$0xff]  }
  0xa8   :  { %1720 = vmatprep.subr.bf16.mxu0 %v7105_v48  ;;  %1884 = vmatprep.subr.bf16.mxu1 %v7108_v49  ;;  %v7200_v48 = vld [vmem:[%s10276_s1 + $0x72c] ss:$16 sps:$4 sm:$0xff]   ;;  %v7195_v49 = vld [vmem:[%s10276_s1 + $0x720] ss:$16 sps:$4 sm:$0xff]  }
  0xab   :  { %1721 = vmatpush1.bf16.msra.mxu0 %v7103_v50  ;;  %1885 = vmatpush1.bf16.msra.mxu1 %v7106_v51  ;;  %v7198_v50 = vld [vmem:[%s10276_s1 + $0x728] ss:$16 sps:$4 sm:$0xff]   ;;  %v7203_v51 = vld [vmem:[%s10276_s1 + $0x744] ss:$16 sps:$4 sm:$0xff]  }
  0xac   :  { %1722 = vmatprep.subr.bf16.mxu0 %v7111_v52  ;;  %1886 = vmatprep.subr.bf16.mxu1 %v7114_v53  ;;  %v7206_v52 = vld [vmem:[%s10276_s1 + $0x74c] ss:$16 sps:$4 sm:$0xff]   ;;  %v7201_v53 = vld [vmem:[%s10276_s1 + $0x740] ss:$16 sps:$4 sm:$0xff]  }
  0xaf   :  { %1723 = vmatpush1.bf16.msra.mxu0 %v7109_v54  ;;  %1887 = vmatpush1.bf16.msra.mxu1 %v7112_v55  ;;  %v7204_v54 = vld [vmem:[%s10276_s1 + $0x748] ss:$16 sps:$4 sm:$0xff]   ;;  %v7209_v55 = vld [vmem:[%s10276_s1 + $0x764] ss:$16 sps:$4 sm:$0xff]  }
  0xb0   :  { %1724 = vmatprep.subr.bf16.mxu0 %v7117_v56  ;;  %1888 = vmatprep.subr.bf16.mxu1 %v7120_v57  ;;  %v7212_v56 = vld [vmem:[%s10276_s1 + $0x76c] ss:$16 sps:$4 sm:$0xff]   ;;  %v7207_v57 = vld [vmem:[%s10276_s1 + $0x760] ss:$16 sps:$4 sm:$0xff]  }
  0xb3   :  { %1725 = vmatpush1.bf16.msra.mxu0 %v7115_v58  ;;  %1889 = vmatpush1.bf16.msra.mxu1 %v7118_v59  ;;  %v7210_v58 = vld [vmem:[%s10276_s1 + $0x768] ss:$16 sps:$4 sm:$0xff]   ;;  %v7215_v59 = vld [vmem:[%s10276_s1 + $0x784] ss:$16 sps:$4 sm:$0xff]  }
  0xb4   :  { %1726 = vmatprep.subr.bf16.mxu0 %v7123_v60  ;;  %1890 = vmatprep.subr.bf16.mxu1 %v7126_v61  ;;  %v7218_v60 = vld [vmem:[%s10276_s1 + $0x78c] ss:$16 sps:$4 sm:$0xff]   ;;  %v7213_v61 = vld [vmem:[%s10276_s1 + $0x780] ss:$16 sps:$4 sm:$0xff]  }
  0xb7   :  { %1727 = vmatpush1.bf16.msra.mxu0 %v7121_v62  ;;  %1891 = vmatpush1.bf16.msra.mxu1 %v7124_v63  ;;  %v7216_v62 = vld [vmem:[%s10276_s1 + $0x788] ss:$16 sps:$4 sm:$0xff]   ;;  %v7221_v63 = vld [vmem:[%s10276_s1 + $0x7a4] ss:$16 sps:$4 sm:$0xff]  }
  0xb8   :  { %1728 = vmatprep.subr.bf16.mxu0 %v7129_v0  ;;  %1892 = vmatprep.subr.bf16.mxu1 %v7132_v1  ;;  %v7224_v0 = vld [vmem:[%s10276_s1 + $0x7ac] ss:$16 sps:$4 sm:$0xff]   ;;  %v7219_v1 = vld [vmem:[%s10276_s1 + $0x7a0] ss:$16 sps:$4 sm:$0xff]  }
  0xbb   :  { %1729 = vmatpush1.bf16.msra.mxu0 %v7127_v2  ;;  %1893 = vmatpush1.bf16.msra.mxu1 %v7130_v3  ;;  %v7222_v2 = vld [vmem:[%s10276_s1 + $0x7a8] ss:$16 sps:$4 sm:$0xff]   ;;  %v7227_v3 = vld [vmem:[%s10276_s1 + $0x7c4] ss:$16 sps:$4 sm:$0xff]  }
  0xbc   :  { %1730 = vmatprep.subr.bf16.mxu0 %v7135_v4  ;;  %1894 = vmatprep.subr.bf16.mxu1 %v7138_v5  ;;  %v7230_v4 = vld [vmem:[%s10276_s1 + $0x7cc] ss:$16 sps:$4 sm:$0xff]   ;;  %v7225_v5 = vld [vmem:[%s10276_s1 + $0x7c0] ss:$16 sps:$4 sm:$0xff]  }
  0xbf   :  { %1731 = vmatpush1.bf16.msra.mxu0 %v7133_v6  ;;  %1895 = vmatpush1.bf16.msra.mxu1 %v7136_v7  ;;  %v7228_v6 = vld [vmem:[%s10276_s1 + $0x7c8] ss:$16 sps:$4 sm:$0xff]   ;;  %v7233_v7 = vld [vmem:[%s10276_s1 + $0x7e4] ss:$16 sps:$4 sm:$0xff]  }
  0xc0   :  { %1741 = vmatprep.subr.bf16.mxu0 %v7143_v8  ;;  %1905 = vmatprep.subr.bf16.mxu1 %v7146_v9  ;;  %v7236_v8 = vld [vmem:[%s10276_s1 + $0x7ec] ss:$16 sps:$4 sm:$0xff]   ;;  %v7231_v9 = vld [vmem:[%s10276_s1 + $0x7e0] ss:$16 sps:$4 sm:$0xff]  }
  0xc2   :  { %1733 = vmatmul.mubr.bf16.vlgmr.msra.gmra.mrb[0].mxu0 %v5784_v12  ;;  %1897 = vmatmul.mubr.bf16.vlgmr.msra.gmra.mrb[0].mxu1 %v5784_v12  ;;  %v7241_v12 = vld [vmem:[%s10278_s2 + $0x4] ss:$16 sps:$4 sm:$0xff]  }
  0xc3   :  { %1742 = vmatpush1.bf16.msra.mxu0 %v7141_v10  ;;  %1906 = vmatpush1.bf16.msra.mxu1 %v7144_v13  ;;  %v7234_v10 = vld [vmem:[%s10276_s1 + $0x7e8] ss:$16 sps:$4 sm:$0xff]   ;;  %v7244_v13 = vld [vmem:[%s10278_s2 + $0xc] ss:$16 sps:$4 sm:$0xff]  }
  0xc4   :  { %1743 = vmatprep.subr.bf16.mxu0 %v7149_v15  ;;  %1907 = vmatprep.subr.bf16.mxu1 %v7152_v11  ;;  %v7239_v15 = vld [vmem:[%s10278_s2] ss:$16 sps:$4 sm:$0xff]   ;;  %v7242_v11 = vld [vmem:[%s10278_s2 + $0x8] ss:$16 sps:$4 sm:$0xff]  }
  0xc5   :  { %1773 = vmatprep.mubr.bf16.mxu0 %v5787_v16  ;;  %1937 = vmatprep.mubr.bf16.mxu1 %v5787_v16  ;;  %v5786_v16 = vcombine.low %v8588_v14, %v8588_v14  ;;  %v7248_v14 = vld [vmem:[%s10278_s2 + $0x28] ss:$16 sps:$4 sm:$0xff]  }
  0xc7   :  { %1744 = vmatpush1.bf16.msra.mxu0 %v7147_v17  ;;  %1908 = vmatpush1.bf16.msra.mxu1 %v7150_v18  ;;  %v7247_v17 = vld [vmem:[%s10278_s2 + $0x24] ss:$16 sps:$4 sm:$0xff]   ;;  %v7250_v18 = vld [vmem:[%s10278_s2 + $0x2c] ss:$16 sps:$4 sm:$0xff]  }
  0xc8   :  { %1745 = vmatprep.subr.bf16.mxu0 %v7155_v19  ;;  %1909 = vmatprep.subr.bf16.mxu1 %v7158_v20  ;;  %v7245_v19 = vld [vmem:[%s10278_s2 + $0x20] ss:$16 sps:$4 sm:$0xff]   ;;  %v7253_v20 = vld [vmem:[%s10278_s2 + $0x44] ss:$16 sps:$4 sm:$0xff]  }
  0xcb   :  { %1746 = vmatpush1.bf16.msra.mxu0 %v7153_v21  ;;  %1910 = vmatpush1.bf16.msra.mxu1 %v7156_v22  ;;  %v7256_v21 = vld [vmem:[%s10278_s2 + $0x4c] ss:$16 sps:$4 sm:$0xff]   ;;  %v7251_v22 = vld [vmem:[%s10278_s2 + $0x40] ss:$16 sps:$4 sm:$0xff]  }
  0xcc   :  { %1747 = vmatprep.subr.bf16.mxu0 %v7161_v23  ;;  %1911 = vmatprep.subr.bf16.mxu1 %v7164_v24  ;;  %v7254_v23 = vld [vmem:[%s10278_s2 + $0x48] ss:$16 sps:$4 sm:$0xff]   ;;  %v7259_v24 = vld [vmem:[%s10278_s2 + $0x64] ss:$16 sps:$4 sm:$0xff]  }
  0xcf   :  { %1748 = vmatpush1.bf16.msra.mxu0 %v7159_v25  ;;  %1912 = vmatpush1.bf16.msra.mxu1 %v7162_v26  ;;  %v7262_v25 = vld [vmem:[%s10278_s2 + $0x6c] ss:$16 sps:$4 sm:$0xff]   ;;  %v7257_v26 = vld [vmem:[%s10278_s2 + $0x60] ss:$16 sps:$4 sm:$0xff]  }
  0xd0   :  { %1749 = vmatprep.subr.bf16.mxu0 %v7167_v27  ;;  %1913 = vmatprep.subr.bf16.mxu1 %v7170_v28  ;;  %v7260_v27 = vld [vmem:[%s10278_s2 + $0x68] ss:$16 sps:$4 sm:$0xff]   ;;  %v7265_v28 = vld [vmem:[%s10278_s2 + $0x84] ss:$16 sps:$4 sm:$0xff]  }
  0xd3   :  { %1750 = vmatpush1.bf16.msra.mxu0 %v7165_v29  ;;  %1914 = vmatpush1.bf16.msra.mxu1 %v7168_v30  ;;  %v7268_v29 = vld [vmem:[%s10278_s2 + $0x8c] ss:$16 sps:$4 sm:$0xff]   ;;  %v7263_v30 = vld [vmem:[%s10278_s2 + $0x80] ss:$16 sps:$4 sm:$0xff]  }
  0xd4   :  { %1751 = vmatprep.subr.bf16.mxu0 %v7173_v31  ;;  %1915 = vmatprep.subr.bf16.mxu1 %v7176_v32  ;;  %v7266_v31 = vld [vmem:[%s10278_s2 + $0x88] ss:$16 sps:$4 sm:$0xff]   ;;  %v7271_v32 = vld [vmem:[%s10278_s2 + $0xa4] ss:$16 sps:$4 sm:$0xff]  }
  0xd7   :  { %1752 = vmatpush1.bf16.msra.mxu0 %v7171_v33  ;;  %1916 = vmatpush1.bf16.msra.mxu1 %v7174_v34  ;;  %v7274_v33 = vld [vmem:[%s10278_s2 + $0xac] ss:$16 sps:$4 sm:$0xff]   ;;  %v7269_v34 = vld [vmem:[%s10278_s2 + $0xa0] ss:$16 sps:$4 sm:$0xff]  }
  0xd8   :  { %1753 = vmatprep.subr.bf16.mxu0 %v7179_v35  ;;  %1917 = vmatprep.subr.bf16.mxu1 %v7182_v36  ;;  %v7272_v35 = vld [vmem:[%s10278_s2 + $0xa8] ss:$16 sps:$4 sm:$0xff]   ;;  %v7277_v36 = vld [vmem:[%s10278_s2 + $0xc4] ss:$16 sps:$4 sm:$0xff]  }
  0xdb   :  { %1754 = vmatpush1.bf16.msra.mxu0 %v7177_v37  ;;  %1918 = vmatpush1.bf16.msra.mxu1 %v7180_v38  ;;  %v7280_v37 = vld [vmem:[%s10278_s2 + $0xcc] ss:$16 sps:$4 sm:$0xff]   ;;  %v7275_v38 = vld [vmem:[%s10278_s2 + $0xc0] ss:$16 sps:$4 sm:$0xff]  }
  0xdc   :  { %1755 = vmatprep.subr.bf16.mxu0 %v7185_v39  ;;  %1919 = vmatprep.subr.bf16.mxu1 %v7188_v40  ;;  %v7278_v39 = vld [vmem:[%s10278_s2 + $0xc8] ss:$16 sps:$4 sm:$0xff]   ;;  %v7283_v40 = vld [vmem:[%s10278_s2 + $0xe4] ss:$16 sps:$4 sm:$0xff]  }
  0xdf   :  { %1756 = vmatpush1.bf16.msra.mxu0 %v7183_v41  ;;  %1920 = vmatpush1.bf16.msra.mxu1 %v7186_v42  ;;  %v7286_v41 = vld [vmem:[%s10278_s2 + $0xec] ss:$16 sps:$4 sm:$0xff]   ;;  %v7281_v42 = vld [vmem:[%s10278_s2 + $0xe0] ss:$16 sps:$4 sm:$0xff]  }
  0xe0   :  { %1757 = vmatprep.subr.bf16.mxu0 %v7191_v43  ;;  %1921 = vmatprep.subr.bf16.mxu1 %v7194_v44  ;;  %v7284_v43 = vld [vmem:[%s10278_s2 + $0xe8] ss:$16 sps:$4 sm:$0xff]   ;;  %v7289_v44 = vld [vmem:[%s10278_s2 + $0x104] ss:$16 sps:$4 sm:$0xff]  }
  0xe3   :  { %1758 = vmatpush1.bf16.msra.mxu0 %v7189_v45  ;;  %1922 = vmatpush1.bf16.msra.mxu1 %v7192_v46  ;;  %v7292_v45 = vld [vmem:[%s10278_s2 + $0x10c] ss:$16 sps:$4 sm:$0xff]   ;;  %v7287_v46 = vld [vmem:[%s10278_s2 + $0x100] ss:$16 sps:$4 sm:$0xff]  }
  0xe4   :  { %1759 = vmatprep.subr.bf16.mxu0 %v7197_v47  ;;  %1923 = vmatprep.subr.bf16.mxu1 %v7200_v48  ;;  %v7290_v47 = vld [vmem:[%s10278_s2 + $0x108] ss:$16 sps:$4 sm:$0xff]   ;;  %v7295_v48 = vld [vmem:[%s10278_s2 + $0x124] ss:$16 sps:$4 sm:$0xff]  }
  0xe7   :  { %1760 = vmatpush1.bf16.msra.mxu0 %v7195_v49  ;;  %1924 = vmatpush1.bf16.msra.mxu1 %v7198_v50  ;;  %v7298_v49 = vld [vmem:[%s10278_s2 + $0x12c] ss:$16 sps:$4 sm:$0xff]   ;;  %v7293_v50 = vld [vmem:[%s10278_s2 + $0x120] ss:$16 sps:$4 sm:$0xff]  }
  0xe8   :  { %1761 = vmatprep.subr.bf16.mxu0 %v7203_v51  ;;  %1925 = vmatprep.subr.bf16.mxu1 %v7206_v52  ;;  %v7296_v51 = vld [vmem:[%s10278_s2 + $0x128] ss:$16 sps:$4 sm:$0xff]   ;;  %v7301_v52 = vld [vmem:[%s10278_s2 + $0x144] ss:$16 sps:$4 sm:$0xff]  }
  0xeb   :  { %1762 = vmatpush1.bf16.msra.mxu0 %v7201_v53  ;;  %1926 = vmatpush1.bf16.msra.mxu1 %v7204_v54  ;;  %v7304_v53 = vld [vmem:[%s10278_s2 + $0x14c] ss:$16 sps:$4 sm:$0xff]   ;;  %v7299_v54 = vld [vmem:[%s10278_s2 + $0x140] ss:$16 sps:$4 sm:$0xff]  }
  0xec   :  { %1763 = vmatprep.subr.bf16.mxu0 %v7209_v55  ;;  %1927 = vmatprep.subr.bf16.mxu1 %v7212_v56  ;;  %v7302_v55 = vld [vmem:[%s10278_s2 + $0x148] ss:$16 sps:$4 sm:$0xff]   ;;  %v7307_v56 = vld [vmem:[%s10278_s2 + $0x164] ss:$16 sps:$4 sm:$0xff]  }
  0xef   :  { %1764 = vmatpush1.bf16.msra.mxu0 %v7207_v57  ;;  %1928 = vmatpush1.bf16.msra.mxu1 %v7210_v58  ;;  %v7310_v57 = vld [vmem:[%s10278_s2 + $0x16c] ss:$16 sps:$4 sm:$0xff]   ;;  %v7305_v58 = vld [vmem:[%s10278_s2 + $0x160] ss:$16 sps:$4 sm:$0xff]  }
  0xf0   :  { %1765 = vmatprep.subr.bf16.mxu0 %v7215_v59  ;;  %1929 = vmatprep.subr.bf16.mxu1 %v7218_v60  ;;  %v7308_v59 = vld [vmem:[%s10278_s2 + $0x168] ss:$16 sps:$4 sm:$0xff]   ;;  %v7313_v60 = vld [vmem:[%s10278_s2 + $0x184] ss:$16 sps:$4 sm:$0xff]  }
  0xf3   :  { %1766 = vmatpush1.bf16.msra.mxu0 %v7213_v61  ;;  %1930 = vmatpush1.bf16.msra.mxu1 %v7216_v62  ;;  %v7316_v61 = vld [vmem:[%s10278_s2 + $0x18c] ss:$16 sps:$4 sm:$0xff]   ;;  %v7311_v62 = vld [vmem:[%s10278_s2 + $0x180] ss:$16 sps:$4 sm:$0xff]  }
  0xf4   :  { %1767 = vmatprep.subr.bf16.mxu0 %v7221_v63  ;;  %1931 = vmatprep.subr.bf16.mxu1 %v7224_v0  ;;  %v7314_v63 = vld [vmem:[%s10278_s2 + $0x188] ss:$16 sps:$4 sm:$0xff]   ;;  %v7319_v0 = vld [vmem:[%s10278_s2 + $0x1a4] ss:$16 sps:$4 sm:$0xff]  }
  0xf7   :  { %1768 = vmatpush1.bf16.msra.mxu0 %v7219_v1  ;;  %1932 = vmatpush1.bf16.msra.mxu1 %v7222_v2  ;;  %v7322_v1 = vld [vmem:[%s10278_s2 + $0x1ac] ss:$16 sps:$4 sm:$0xff]   ;;  %v7317_v2 = vld [vmem:[%s10278_s2 + $0x1a0] ss:$16 sps:$4 sm:$0xff]  }
  0xf8   :  { %1769 = vmatprep.subr.bf16.mxu0 %v7227_v3  ;;  %1933 = vmatprep.subr.bf16.mxu1 %v7230_v4  ;;  %v7320_v3 = vld [vmem:[%s10278_s2 + $0x1a8] ss:$16 sps:$4 sm:$0xff]   ;;  %v7325_v4 = vld [vmem:[%s10278_s2 + $0x1c4] ss:$16 sps:$4 sm:$0xff]  }
  0xfb   :  { %1770 = vmatpush1.bf16.msra.mxu0 %v7225_v5  ;;  %1934 = vmatpush1.bf16.msra.mxu1 %v7228_v6  ;;  %v7328_v5 = vld [vmem:[%s10278_s2 + $0x1cc] ss:$16 sps:$4 sm:$0xff]   ;;  %v7323_v6 = vld [vmem:[%s10278_s2 + $0x1c0] ss:$16 sps:$4 sm:$0xff]  }
  0xfc   :  { %1771 = vmatprep.subr.bf16.mxu0 %v7233_v7  ;;  %1935 = vmatprep.subr.bf16.mxu1 %v7236_v8  ;;  %v7326_v7 = vld [vmem:[%s10278_s2 + $0x1c8] ss:$16 sps:$4 sm:$0xff]   ;;  %v7331_v8 = vld [vmem:[%s10278_s2 + $0x1e4] ss:$16 sps:$4 sm:$0xff]  }
  0xff   :  { %1772 = vmatpush1.bf16.msra.mxu0 %v7231_v9  ;;  %1936 = vmatpush1.bf16.msra.mxu1 %v7234_v10  ;;  %v7334_v9 = vld [vmem:[%s10278_s2 + $0x1ec] ss:$16 sps:$4 sm:$0xff]   ;;  %v7329_v10 = vld [vmem:[%s10278_s2 + $0x1e0] ss:$16 sps:$4 sm:$0xff]  }
 0x100   :  { %2718 = vmatprep.subr.bf16.mxu0 %v7241_v12  ;;  %2800 = vmatprep.subr.bf16.mxu1 %v7244_v13  ;;  %v7332_v12 = vld [vmem:[%s10278_s2 + $0x1e8] ss:$16 sps:$4 sm:$0xff]   ;;  %v7337_v13 = vld [vmem:[%s10278_s2 + $0x204] ss:$16 sps:$4 sm:$0xff]  }
 0x102   :  { %1774 = vmatmul.mubr.bf16.vlgmr.msra.gmra.mrb[0].mxu0 %v5786_v16  ;;  %1938 = vmatmul.mubr.bf16.vlgmr.msra.gmra.mrb[0].mxu1 %v5786_v16 }
 0x103   :  { %2719 = vmatpush1.bf16.msra.mxu0 %v7239_v15  ;;  %2801 = vmatpush1.bf16.msra.mxu1 %v7242_v11  ;;  %v7340_v15 = vld [vmem:[%s10278_s2 + $0x20c] ss:$16 sps:$4 sm:$0xff]   ;;  %v294_v11 = vlaneseq }
 0x104   :  { %2720 = vmatprep.subr.bf16.mxu0 %v7247_v17  ;;  %2802 = vmatprep.subr.bf16.mxu1 %v7250_v18  ;;  %v8980_v18 = vld [vmem:[%s10279_s5] sm:$0x3f] }
 0x105   :  { %v8972_v16 = vshrl.u32 %v294_v11, 7  ;;  %v7398_v11 = vld [vmem:[%s10278_s2 + $0x348] ss:$16 sps:$4 sm:$0xff]  }
 0x107   :  { %2721 = vmatpush1.bf16.msra.mxu0 %v7245_v19  ;;  %2803 = vmatpush1.bf16.msra.mxu1 %v7248_v14  ;;  %v8975_v17 = vsub.s32 0, %v8972_v16  ;;  %v8985_v19 = vld [vmem:[%s10279_s5 + $0x8] sm:$0x3f]  ;;  %v8990_v14 = vld [vmem:[%s10279_s5 + $0x18] sm:$0x3f]  ;;  %vm2884_vm0 = vcmp.lt.s32.totalorder %v8972_v16, 2 }
 0x108   :  { %2722 = vmatprep.subr.bf16.mxu0 %v7253_v20  ;;  %2804 = vmatprep.subr.bf16.mxu1 %v7256_v21 }
 0x109   :  { %v297_v20 = vrot.slane %v8980_v18, %v8975_v17  ;;  %v301_v21 = vrot.slane %v8985_v19, %v8975_v17 }
 0x10b   :  { %2723 = vmatpush1.bf16.msra.mxu0 %v7251_v22  ;;  %2805 = vmatpush1.bf16.msra.mxu1 %v7254_v23  ;;  %v309_v22 = vrot.slane %v8990_v14, %v8975_v17 }
 0x10c   :  { %2724 = vmatprep.subr.bf16.mxu0 %v7259_v24  ;;  %2806 = vmatprep.subr.bf16.mxu1 %v7262_v25 }
 0x10f   :  { %2725 = vmatpush1.bf16.msra.mxu0 %v7257_v26  ;;  %2807 = vmatpush1.bf16.msra.mxu1 %v7260_v27 }
 0x110   :  { %2726 = vmatprep.subr.bf16.mxu0 %v7265_v28  ;;  %2808 = vmatprep.subr.bf16.mxu1 %v7268_v29 }
 0x113   :  { %2727 = vmatpush1.bf16.msra.mxu0 %v7263_v30  ;;  %2809 = vmatpush1.bf16.msra.mxu1 %v7266_v31 }
 0x114   :  { %2728 = vmatprep.subr.bf16.mxu0 %v7271_v32  ;;  %2810 = vmatprep.subr.bf16.mxu1 %v7274_v33 }
 0x117   :  { %2729 = vmatpush1.bf16.msra.mxu0 %v7269_v34  ;;  %2811 = vmatpush1.bf16.msra.mxu1 %v7272_v35  ;;  %v7335_v35 = vld [vmem:[%s10278_s2 + $0x200] ss:$16 sps:$4 sm:$0xff]  }
 0x118   :  { %2730 = vmatprep.subr.bf16.mxu0 %v7277_v36  ;;  %2812 = vmatprep.subr.bf16.mxu1 %v7280_v37  ;;  %v7338_v36 = vld [vmem:[%s10278_s2 + $0x208] ss:$16 sps:$4 sm:$0xff]  }
 0x11b   :  { %2731 = vmatpush1.bf16.msra.mxu0 %v7275_v38  ;;  %2813 = vmatpush1.bf16.msra.mxu1 %v7278_v39  ;;  %v7343_v38 = vld [vmem:[%s10278_s2 + $0x224] ss:$16 sps:$4 sm:$0xff]   ;;  %v7346_v39 = vld [vmem:[%s10278_s2 + $0x22c] ss:$16 sps:$4 sm:$0xff]  }
 0x11c   :  { %2732 = vmatprep.subr.bf16.mxu0 %v7283_v40  ;;  %2814 = vmatprep.subr.bf16.mxu1 %v7286_v41  ;;  %v7341_v41 = vld [vmem:[%s10278_s2 + $0x220] ss:$16 sps:$4 sm:$0xff]  }
 0x11f   :  { %2733 = vmatpush1.bf16.msra.mxu0 %v7281_v42  ;;  %2815 = vmatpush1.bf16.msra.mxu1 %v7284_v43  ;;  %v7344_v42 = vld [vmem:[%s10278_s2 + $0x228] ss:$16 sps:$4 sm:$0xff]   ;;  %v7349_v43 = vld [vmem:[%s10278_s2 + $0x244] ss:$16 sps:$4 sm:$0xff]  }
 0x120   :  { %2734 = vmatprep.subr.bf16.mxu0 %v7289_v44  ;;  %2816 = vmatprep.subr.bf16.mxu1 %v7292_v45  ;;  %v7352_v44 = vld [vmem:[%s10278_s2 + $0x24c] ss:$16 sps:$4 sm:$0xff]   ;;  %v7347_v45 = vld [vmem:[%s10278_s2 + $0x240] ss:$16 sps:$4 sm:$0xff]  }
 0x123   :  { %2735 = vmatpush1.bf16.msra.mxu0 %v7287_v46  ;;  %2817 = vmatpush1.bf16.msra.mxu1 %v7290_v47  ;;  %v7350_v46 = vld [vmem:[%s10278_s2 + $0x248] ss:$16 sps:$4 sm:$0xff]   ;;  %v7355_v47 = vld [vmem:[%s10278_s2 + $0x264] ss:$16 sps:$4 sm:$0xff]  }
 0x124   :  { %2736 = vmatprep.subr.bf16.mxu0 %v7295_v48  ;;  %2818 = vmatprep.subr.bf16.mxu1 %v7298_v49  ;;  %v7358_v48 = vld [vmem:[%s10278_s2 + $0x26c] ss:$16 sps:$4 sm:$0xff]   ;;  %v7353_v49 = vld [vmem:[%s10278_s2 + $0x260] ss:$16 sps:$4 sm:$0xff]  }
 0x127   :  { %2737 = vmatpush1.bf16.msra.mxu0 %v7293_v50  ;;  %2819 = vmatpush1.bf16.msra.mxu1 %v7296_v51  ;;  %v7356_v50 = vld [vmem:[%s10278_s2 + $0x268] ss:$16 sps:$4 sm:$0xff]   ;;  %v7361_v51 = vld [vmem:[%s10278_s2 + $0x284] ss:$16 sps:$4 sm:$0xff]  }
 0x128   :  { %2738 = vmatprep.subr.bf16.mxu0 %v7301_v52  ;;  %2820 = vmatprep.subr.bf16.mxu1 %v7304_v53  ;;  %v7364_v52 = vld [vmem:[%s10278_s2 + $0x28c] ss:$16 sps:$4 sm:$0xff]   ;;  %v7359_v53 = vld [vmem:[%s10278_s2 + $0x280] ss:$16 sps:$4 sm:$0xff]  }
 0x12b   :  { %2739 = vmatpush1.bf16.msra.mxu0 %v7299_v54  ;;  %2821 = vmatpush1.bf16.msra.mxu1 %v7302_v55  ;;  %v7362_v54 = vld [vmem:[%s10278_s2 + $0x288] ss:$16 sps:$4 sm:$0xff]   ;;  %v7367_v55 = vld [vmem:[%s10278_s2 + $0x2a4] ss:$16 sps:$4 sm:$0xff]  }
 0x12c   :  { %2740 = vmatprep.subr.bf16.mxu0 %v7307_v56  ;;  %2822 = vmatprep.subr.bf16.mxu1 %v7310_v57  ;;  %v7370_v56 = vld [vmem:[%s10278_s2 + $0x2ac] ss:$16 sps:$4 sm:$0xff]   ;;  %v7365_v57 = vld [vmem:[%s10278_s2 + $0x2a0] ss:$16 sps:$4 sm:$0xff]  }
 0x12f   :  { %2741 = vmatpush1.bf16.msra.mxu0 %v7305_v58  ;;  %2823 = vmatpush1.bf16.msra.mxu1 %v7308_v59  ;;  %v7368_v58 = vld [vmem:[%s10278_s2 + $0x2a8] ss:$16 sps:$4 sm:$0xff]   ;;  %v7373_v59 = vld [vmem:[%s10278_s2 + $0x2c4] ss:$16 sps:$4 sm:$0xff]  }
 0x130   :  { %2742 = vmatprep.subr.bf16.mxu0 %v7313_v60  ;;  %2824 = vmatprep.subr.bf16.mxu1 %v7316_v61  ;;  %v7376_v60 = vld [vmem:[%s10278_s2 + $0x2cc] ss:$16 sps:$4 sm:$0xff]   ;;  %v7371_v61 = vld [vmem:[%s10278_s2 + $0x2c0] ss:$16 sps:$4 sm:$0xff]  }
 0x133   :  { %2743 = vmatpush1.bf16.msra.mxu0 %v7311_v62  ;;  %2825 = vmatpush1.bf16.msra.mxu1 %v7314_v63  ;;  %v7374_v62 = vld [vmem:[%s10278_s2 + $0x2c8] ss:$16 sps:$4 sm:$0xff]   ;;  %v7379_v63 = vld [vmem:[%s10278_s2 + $0x2e4] ss:$16 sps:$4 sm:$0xff]  }
 0x134   :  { %2744 = vmatprep.subr.bf16.mxu0 %v7319_v0  ;;  %2826 = vmatprep.subr.bf16.mxu1 %v7322_v1  ;;  %v7382_v0 = vld [vmem:[%s10278_s2 + $0x2ec] ss:$16 sps:$4 sm:$0xff]   ;;  %v7377_v1 = vld [vmem:[%s10278_s2 + $0x2e0] ss:$16 sps:$4 sm:$0xff]  }
 0x137   :  { %2745 = vmatpush1.bf16.msra.mxu0 %v7317_v2  ;;  %2827 = vmatpush1.bf16.msra.mxu1 %v7320_v3  ;;  %v7380_v2 = vld [vmem:[%s10278_s2 + $0x2e8] ss:$16 sps:$4 sm:$0xff]   ;;  %v7385_v3 = vld [vmem:[%s10278_s2 + $0x304] ss:$16 sps:$4 sm:$0xff]  }
 0x138   :  { %2746 = vmatprep.subr.bf16.mxu0 %v7325_v4  ;;  %2828 = vmatprep.subr.bf16.mxu1 %v7328_v5  ;;  %v7388_v4 = vld [vmem:[%s10278_s2 + $0x30c] ss:$16 sps:$4 sm:$0xff]   ;;  %v7383_v5 = vld [vmem:[%s10278_s2 + $0x300] ss:$16 sps:$4 sm:$0xff]  }
 0x13b   :  { %2747 = vmatpush1.bf16.msra.mxu0 %v7323_v6  ;;  %2829 = vmatpush1.bf16.msra.mxu1 %v7326_v7  ;;  %v7386_v6 = vld [vmem:[%s10278_s2 + $0x308] ss:$16 sps:$4 sm:$0xff]   ;;  %v7391_v7 = vld [vmem:[%s10278_s2 + $0x324] ss:$16 sps:$4 sm:$0xff]  }
 0x13c   :  { %2748 = vmatprep.subr.bf16.mxu0 %v7331_v8  ;;  %2830 = vmatprep.subr.bf16.mxu1 %v7334_v9  ;;  %v7394_v8 = vld [vmem:[%s10278_s2 + $0x32c] ss:$16 sps:$4 sm:$0xff]   ;;  %v7389_v9 = vld [vmem:[%s10278_s2 + $0x320] ss:$16 sps:$4 sm:$0xff]  }
 0x13f   :  { %2749 = vmatpush1.bf16.msra.mxu0 %v7329_v10  ;;  %2831 = vmatpush1.bf16.msra.mxu1 %v7332_v12  ;;  %v7392_v10 = vld [vmem:[%s10278_s2 + $0x328] ss:$16 sps:$4 sm:$0xff]   ;;  %v7397_v12 = vld [vmem:[%s10278_s2 + $0x344] ss:$16 sps:$4 sm:$0xff]  }
 0x140   :  { %2759 = vmatprep.subr.bf16.mxu0 %v7337_v13  ;;  %2841 = vmatprep.subr.bf16.mxu1 %v7340_v15  ;;  %v7400_v13 = vld [vmem:[%s10278_s2 + $0x34c] ss:$16 sps:$4 sm:$0xff]   ;;  %v7395_v15 = vld [vmem:[%s10278_s2 + $0x340] ss:$16 sps:$4 sm:$0xff]  }
 0x1d5   :  { %v1775_v23 = vpop.f32.mrb[0].mxu0  ;;  %v8998_v24 = vpop.f32.mrb[0].mxu1 }
 0x1d6   :  { %v6793_v25 = vadd.f32 %v1775_v23, %v297_v20  ;;  %v1777_v26 = vpop.f32.mrb[1].mxu0  ;;  %v1941_v27 = vpop.f32.mrb[1].mxu1  ;;  %v7403_v20 = vld [vmem:[%s10278_s2 + $0x364] ss:$16 sps:$4 sm:$0xff]   ;;  %v7404_v23 = vld [vmem:[%s10278_s2 + $0x368] ss:$16 sps:$4 sm:$0xff]  }
 0x1d7   :  { %v6794_v28 = vadd.f32 %v1777_v26, %v301_v21  ;;  %v1779_v29 = vpop.f32.mrb[2].mxu0  ;;  %v1943_v30 = vpop.f32.mrb[2].mxu1  ;;  %v6796_v31 = vadd.f32 %v1941_v27, %v309_v22  ;;  %v7406_v21 = vld [vmem:[%s10278_s2 + $0x36c] ss:$16 sps:$4 sm:$0xff]   ;;  %v7401_v22 = vld [vmem:[%s10278_s2 + $0x360] ss:$16 sps:$4 sm:$0xff]  }
 0x1d8   :  { %v1780_v32 = vpop.f32.mrb[3].mxu0  ;;  %v1944_v33 = vpop.f32.mrb[3].mxu1  ;;  %v2074_v37 = vpack.c.bf16 %v6793_v25, %v6793_v25  ;;  %v7409_v25 = vld [vmem:[%s10278_s2 + $0x384] ss:$16 sps:$4 sm:$0xff]   ;;  %v7412_v26 = vld [vmem:[%s10278_s2 + $0x38c] ss:$16 sps:$4 sm:$0xff]  }
 0x1d9   :  { %v2075_v34 = vpack.c.bf16 %v6794_v28, %v6794_v28  ;;  %v2077_v40 = vpack.c.bf16 %v6796_v31, %v6796_v31  ;;  %v7407_v27 = vld [vmem:[%s10278_s2 + $0x380] ss:$16 sps:$4 sm:$0xff]   ;;  %v7410_v28 = vld [vmem:[%s10278_s2 + $0x388] ss:$16 sps:$4 sm:$0xff]   ;;  %v7415_v29 = vld [vmem:[%s10278_s2 + $0x3a4] ss:$16 sps:$4 sm:$0xff]  }
 0x1da   :  { %v7418_v30 = vld [vmem:[%s10278_s2 + $0x3ac] ss:$16 sps:$4 sm:$0xff]   ;;  %v7413_v31 = vld [vmem:[%s10278_s2 + $0x3a0] ss:$16 sps:$4 sm:$0xff]   ;;  %v7416_v32 = vld [vmem:[%s10278_s2 + $0x3a8] ss:$16 sps:$4 sm:$0xff]  }
 0x1db   :  { %2750 = vmatprep.mubr.bf16.mxu0 %v2075_v34  ;;  %2832 = vmatprep.mubr.bf16.mxu1 %v2075_v34  ;;  %v7421_v33 = vld [vmem:[%s10278_s2 + $0x3c4] ss:$16 sps:$4 sm:$0xff]   ;;  %v7424_v34 = vld [vmem:[%s10278_s2 + $0x3cc] ss:$16 sps:$4 sm:$0xff]  }
 0x1dc   :  { %2751 = vmatmul.mubr.bf16.vlgmr.msra.gmra.mrb[4].mxu0 %v2074_v37  ;;  %2833 = vmatmul.mubr.bf16.vlgmr.msra.gmra.mrb[4].mxu1 %v2074_v37  ;;  %v7422_v37 = vld [vmem:[%s10278_s2 + $0x3c8] ss:$16 sps:$4 sm:$0xff]  }
 0x1dd   :  { %2760 = vmatpush1.bf16.msra.mxu0 %v7335_v35  ;;  %2842 = vmatpush1.bf16.msra.mxu1 %v7338_v36  ;;  %v9171_v35 = vld [vmem:[%s10279_s5 + $0x10] sm:$0x3f] }
 0x1de   :  { %2791 = vmatprep.mubr.bf16.mxu0 %v2077_v40  ;;  %2873 = vmatprep.mubr.bf16.mxu1 %v2077_v40  ;;  %v7419_v36 = vld [vmem:[%s10278_s2 + $0x3c0] ss:$16 sps:$4 sm:$0xff]   ;;  %v7430_v40 = vld [vmem:[%s10278_s2 + $0x3ec] ss:$16 sps:$4 sm:$0xff]  }
 0x1df   :  { %2761 = vmatprep.subr.bf16.mxu0 %v7343_v38  ;;  %2843 = vmatprep.subr.bf16.mxu1 %v7346_v39  ;;  %v305_v38 = vrot.slane %v9171_v35, %v8975_v17  ;;  %v7427_v39 = vld [vmem:[%s10278_s2 + $0x3e4] ss:$16 sps:$4 sm:$0xff]  }
 0x1e1   :  { %2762 = vmatpush1.bf16.msra.mxu0 %v7341_v41  ;;  %2844 = vmatpush1.bf16.msra.mxu1 %v7344_v42  ;;  %v7425_v41 = vld [vmem:[%s10278_s2 + $0x3e0] ss:$16 sps:$4 sm:$0xff]   ;;  %v7428_v42 = vld [vmem:[%s10278_s2 + $0x3e8] ss:$16 sps:$4 sm:$0xff]  }
 0x1e2   :  { %2763 = vmatprep.subr.bf16.mxu0 %v7349_v43  ;;  %2845 = vmatprep.subr.bf16.mxu1 %v7352_v44  ;;  %v6795_v43 = vadd.f32 %v8998_v24, %v305_v38  ;;  %v7433_v44 = vld [vmem:[%s10278_s2 + $0x404] ss:$16 sps:$4 sm:$0xff]   ;;  %v7434_v24 = vld [vmem:[%s10278_s2 + $0x408] ss:$16 sps:$4 sm:$0xff]  }
 0x1e3   :  { %v7506_v38 = vld [vmem:[%s10278_s2 + $0x588] ss:$16 sps:$4 sm:$0xff]  }
 0x1e5   :  { %2764 = vmatpush1.bf16.msra.mxu0 %v7347_v45  ;;  %2846 = vmatpush1.bf16.msra.mxu1 %v7350_v46  ;;  %v7436_v45 = vld [vmem:[%s10278_s2 + $0x40c] ss:$16 sps:$4 sm:$0xff]   ;;  %v7431_v46 = vld [vmem:[%s10278_s2 + $0x400] ss:$16 sps:$4 sm:$0xff]  }
 0x1e6   :  { %2765 = vmatprep.subr.bf16.mxu0 %v7355_v47  ;;  %2847 = vmatprep.subr.bf16.mxu1 %v7358_v48  ;;  %v2076_v47 = vpack.c.bf16 %v6795_v43, %v6795_v43  ;;  %v7439_v48 = vld [vmem:[%s10278_s2 + $0x424] ss:$16 sps:$4 sm:$0xff]  }
 0x1e7   :  { %v7517_v43 = vld [vmem:[%s10278_s2 + $0x5c4] ss:$16 sps:$4 sm:$0xff]  }
 0x1e9   :  { %2766 = vmatpush1.bf16.msra.mxu0 %v7353_v49  ;;  %2848 = vmatpush1.bf16.msra.mxu1 %v7356_v50  ;;  %v7442_v49 = vld [vmem:[%s10278_s2 + $0x42c] ss:$16 sps:$4 sm:$0xff]   ;;  %v7437_v50 = vld [vmem:[%s10278_s2 + $0x420] ss:$16 sps:$4 sm:$0xff]  }
 0x1ea   :  { %2767 = vmatprep.subr.bf16.mxu0 %v7361_v51  ;;  %2849 = vmatprep.subr.bf16.mxu1 %v7364_v52  ;;  %v7440_v51 = vld [vmem:[%s10278_s2 + $0x428] ss:$16 sps:$4 sm:$0xff]   ;;  %v7445_v52 = vld [vmem:[%s10278_s2 + $0x444] ss:$16 sps:$4 sm:$0xff]  }
 0x1ed   :  { %2768 = vmatpush1.bf16.msra.mxu0 %v7359_v53  ;;  %2850 = vmatpush1.bf16.msra.mxu1 %v7362_v54  ;;  %v7448_v53 = vld [vmem:[%s10278_s2 + $0x44c] ss:$16 sps:$4 sm:$0xff]   ;;  %v7443_v54 = vld [vmem:[%s10278_s2 + $0x440] ss:$16 sps:$4 sm:$0xff]  }
 0x1ee   :  { %2769 = vmatprep.subr.bf16.mxu0 %v7367_v55  ;;  %2851 = vmatprep.subr.bf16.mxu1 %v7370_v56  ;;  %v7446_v55 = vld [vmem:[%s10278_s2 + $0x448] ss:$16 sps:$4 sm:$0xff]   ;;  %v7451_v56 = vld [vmem:[%s10278_s2 + $0x464] ss:$16 sps:$4 sm:$0xff]  }
 0x1f1   :  { %2770 = vmatpush1.bf16.msra.mxu0 %v7365_v57  ;;  %2852 = vmatpush1.bf16.msra.mxu1 %v7368_v58  ;;  %v7454_v57 = vld [vmem:[%s10278_s2 + $0x46c] ss:$16 sps:$4 sm:$0xff]   ;;  %v7449_v58 = vld [vmem:[%s10278_s2 + $0x460] ss:$16 sps:$4 sm:$0xff]  }
 0x1f2   :  { %2771 = vmatprep.subr.bf16.mxu0 %v7373_v59  ;;  %2853 = vmatprep.subr.bf16.mxu1 %v7376_v60  ;;  %v7452_v59 = vld [vmem:[%s10278_s2 + $0x468] ss:$16 sps:$4 sm:$0xff]   ;;  %v7457_v60 = vld [vmem:[%s10278_s2 + $0x484] ss:$16 sps:$4 sm:$0xff]  }
 0x1f5   :  { %2772 = vmatpush1.bf16.msra.mxu0 %v7371_v61  ;;  %2854 = vmatpush1.bf16.msra.mxu1 %v7374_v62  ;;  %v7460_v61 = vld [vmem:[%s10278_s2 + $0x48c] ss:$16 sps:$4 sm:$0xff]   ;;  %v7455_v62 = vld [vmem:[%s10278_s2 + $0x480] ss:$16 sps:$4 sm:$0xff]  }
 0x1f6   :  { %2773 = vmatprep.subr.bf16.mxu0 %v7379_v63  ;;  %2855 = vmatprep.subr.bf16.mxu1 %v7382_v0  ;;  %v7458_v63 = vld [vmem:[%s10278_s2 + $0x488] ss:$16 sps:$4 sm:$0xff]   ;;  %v7463_v0 = vld [vmem:[%s10278_s2 + $0x4a4] ss:$16 sps:$4 sm:$0xff]  }
 0x1f9   :  { %2774 = vmatpush1.bf16.msra.mxu0 %v7377_v1  ;;  %2856 = vmatpush1.bf16.msra.mxu1 %v7380_v2  ;;  %v7466_v1 = vld [vmem:[%s10278_s2 + $0x4ac] ss:$16 sps:$4 sm:$0xff]   ;;  %v7461_v2 = vld [vmem:[%s10278_s2 + $0x4a0] ss:$16 sps:$4 sm:$0xff]  }
 0x1fa   :  { %2775 = vmatprep.subr.bf16.mxu0 %v7385_v3  ;;  %2857 = vmatprep.subr.bf16.mxu1 %v7388_v4  ;;  %v7464_v3 = vld [vmem:[%s10278_s2 + $0x4a8] ss:$16 sps:$4 sm:$0xff]   ;;  %v7469_v4 = vld [vmem:[%s10278_s2 + $0x4c4] ss:$16 sps:$4 sm:$0xff]  }
 0x1fd   :  { %2776 = vmatpush1.bf16.msra.mxu0 %v7383_v5  ;;  %2858 = vmatpush1.bf16.msra.mxu1 %v7386_v6  ;;  %v7472_v5 = vld [vmem:[%s10278_s2 + $0x4cc] ss:$16 sps:$4 sm:$0xff]   ;;  %v7467_v6 = vld [vmem:[%s10278_s2 + $0x4c0] ss:$16 sps:$4 sm:$0xff]  }
 0x1fe   :  { %2777 = vmatprep.subr.bf16.mxu0 %v7391_v7  ;;  %2859 = vmatprep.subr.bf16.mxu1 %v7394_v8  ;;  %v7470_v7 = vld [vmem:[%s10278_s2 + $0x4c8] ss:$16 sps:$4 sm:$0xff]   ;;  %v7475_v8 = vld [vmem:[%s10278_s2 + $0x4e4] ss:$16 sps:$4 sm:$0xff]  }
 0x201   :  { %2778 = vmatpush1.bf16.msra.mxu0 %v7389_v9  ;;  %2860 = vmatpush1.bf16.msra.mxu1 %v7392_v10  ;;  %v7478_v9 = vld [vmem:[%s10278_s2 + $0x4ec] ss:$16 sps:$4 sm:$0xff]   ;;  %v7473_v10 = vld [vmem:[%s10278_s2 + $0x4e0] ss:$16 sps:$4 sm:$0xff]  }
 0x202   :  { %2779 = vmatprep.subr.bf16.mxu0 %v7397_v12  ;;  %2861 = vmatprep.subr.bf16.mxu1 %v7400_v13  ;;  %v7476_v12 = vld [vmem:[%s10278_s2 + $0x4e8] ss:$16 sps:$4 sm:$0xff]   ;;  %v7481_v13 = vld [vmem:[%s10278_s2 + $0x504] ss:$16 sps:$4 sm:$0xff]  }
 0x205   :  { %2780 = vmatpush1.bf16.msra.mxu0 %v7395_v15  ;;  %2862 = vmatpush1.bf16.msra.mxu1 %v7398_v11  ;;  %v7484_v15 = vld [vmem:[%s10278_s2 + $0x50c] ss:$16 sps:$4 sm:$0xff]   ;;  %v7479_v11 = vld [vmem:[%s10278_s2 + $0x500] ss:$16 sps:$4 sm:$0xff]  }
 0x206   :  { %2781 = vmatprep.subr.bf16.mxu0 %v7403_v20  ;;  %2863 = vmatprep.subr.bf16.mxu1 %v7406_v21  ;;  %v7482_v20 = vld [vmem:[%s10278_s2 + $0x508] ss:$16 sps:$4 sm:$0xff]   ;;  %v7487_v21 = vld [vmem:[%s10278_s2 + $0x524] ss:$16 sps:$4 sm:$0xff]  }
 0x209   :  { %2782 = vmatpush1.bf16.msra.mxu0 %v7401_v22  ;;  %2864 = vmatpush1.bf16.msra.mxu1 %v7404_v23  ;;  %v7490_v22 = vld [vmem:[%s10278_s2 + $0x52c] ss:$16 sps:$4 sm:$0xff]   ;;  %v7485_v23 = vld [vmem:[%s10278_s2 + $0x520] ss:$16 sps:$4 sm:$0xff]  }
 0x20a   :  { %2783 = vmatprep.subr.bf16.mxu0 %v7409_v25  ;;  %2865 = vmatprep.subr.bf16.mxu1 %v7412_v26  ;;  %v7488_v25 = vld [vmem:[%s10278_s2 + $0x528] ss:$16 sps:$4 sm:$0xff]   ;;  %v7493_v26 = vld [vmem:[%s10278_s2 + $0x544] ss:$16 sps:$4 sm:$0xff]  }
 0x20d   :  { %2784 = vmatpush1.bf16.msra.mxu0 %v7407_v27  ;;  %2866 = vmatpush1.bf16.msra.mxu1 %v7410_v28  ;;  %v7496_v27 = vld [vmem:[%s10278_s2 + $0x54c] ss:$16 sps:$4 sm:$0xff]   ;;  %v7491_v28 = vld [vmem:[%s10278_s2 + $0x540] ss:$16 sps:$4 sm:$0xff]  }
 0x20e   :  { %2785 = vmatprep.subr.bf16.mxu0 %v7415_v29  ;;  %2867 = vmatprep.subr.bf16.mxu1 %v7418_v30  ;;  %v7494_v29 = vld [vmem:[%s10278_s2 + $0x548] ss:$16 sps:$4 sm:$0xff]   ;;  %v7499_v30 = vld [vmem:[%s10278_s2 + $0x564] ss:$16 sps:$4 sm:$0xff]  }
 0x211   :  { %2786 = vmatpush1.bf16.msra.mxu0 %v7413_v31  ;;  %2868 = vmatpush1.bf16.msra.mxu1 %v7416_v32  ;;  %v7502_v31 = vld [vmem:[%s10278_s2 + $0x56c] ss:$16 sps:$4 sm:$0xff]   ;;  %v7497_v32 = vld [vmem:[%s10278_s2 + $0x560] ss:$16 sps:$4 sm:$0xff]  }
 0x212   :  { %2787 = vmatprep.subr.bf16.mxu0 %v7421_v33  ;;  %2869 = vmatprep.subr.bf16.mxu1 %v7424_v34  ;;  %v7500_v33 = vld [vmem:[%s10278_s2 + $0x568] ss:$16 sps:$4 sm:$0xff]   ;;  %v7505_v34 = vld [vmem:[%s10278_s2 + $0x584] ss:$16 sps:$4 sm:$0xff]  }
 0x215   :  { %2788 = vmatpush1.bf16.msra.mxu0 %v7419_v36  ;;  %2870 = vmatpush1.bf16.msra.mxu1 %v7422_v37  ;;  %v7508_v36 = vld [vmem:[%s10278_s2 + $0x58c] ss:$16 sps:$4 sm:$0xff]   ;;  %v7503_v37 = vld [vmem:[%s10278_s2 + $0x580] ss:$16 sps:$4 sm:$0xff]  }
 0x216   :  { %2789 = vmatprep.subr.bf16.mxu0 %v7427_v39  ;;  %2871 = vmatprep.subr.bf16.mxu1 %v7430_v40  ;;  %v7511_v39 = vld [vmem:[%s10278_s2 + $0x5a4] ss:$16 sps:$4 sm:$0xff]   ;;  %v7514_v40 = vld [vmem:[%s10278_s2 + $0x5ac] ss:$16 sps:$4 sm:$0xff]  }
 0x219   :  { %2790 = vmatpush1.bf16.msra.mxu0 %v7425_v41  ;;  %2872 = vmatpush1.bf16.msra.mxu1 %v7428_v42  ;;  %v7509_v41 = vld [vmem:[%s10278_s2 + $0x5a0] ss:$16 sps:$4 sm:$0xff]   ;;  %v7512_v42 = vld [vmem:[%s10278_s2 + $0x5a8] ss:$16 sps:$4 sm:$0xff]  }
 0x21a   :  { %3788 = vmatprep.subr.bf16.mxu0 %v7433_v44  ;;  %3870 = vmatprep.subr.bf16.mxu1 %v7436_v45  ;;  %v7520_v44 = vld [vmem:[%s10278_s2 + $0x5cc] ss:$16 sps:$4 sm:$0xff]   ;;  %v7515_v45 = vld [vmem:[%s10278_s2 + $0x5c0] ss:$16 sps:$4 sm:$0xff]  }
 0x21c   :  { %2792 = vmatmul.mubr.bf16.vlgmr.msra.gmra.mrb[4].mxu0 %v2076_v47  ;;  %2874 = vmatmul.mubr.bf16.vlgmr.msra.gmra.mrb[4].mxu1 %v2076_v47  ;;  %v7521_v47 = vld [vmem:[%s10278_s2 + $0x5e0] ss:$16 sps:$4 sm:$0xff]  }
 0x21d   :  { %3789 = vmatpush1.bf16.msra.mxu0 %v7431_v46  ;;  %3871 = vmatpush1.bf16.msra.mxu1 %v7434_v24  ;;  %v7518_v46 = vld [vmem:[%s10278_s2 + $0x5c8] ss:$16 sps:$4 sm:$0xff]   ;;  %v7523_v24 = vld [vmem:[%s10278_s2 + $0x5e4] ss:$16 sps:$4 sm:$0xff]  }
 0x21e   :  { %3790 = vmatprep.subr.bf16.mxu0 %v7439_v48  ;;  %3872 = vmatprep.subr.bf16.mxu1 %v7442_v49  ;;  %v7524_v48 = vld [vmem:[%s10278_s2 + $0x5e8] ss:$16 sps:$4 sm:$0xff]   ;;  %v7526_v49 = vld [vmem:[%s10278_s2 + $0x5ec] ss:$16 sps:$4 sm:$0xff]  }
 0x221   :  { %3791 = vmatpush1.bf16.msra.mxu0 %v7437_v50  ;;  %3873 = vmatpush1.bf16.msra.mxu1 %v7440_v51  ;;  %v7529_v50 = vld [vmem:[%s10278_s2 + $0x604] ss:$16 sps:$4 sm:$0xff]   ;;  %v7532_v51 = vld [vmem:[%s10278_s2 + $0x60c] ss:$16 sps:$4 sm:$0xff]  }
 0x222   :  { %3792 = vmatprep.subr.bf16.mxu0 %v7445_v52  ;;  %3874 = vmatprep.subr.bf16.mxu1 %v7448_v53  ;;  %v7929_v52 = vmov 0.0  }
 0x223   :  { %v9393_v53 = vsel %vm2884_vm0, 1.0, %v7929_v52 }
 0x225   :  { %3793 = vmatpush1.bf16.msra.mxu0 %v7443_v54  ;;  %3875 = vmatpush1.bf16.msra.mxu1 %v7446_v55 }
 0x226   :  { %3794 = vmatprep.subr.bf16.mxu0 %v7451_v56  ;;  %3876 = vmatprep.subr.bf16.mxu1 %v7454_v57 }
 0x229   :  { %3795 = vmatpush1.bf16.msra.mxu0 %v7449_v58  ;;  %3877 = vmatpush1.bf16.msra.mxu1 %v7452_v59 }
 0x22a   :  { %3796 = vmatprep.subr.bf16.mxu0 %v7457_v60  ;;  %3878 = vmatprep.subr.bf16.mxu1 %v7460_v61 }
 0x22d   :  { %3797 = vmatpush1.bf16.msra.mxu0 %v7455_v62  ;;  %3879 = vmatpush1.bf16.msra.mxu1 %v7458_v63 }
 0x22e   :  { %3798 = vmatprep.subr.bf16.mxu0 %v7463_v0  ;;  %3880 = vmatprep.subr.bf16.mxu1 %v7466_v1 }
 0x231   :  { %3799 = vmatpush1.bf16.msra.mxu0 %v7461_v2  ;;  %3881 = vmatpush1.bf16.msra.mxu1 %v7464_v3 }
 0x232   :  { %3800 = vmatprep.subr.bf16.mxu0 %v7469_v4  ;;  %3882 = vmatprep.subr.bf16.mxu1 %v7472_v5 }
 0x235   :  { %3801 = vmatpush1.bf16.msra.mxu0 %v7467_v6  ;;  %3883 = vmatpush1.bf16.msra.mxu1 %v7470_v7 }
 0x236   :  { %3802 = vmatprep.subr.bf16.mxu0 %v7475_v8  ;;  %3884 = vmatprep.subr.bf16.mxu1 %v7478_v9 }
 0x239   :  { %3803 = vmatpush1.bf16.msra.mxu0 %v7473_v10  ;;  %3885 = vmatpush1.bf16.msra.mxu1 %v7476_v12 }
 0x23a   :  { %3804 = vmatprep.subr.bf16.mxu0 %v7481_v13  ;;  %3886 = vmatprep.subr.bf16.mxu1 %v7484_v15 }
 0x23d   :  { %3805 = vmatpush1.bf16.msra.mxu0 %v7479_v11  ;;  %3887 = vmatpush1.bf16.msra.mxu1 %v7482_v20 }
 0x23e   :  { %3806 = vmatprep.subr.bf16.mxu0 %v7487_v21  ;;  %3888 = vmatprep.subr.bf16.mxu1 %v7490_v22 }
 0x241   :  { %3807 = vmatpush1.bf16.msra.mxu0 %v7485_v23  ;;  %3889 = vmatpush1.bf16.msra.mxu1 %v7488_v25 }
 0x242   :  { %3808 = vmatprep.subr.bf16.mxu0 %v7493_v26  ;;  %3890 = vmatprep.subr.bf16.mxu1 %v7496_v27 }
 0x245   :  { %3809 = vmatpush1.bf16.msra.mxu0 %v7491_v28  ;;  %3891 = vmatpush1.bf16.msra.mxu1 %v7494_v29 }
 0x246   :  { %3810 = vmatprep.subr.bf16.mxu0 %v7499_v30  ;;  %3892 = vmatprep.subr.bf16.mxu1 %v7502_v31 }
 0x249   :  { %3811 = vmatpush1.bf16.msra.mxu0 %v7497_v32  ;;  %3893 = vmatpush1.bf16.msra.mxu1 %v7500_v33 }
 0x24a   :  { %3812 = vmatprep.subr.bf16.mxu0 %v7505_v34  ;;  %3894 = vmatprep.subr.bf16.mxu1 %v7508_v36 }
 0x24d   :  { %3813 = vmatpush1.bf16.msra.mxu0 %v7503_v37  ;;  %3895 = vmatpush1.bf16.msra.mxu1 %v7506_v38 }
 0x24e   :  { %3814 = vmatprep.subr.bf16.mxu0 %v7511_v39  ;;  %3896 = vmatprep.subr.bf16.mxu1 %v7514_v40 }
 0x251   :  { %3815 = vmatpush1.bf16.msra.mxu0 %v7509_v41  ;;  %3897 = vmatpush1.bf16.msra.mxu1 %v7512_v42 }
 0x252   :  { %3816 = vmatprep.subr.bf16.mxu0 %v7517_v43  ;;  %3898 = vmatprep.subr.bf16.mxu1 %v7520_v44 }
 0x255   :  { %3817 = vmatpush1.bf16.msra.mxu0 %v7515_v45  ;;  %3899 = vmatpush1.bf16.msra.mxu1 %v7518_v46 }
 0x256   :  { %3818 = vmatprep.subr.bf16.mxu0 %v7523_v24  ;;  %3900 = vmatprep.subr.bf16.mxu1 %v7526_v49 }
 0x259   :  { %3819 = vmatpush1.bf16.msra.mxu0 %v7521_v47  ;;  %3901 = vmatpush1.bf16.msra.mxu1 %v7524_v48 }
 0x25a   :  { %3829 = vmatprep.subr.bf16.mxu0 %v7529_v50  ;;  %3911 = vmatprep.subr.bf16.mxu1 %v7532_v51 }
 0x2ef   :  { %v2793_v54 = vpop.f32.mrb[4].mxu0  ;;  %v2875_v55 = vpop.f32.mrb[4].mxu1 }
 0x2f0   :  { %v2887_v56 = vmul.f32 %v9393_v53, %v2793_v54  ;;  %v2889_v57 = vmul.f32 %v9393_v53, %v2875_v55  ;;  %v2795_v58 = vpop.f32.mrb[5].mxu0  ;;  %v2877_v59 = vpop.f32.mrb[5].mxu1 }
 0x2f1   :  { %v2888_v60 = vmul.f32 %v9393_v53, %v2795_v58  ;;  %v2890_v61 = vmul.f32 %v9393_v53, %v2877_v59  ;;  %v2797_v62 = vpop.f32.mrb[6].mxu0  ;;  %v2879_v63 = vpop.f32.mrb[6].mxu1 }
 0x2f2   :  { %v2891_v0 = vrot.slane %v2887_v56, 4  ;;  %v2903_v1 = vrot.slane %v2889_v57, 4  ;;  %v2798_v2 = vpop.f32.mrb[7].mxu0  ;;  %v2880_v3 = vpop.f32.mrb[7].mxu1 }
 0x2f3   :  { %v2897_v4 = vrot.slane %v2888_v60, 4  ;;  %v2909_v5 = vrot.slane %v2890_v61, 4 }
 0x2f4   :  { %v2892_v6 = vadd.f32 %v2891_v0, %v2887_v56  ;;  %v2904_v7 = vadd.f32 %v2903_v1, %v2889_v57 }
 0x2f5   :  { %v2898_v8 = vadd.f32 %v2897_v4, %v2888_v60  ;;  %v2910_v9 = vadd.f32 %v2909_v5, %v2890_v61 }
 0x2f6   :  { %v2893_v10 = vrot.slane %v2892_v6, 2  ;;  %v2905_v12 = vrot.slane %v2904_v7, 2 }
 0x2f7   :  { %v2899_v13 = vrot.slane %v2898_v8, 2  ;;  %v2911_v15 = vrot.slane %v2910_v9, 2 }
 0x2f8   :  { %v2894_v11 = vadd.f32 %v2893_v10, %v2892_v6  ;;  %v2906_v20 = vadd.f32 %v2905_v12, %v2904_v7 }
 0x2f9   :  { %v2900_v21 = vadd.f32 %v2899_v13, %v2898_v8  ;;  %v2912_v22 = vadd.f32 %v2911_v15, %v2910_v9 }
 0x2fa   :  { %v2895_v23 = vrot.slane %v2894_v11, 1  ;;  %v2907_v25 = vrot.slane %v2906_v20, 1 }
 0x2fb   :  { %v2901_v26 = vrot.slane %v2900_v21, 1  ;;  %v2913_v27 = vrot.slane %v2912_v22, 1 }
 0x2fc   :  { %v2896_v28 = vadd.f32 %v2895_v23, %v2894_v11  ;;  %v2908_v29 = vadd.f32 %v2907_v25, %v2906_v20  ;;  %v2993_v23 = vsub.s32 2, %v8972_v16 }
 0x2fd   :  { %v2902_v30 = vadd.f32 %v2901_v26, %v2900_v21  ;;  %v2914_v31 = vadd.f32 %v2913_v27, %v2912_v22  ;;  %v9408_v22 = vsub.s32 1, %v8972_v16 }
 0x2fe   :  { %v2915_v32 = vmul.f32 0.5, %v2896_v28  ;;  %v2917_v33 = vmul.f32 0.5, %v2908_v29 }
 0x2ff   :  { %v2916_v34 = vmul.f32 0.5, %v2902_v30  ;;  %v2918_v36 = vmul.f32 0.5, %v2914_v31  ;;  %v2974_v25 = vrot.slane %v8980_v18, %v9408_v22  ;;  %v2982_v27 = vrot.slane %v9171_v35, %v9408_v22 }
 0x300   :  { %v2919_v37 = vsub.f32 %v2793_v54, %v2915_v32  ;;  %v2921_v38 = vsub.f32 %v2875_v55, %v2917_v33  ;;  %v2994_v30 = vrot.slane %v8980_v18, %v2993_v23  ;;  %v2978_v31 = vrot.slane %v8985_v19, %v9408_v22 }
 0x301   :  { %v2920_v39 = vsub.f32 %v2795_v58, %v2916_v34  ;;  %v9399_v40 = vsub.f32 %v2877_v59, %v2918_v36  ;;  %v3002_v34 = vrot.slane %v9171_v35, %v2993_v23  ;;  %v2986_v36 = vrot.slane %v8990_v14, %v9408_v22 }
 0x302   :  { %v2923_v41 = vmul.f32 %v2919_v37, %v2919_v37  ;;  %v2925_v42 = vmul.f32 %v2921_v38, %v2921_v38  ;;  %v3006_v18 = vrot.slane %v8990_v14, %v2993_v23 }
 0x303   :  { %v2924_v43 = vmul.f32 %v2920_v39, %v2920_v39  ;;  %v2926_v44 = vmul.f32 %v9399_v40, %v9399_v40 }
 0x304   :  { %v2927_v45 = vmul.f32 %v9393_v53, %v2923_v41  ;;  %v2929_v46 = vmul.f32 %v9393_v53, %v2925_v42 }
 0x305   :  { %v2928_v24 = vmul.f32 %v9393_v53, %v2924_v43  ;;  %v2930_v47 = vmul.f32 %v9393_v53, %v2926_v44  ;;  %v2998_v44 = vrot.slane %v8985_v19, %v2993_v23  ;;  %v7527_v19 = vld [vmem:[%s10278_s2 + $0x600] ss:$16 sps:$4 sm:$0xff]   ;;  %v7572_v23 = vld [vmem:[%s10278_s2 + $0x6e8] ss:$16 sps:$4 sm:$0xff]  }
 0x306   :  { %v2931_v48 = vrot.slane %v2927_v45, 4  ;;  %v2943_v49 = vrot.slane %v2929_v46, 4 }
 0x307   :  { %v2937_v50 = vrot.slane %v2928_v24, 4  ;;  %v2949_v51 = vrot.slane %v2930_v47, 4 }
 0x308   :  { %v2932_v52 = vadd.f32 %v2931_v48, %v2927_v45  ;;  %v2944_v54 = vadd.f32 %v2943_v49, %v2929_v46 }
 0x309   :  { %v2938_v55 = vadd.f32 %v2937_v50, %v2928_v24  ;;  %v2950_v56 = vadd.f32 %v2949_v51, %v2930_v47 }
 0x30a   :  { %v2933_v57 = vrot.slane %v2932_v52, 2  ;;  %v2945_v58 = vrot.slane %v2944_v54, 2 }
 0x30b   :  { %v2939_v59 = vrot.slane %v2938_v55, 2  ;;  %v2951_v60 = vrot.slane %v2950_v56, 2 }
 0x30c   :  { %v2934_v61 = vadd.f32 %v2933_v57, %v2932_v52  ;;  %v2946_v62 = vadd.f32 %v2945_v58, %v2944_v54  ;;  %v7538_v54 = vld [vmem:[%s10278_s2 + $0x62c] ss:$16 sps:$4 sm:$0xff]   ;;  %v7536_v57 = vld [vmem:[%s10278_s2 + $0x628] ss:$16 sps:$4 sm:$0xff]   ;;  %v7541_v58 = vld [vmem:[%s10278_s2 + $0x644] ss:$16 sps:$4 sm:$0xff]  }
 0x30d   :  { %v2940_v63 = vadd.f32 %v2939_v59, %v2938_v55  ;;  %v2952_v0 = vadd.f32 %v2951_v60, %v2950_v56  ;;  %v7533_v56 = vld [vmem:[%s10278_s2 + $0x620] ss:$16 sps:$4 sm:$0xff]   ;;  %v7544_v59 = vld [vmem:[%s10278_s2 + $0x64c] ss:$16 sps:$4 sm:$0xff]  }
 0x30e   :  { %v2935_v1 = vrot.slane %v2934_v61, 1  ;;  %v2947_v2 = vrot.slane %v2946_v62, 1  ;;  %v7539_v60 = vld [vmem:[%s10278_s2 + $0x640] ss:$16 sps:$4 sm:$0xff]  }
 0x30f   :  { %v2941_v3 = vrot.slane %v2940_v63, 1  ;;  %v2953_v4 = vrot.slane %v2952_v0, 1 }
 0x310   :  { %v2936_v5 = vadd.f32 %v2935_v1, %v2934_v61  ;;  %v2948_v6 = vadd.f32 %v2947_v2, %v2946_v62  ;;  %v7542_v61 = vld [vmem:[%s10278_s2 + $0x648] ss:$16 sps:$4 sm:$0xff]   ;;  %v7547_v62 = vld [vmem:[%s10278_s2 + $0x664] ss:$16 sps:$4 sm:$0xff]  }
 0x311   :  { %v2942_v7 = vadd.f32 %v2941_v3, %v2940_v63  ;;  %v2954_v8 = vadd.f32 %v2953_v4, %v2952_v0  ;;  %v7550_v63 = vld [vmem:[%s10278_s2 + $0x66c] ss:$16 sps:$4 sm:$0xff]   ;;  %v7545_v0 = vld [vmem:[%s10278_s2 + $0x660] ss:$16 sps:$4 sm:$0xff]   ;;  %v7548_v1 = vld [vmem:[%s10278_s2 + $0x668] ss:$16 sps:$4 sm:$0xff]  }
 0x312   :  { %v2955_v9 = vmul.f32 0.5, %v2936_v5  ;;  %v2957_v10 = vmul.f32 0.5, %v2948_v6  ;;  %v7553_v2 = vld [vmem:[%s10278_s2 + $0x684] ss:$16 sps:$4 sm:$0xff]   ;;  %v7556_v3 = vld [vmem:[%s10278_s2 + $0x68c] ss:$16 sps:$4 sm:$0xff]  }
 0x313   :  { %v2956_v12 = vmul.f32 0.5, %v2942_v7  ;;  %v2958_v13 = vmul.f32 0.5, %v2954_v8  ;;  %v7551_v4 = vld [vmem:[%s10278_s2 + $0x680] ss:$16 sps:$4 sm:$0xff]   ;;  %v7554_v5 = vld [vmem:[%s10278_s2 + $0x688] ss:$16 sps:$4 sm:$0xff]  }
 0x314   :  { %v2959_v15 = vadd.f32 1e-05, %v2955_v9  ;;  %v2961_v11 = vadd.f32 1e-05, %v2957_v10  ;;  %v7559_v6 = vld [vmem:[%s10278_s2 + $0x6a4] ss:$16 sps:$4 sm:$0xff]  }
 0x315   :  { %v2960_v20 = vadd.f32 1e-05, %v2956_v12  ;;  %v2962_v21 = vadd.f32 1e-05, %v2958_v13  ;;  %v7562_v7 = vld [vmem:[%s10278_s2 + $0x6ac] ss:$16 sps:$4 sm:$0xff]  }
 0x316   :  { %7895 = vrsqrt.f32 %v2959_v15  ;;  %v7557_v8 = vld [vmem:[%s10278_s2 + $0x6a0] ss:$16 sps:$4 sm:$0xff]   ;;  %v7560_v9 = vld [vmem:[%s10278_s2 + $0x6a8] ss:$16 sps:$4 sm:$0xff]   ;;  %v7565_v10 = vld [vmem:[%s10278_s2 + $0x6c4] ss:$16 sps:$4 sm:$0xff]  }
 0x317   :  { %7897 = vrsqrt.f32 %v2961_v11  ;;  %v7568_v12 = vld [vmem:[%s10278_s2 + $0x6cc] ss:$16 sps:$4 sm:$0xff]   ;;  %v7563_v13 = vld [vmem:[%s10278_s2 + $0x6c0] ss:$16 sps:$4 sm:$0xff]   ;;  %v7566_v15 = vld [vmem:[%s10278_s2 + $0x6c8] ss:$16 sps:$4 sm:$0xff]  }
 0x318   :  { %7899 = vrsqrt.f32 %v2960_v20  ;;  %v7571_v11 = vld [vmem:[%s10278_s2 + $0x6e4] ss:$16 sps:$4 sm:$0xff]   ;;  %v7574_v20 = vld [vmem:[%s10278_s2 + $0x6ec] ss:$16 sps:$4 sm:$0xff]  }
 0x319   :  { %7901 = vrsqrt.f32 %v2962_v21  ;;  %v7569_v21 = vld [vmem:[%s10278_s2 + $0x6e0] ss:$16 sps:$4 sm:$0xff]  }
 0x320   :  { %v7896_v26 = vpop.eup %7895 }
 0x321   :  { %v7898_v28 = vpop.eup %7897  ;;  %v2967_v29 = vmul.f32 %v7896_v26, %v2919_v37  ;;  %v7580_v26 = vld [vmem:[%s10278_s2 + $0x70c] ss:$16 sps:$4 sm:$0xff]  }
 0x322   :  { %v7900_v32 = vpop.eup %7899  ;;  %v2969_v33 = vmul.f32 %v7898_v28, %v2921_v38  ;;  %v7578_v28 = vld [vmem:[%s10278_s2 + $0x708] ss:$16 sps:$4 sm:$0xff]  }
 0x323   :  { %v7902_v41 = vpop.eup %7901  ;;  %v2987_v42 = vmul.f32 %v2974_v25, %v2967_v29  ;;  %v2968_v43 = vmul.f32 %v7900_v32, %v2920_v39  ;;  %v7530_v39 = vld [vmem:[%s10278_s2 + $0x608] ss:$16 sps:$4 sm:$0xff]   ;;  %v7577_v25 = vld [vmem:[%s10278_s2 + $0x704] ss:$16 sps:$4 sm:$0xff]  }
 0x324   :  { %v2989_v45 = vmul.f32 %v2982_v27, %v2969_v33  ;;  %v2970_v37 = vmul.f32 %v7902_v41, %v9399_v40  ;;  %v7535_v40 = vld [vmem:[%s10278_s2 + $0x624] ss:$16 sps:$4 sm:$0xff]   ;;  %v7575_v27 = vld [vmem:[%s10278_s2 + $0x700] ss:$16 sps:$4 sm:$0xff]   ;;  %v7584_v32 = vld [vmem:[%s10278_s2 + $0x728] ss:$16 sps:$4 sm:$0xff]  }
 0x325   :  { %v3007_v46 = vadd.f32 %v2994_v30, %v2987_v42  ;;  %v2988_v24 = vmul.f32 %v2978_v31, %v2968_v43  ;;  %v7583_v29 = vld [vmem:[%s10278_s2 + $0x724] ss:$16 sps:$4 sm:$0xff]   ;;  %v7586_v30 = vld [vmem:[%s10278_s2 + $0x72c] ss:$16 sps:$4 sm:$0xff]   ;;  %v7581_v31 = vld [vmem:[%s10278_s2 + $0x720] ss:$16 sps:$4 sm:$0xff]  }
 0x326   :  { %v9424_v47 = vadd.f32 %v3002_v34, %v2989_v45  ;;  %v2990_v38 = vmul.f32 %v2986_v36, %v2970_v37  ;;  %v7589_v33 = vld [vmem:[%s10278_s2 + $0x744] ss:$16 sps:$4 sm:$0xff]   ;;  %v7592_v34 = vld [vmem:[%s10278_s2 + $0x74c] ss:$16 sps:$4 sm:$0xff]   ;;  %v7587_v36 = vld [vmem:[%s10278_s2 + $0x740] ss:$16 sps:$4 sm:$0xff]  }
 0x327   :  { %v3008_v48 = vadd.f32 %v2998_v44, %v2988_v24  ;;  %v3011_v35 = vmax.f32 %v3007_v46, 0.0  ;;  %v7590_v41 = vld [vmem:[%s10278_s2 + $0x748] ss:$16 sps:$4 sm:$0xff]   ;;  %v7595_v42 = vld [vmem:[%s10278_s2 + $0x764] ss:$16 sps:$4 sm:$0xff]  }
 0x328   :  { %v3010_v49 = vadd.f32 %v3006_v18, %v2990_v38  ;;  %v7598_v43 = vld [vmem:[%s10278_s2 + $0x76c] ss:$16 sps:$4 sm:$0xff]   ;;  %v7593_v44 = vld [vmem:[%s10278_s2 + $0x760] ss:$16 sps:$4 sm:$0xff]   ;;  %v7596_v45 = vld [vmem:[%s10278_s2 + $0x768] ss:$16 sps:$4 sm:$0xff]  }
 0x329   :  { %v3012_v50 = vmax.f32 %v3008_v48, 0.0  ;;  %v3144_v14 = vpack.c.bf16 %v3011_v35, %v3011_v35  ;;  %v7601_v37 = vld [vmem:[%s10278_s2 + $0x784] ss:$16 sps:$4 sm:$0xff]   ;;  %v7604_v18 = vld [vmem:[%s10278_s2 + $0x78c] ss:$16 sps:$4 sm:$0xff]  }
 0x32a   :  { %v3014_v51 = vmax.f32 %v3010_v49, 0.0  ;;  %v7599_v46 = vld [vmem:[%s10278_s2 + $0x780] ss:$16 sps:$4 sm:$0xff]   ;;  %v7602_v24 = vld [vmem:[%s10278_s2 + $0x788] ss:$16 sps:$4 sm:$0xff]  }
 0x32b   :  { %v3145_v52 = vpack.c.bf16 %v3012_v50, %v3012_v50  ;;  %v7607_v38 = vld [vmem:[%s10278_s2 + $0x7a4] ss:$16 sps:$4 sm:$0xff]   ;;  %v7610_v48 = vld [vmem:[%s10278_s2 + $0x7ac] ss:$16 sps:$4 sm:$0xff]   ;;  %v7605_v35 = vld [vmem:[%s10278_s2 + $0x7a0] ss:$16 sps:$4 sm:$0xff]  }
 0x32c   :  { %v3147_v55 = vpack.c.bf16 %v3014_v51, %v3014_v51  ;;  %v7608_v49 = vld [vmem:[%s10278_s2 + $0x7a8] ss:$16 sps:$4 sm:$0xff]   ;;  %v7613_v50 = vld [vmem:[%s10278_s2 + $0x7c4] ss:$16 sps:$4 sm:$0xff]   ;;  %v7616_v51 = vld [vmem:[%s10278_s2 + $0x7cc] ss:$16 sps:$4 sm:$0xff]  }
 0x32d   :  { %3820 = vmatprep.mubr.bf16.mxu0 %v3145_v52  ;;  %3902 = vmatprep.mubr.bf16.mxu1 %v3145_v52  ;;  %v7611_v52 = vld [vmem:[%s10278_s2 + $0x7c0] ss:$16 sps:$4 sm:$0xff]  }
 0x32e   :  { %3821 = vmatmul.mubr.bf16.vlgmr.msra.gmra.mrb[8].mxu0 %v3144_v14  ;;  %3903 = vmatmul.mubr.bf16.vlgmr.msra.gmra.mrb[8].mxu1 %v3144_v14  ;;  %v7622_v14 = vld [vmem:[%s10278_s2 + $0x7ec] ss:$16 sps:$4 sm:$0xff]  }
 0x32f   :  { %3830 = vmatpush1.bf16.msra.mxu0 %v7527_v19  ;;  %3912 = vmatpush1.bf16.msra.mxu1 %v7530_v39  ;;  %v7614_v19 = vld [vmem:[%s10278_s2 + $0x7c8] ss:$16 sps:$4 sm:$0xff]   ;;  %v7619_v39 = vld [vmem:[%s10278_s2 + $0x7e4] ss:$16 sps:$4 sm:$0xff]  }
 0x330   :  { %3861 = vmatprep.mubr.bf16.mxu0 %v3147_v55  ;;  %3943 = vmatprep.mubr.bf16.mxu1 %v3147_v55  ;;  %v3013_v55 = vmax.f32 %v9424_v47, 0.0  ;;  %v7631_v47 = vld [vmem:[%s10278_s2 + $0x824] ss:$16 sps:$4 sm:$0xff]  }
 0x331   :  { %3831 = vmatprep.subr.bf16.mxu0 %v7535_v40  ;;  %3913 = vmatprep.subr.bf16.mxu1 %v7538_v54  ;;  %v7617_v40 = vld [vmem:[%s10278_s2 + $0x7e0] ss:$16 sps:$4 sm:$0xff]   ;;  %v7620_v54 = vld [vmem:[%s10278_s2 + $0x7e8] ss:$16 sps:$4 sm:$0xff]  }
 0x333   :  { %3832 = vmatpush1.bf16.msra.mxu0 %v7533_v56  ;;  %3914 = vmatpush1.bf16.msra.mxu1 %v7536_v57  ;;  %v7625_v56 = vld [vmem:[%s10278_s2 + $0x804] ss:$16 sps:$4 sm:$0xff]   ;;  %v7628_v57 = vld [vmem:[%s10278_s2 + $0x80c] ss:$16 sps:$4 sm:$0xff]  }
 0x334   :  { %3833 = vmatprep.subr.bf16.mxu0 %v7541_v58  ;;  %3915 = vmatprep.subr.bf16.mxu1 %v7544_v59  ;;  %v7623_v58 = vld [vmem:[%s10278_s2 + $0x800] ss:$16 sps:$4 sm:$0xff]   ;;  %v7626_v59 = vld [vmem:[%s10278_s2 + $0x808] ss:$16 sps:$4 sm:$0xff]  }
 0x337   :  { %3834 = vmatpush1.bf16.msra.mxu0 %v7539_v60  ;;  %3916 = vmatpush1.bf16.msra.mxu1 %v7542_v61  ;;  %v3146_v60 = vpack.c.bf16 %v3013_v55, %v3013_v55  ;;  %v7634_v61 = vld [vmem:[%s10278_s2 + $0x82c] ss:$16 sps:$4 sm:$0xff]   ;;  %v7707_v55 = vld [vmem:[%s10278_s2 + $0x9c0] ss:$16 sps:$4 sm:$0xff]  }
 0x338   :  { %3835 = vmatprep.subr.bf16.mxu0 %v7547_v62  ;;  %3917 = vmatprep.subr.bf16.mxu1 %v7550_v63  ;;  %v7629_v62 = vld [vmem:[%s10278_s2 + $0x820] ss:$16 sps:$4 sm:$0xff]   ;;  %v7632_v63 = vld [vmem:[%s10278_s2 + $0x828] ss:$16 sps:$4 sm:$0xff]  }
 0x33b   :  { %3836 = vmatpush1.bf16.msra.mxu0 %v7545_v0  ;;  %3918 = vmatpush1.bf16.msra.mxu1 %v7548_v1  ;;  %v7637_v0 = vld [vmem:[%s10278_s2 + $0x844] ss:$16 sps:$4 sm:$0xff]   ;;  %v7640_v1 = vld [vmem:[%s10278_s2 + $0x84c] ss:$16 sps:$4 sm:$0xff]  }
 0x33c   :  { %3837 = vmatprep.subr.bf16.mxu0 %v7553_v2  ;;  %3919 = vmatprep.subr.bf16.mxu1 %v7556_v3  ;;  %v7635_v2 = vld [vmem:[%s10278_s2 + $0x840] ss:$16 sps:$4 sm:$0xff]   ;;  %v7638_v3 = vld [vmem:[%s10278_s2 + $0x848] ss:$16 sps:$4 sm:$0xff]  }
 0x33f   :  { %3838 = vmatpush1.bf16.msra.mxu0 %v7551_v4  ;;  %3920 = vmatpush1.bf16.msra.mxu1 %v7554_v5  ;;  %v7643_v4 = vld [vmem:[%s10278_s2 + $0x864] ss:$16 sps:$4 sm:$0xff]   ;;  %v7646_v5 = vld [vmem:[%s10278_s2 + $0x86c] ss:$16 sps:$4 sm:$0xff]  }
 0x340   :  { %3839 = vmatprep.subr.bf16.mxu0 %v7559_v6  ;;  %3921 = vmatprep.subr.bf16.mxu1 %v7562_v7  ;;  %v7641_v6 = vld [vmem:[%s10278_s2 + $0x860] ss:$16 sps:$4 sm:$0xff]   ;;  %v7644_v7 = vld [vmem:[%s10278_s2 + $0x868] ss:$16 sps:$4 sm:$0xff]  }
 0x343   :  { %3840 = vmatpush1.bf16.msra.mxu0 %v7557_v8  ;;  %3922 = vmatpush1.bf16.msra.mxu1 %v7560_v9  ;;  %v7649_v8 = vld [vmem:[%s10278_s2 + $0x884] ss:$16 sps:$4 sm:$0xff]   ;;  %v7652_v9 = vld [vmem:[%s10278_s2 + $0x88c] ss:$16 sps:$4 sm:$0xff]  }
 0x344   :  { %3841 = vmatprep.subr.bf16.mxu0 %v7565_v10  ;;  %3923 = vmatprep.subr.bf16.mxu1 %v7568_v12  ;;  %v7647_v10 = vld [vmem:[%s10278_s2 + $0x880] ss:$16 sps:$4 sm:$0xff]   ;;  %v7650_v12 = vld [vmem:[%s10278_s2 + $0x888] ss:$16 sps:$4 sm:$0xff]  }
 0x347   :  { %3842 = vmatpush1.bf16.msra.mxu0 %v7563_v13  ;;  %3924 = vmatpush1.bf16.msra.mxu1 %v7566_v15  ;;  %v7655_v13 = vld [vmem:[%s10278_s2 + $0x8a4] ss:$16 sps:$4 sm:$0xff]   ;;  %v7658_v15 = vld [vmem:[%s10278_s2 + $0x8ac] ss:$16 sps:$4 sm:$0xff]  }
 0x348   :  { %3843 = vmatprep.subr.bf16.mxu0 %v7571_v11  ;;  %3925 = vmatprep.subr.bf16.mxu1 %v7574_v20  ;;  %v7653_v11 = vld [vmem:[%s10278_s2 + $0x8a0] ss:$16 sps:$4 sm:$0xff]   ;;  %v7656_v20 = vld [vmem:[%s10278_s2 + $0x8a8] ss:$16 sps:$4 sm:$0xff]  }
 0x34b   :  { %3844 = vmatpush1.bf16.msra.mxu0 %v7569_v21  ;;  %3926 = vmatpush1.bf16.msra.mxu1 %v7572_v23  ;;  %v7661_v21 = vld [vmem:[%s10278_s2 + $0x8c4] ss:$16 sps:$4 sm:$0xff]   ;;  %v7664_v23 = vld [vmem:[%s10278_s2 + $0x8cc] ss:$16 sps:$4 sm:$0xff]  }
 0x34c   :  { %3845 = vmatprep.subr.bf16.mxu0 %v7577_v25  ;;  %3927 = vmatprep.subr.bf16.mxu1 %v7580_v26  ;;  %v7659_v25 = vld [vmem:[%s10278_s2 + $0x8c0] ss:$16 sps:$4 sm:$0xff]   ;;  %v7662_v26 = vld [vmem:[%s10278_s2 + $0x8c8] ss:$16 sps:$4 sm:$0xff]  }
 0x34f   :  { %3846 = vmatpush1.bf16.msra.mxu0 %v7575_v27  ;;  %3928 = vmatpush1.bf16.msra.mxu1 %v7578_v28  ;;  %v7667_v27 = vld [vmem:[%s10278_s2 + $0x8e4] ss:$16 sps:$4 sm:$0xff]   ;;  %v7670_v28 = vld [vmem:[%s10278_s2 + $0x8ec] ss:$16 sps:$4 sm:$0xff]  }
 0x350   :  { %3847 = vmatprep.subr.bf16.mxu0 %v7583_v29  ;;  %3929 = vmatprep.subr.bf16.mxu1 %v7586_v30  ;;  %v7665_v29 = vld [vmem:[%s10278_s2 + $0x8e0] ss:$16 sps:$4 sm:$0xff]   ;;  %v7668_v30 = vld [vmem:[%s10278_s2 + $0x8e8] ss:$16 sps:$4 sm:$0xff]  }
 0x353   :  { %3848 = vmatpush1.bf16.msra.mxu0 %v7581_v31  ;;  %3930 = vmatpush1.bf16.msra.mxu1 %v7584_v32  ;;  %v7673_v31 = vld [vmem:[%s10278_s2 + $0x904] ss:$16 sps:$4 sm:$0xff]   ;;  %v7676_v32 = vld [vmem:[%s10278_s2 + $0x90c] ss:$16 sps:$4 sm:$0xff]  }
 0x354   :  { %3849 = vmatprep.subr.bf16.mxu0 %v7589_v33  ;;  %3931 = vmatprep.subr.bf16.mxu1 %v7592_v34  ;;  %v7671_v33 = vld [vmem:[%s10278_s2 + $0x900] ss:$16 sps:$4 sm:$0xff]   ;;  %v7674_v34 = vld [vmem:[%s10278_s2 + $0x908] ss:$16 sps:$4 sm:$0xff]  }
 0x357   :  { %3850 = vmatpush1.bf16.msra.mxu0 %v7587_v36  ;;  %3932 = vmatpush1.bf16.msra.mxu1 %v7590_v41  ;;  %v7679_v36 = vld [vmem:[%s10278_s2 + $0x924] ss:$16 sps:$4 sm:$0xff]   ;;  %v7682_v41 = vld [vmem:[%s10278_s2 + $0x92c] ss:$16 sps:$4 sm:$0xff]  }
 0x358   :  { %3851 = vmatprep.subr.bf16.mxu0 %v7595_v42  ;;  %3933 = vmatprep.subr.bf16.mxu1 %v7598_v43  ;;  %v7677_v42 = vld [vmem:[%s10278_s2 + $0x920] ss:$16 sps:$4 sm:$0xff]   ;;  %v7680_v43 = vld [vmem:[%s10278_s2 + $0x928] ss:$16 sps:$4 sm:$0xff]  }
 0x35b   :  { %3852 = vmatpush1.bf16.msra.mxu0 %v7593_v44  ;;  %3934 = vmatpush1.bf16.msra.mxu1 %v7596_v45  ;;  %v7685_v44 = vld [vmem:[%s10278_s2 + $0x944] ss:$16 sps:$4 sm:$0xff]   ;;  %v7688_v45 = vld [vmem:[%s10278_s2 + $0x94c] ss:$16 sps:$4 sm:$0xff]  }
 0x35c   :  { %3853 = vmatprep.subr.bf16.mxu0 %v7601_v37  ;;  %3935 = vmatprep.subr.bf16.mxu1 %v7604_v18  ;;  %v7683_v37 = vld [vmem:[%s10278_s2 + $0x940] ss:$16 sps:$4 sm:$0xff]   ;;  %v7686_v18 = vld [vmem:[%s10278_s2 + $0x948] ss:$16 sps:$4 sm:$0xff]  }
 0x35f   :  { %3854 = vmatpush1.bf16.msra.mxu0 %v7599_v46  ;;  %3936 = vmatpush1.bf16.msra.mxu1 %v7602_v24  ;;  %v7691_v46 = vld [vmem:[%s10278_s2 + $0x964] ss:$16 sps:$4 sm:$0xff]   ;;  %v7694_v24 = vld [vmem:[%s10278_s2 + $0x96c] ss:$16 sps:$4 sm:$0xff]  }
 0x360   :  { %3855 = vmatprep.subr.bf16.mxu0 %v7607_v38  ;;  %3937 = vmatprep.subr.bf16.mxu1 %v7610_v48  ;;  %v7689_v38 = vld [vmem:[%s10278_s2 + $0x960] ss:$16 sps:$4 sm:$0xff]   ;;  %v7692_v48 = vld [vmem:[%s10278_s2 + $0x968] ss:$16 sps:$4 sm:$0xff]  }
 0x363   :  { %3856 = vmatpush1.bf16.msra.mxu0 %v7605_v35  ;;  %3938 = vmatpush1.bf16.msra.mxu1 %v7608_v49  ;;  %v7697_v35 = vld [vmem:[%s10278_s2 + $0x984] ss:$16 sps:$4 sm:$0xff]   ;;  %v7700_v49 = vld [vmem:[%s10278_s2 + $0x98c] ss:$16 sps:$4 sm:$0xff]  }
 0x364   :  { %3857 = vmatprep.subr.bf16.mxu0 %v7613_v50  ;;  %3939 = vmatprep.subr.bf16.mxu1 %v7616_v51  ;;  %v7695_v50 = vld [vmem:[%s10278_s2 + $0x980] ss:$16 sps:$4 sm:$0xff]   ;;  %v7698_v51 = vld [vmem:[%s10278_s2 + $0x988] ss:$16 sps:$4 sm:$0xff]  }
 0x367   :  { %3858 = vmatpush1.bf16.msra.mxu0 %v7611_v52  ;;  %3940 = vmatpush1.bf16.msra.mxu1 %v7614_v19  ;;  %v7703_v52 = vld [vmem:[%s10278_s2 + $0x9a4] ss:$16 sps:$4 sm:$0xff]   ;;  %v7706_v19 = vld [vmem:[%s10278_s2 + $0x9ac] ss:$16 sps:$4 sm:$0xff]  }
 0x368   :  { %3859 = vmatprep.subr.bf16.mxu0 %v7619_v39  ;;  %3941 = vmatprep.subr.bf16.mxu1 %v7622_v14  ;;  %v7701_v39 = vld [vmem:[%s10278_s2 + $0x9a0] ss:$16 sps:$4 sm:$0xff]   ;;  %v7704_v14 = vld [vmem:[%s10278_s2 + $0x9a8] ss:$16 sps:$4 sm:$0xff]  }
 0x36b   :  { %3860 = vmatpush1.bf16.msra.mxu0 %v7617_v40  ;;  %3942 = vmatpush1.bf16.msra.mxu1 %v7620_v54  ;;  %v7709_v40 = vld [vmem:[%s10278_s2 + $0x9c4] ss:$16 sps:$4 sm:$0xff]   ;;  %v7712_v54 = vld [vmem:[%s10278_s2 + $0x9cc] ss:$16 sps:$4 sm:$0xff]  }
 0x36c   :  { %4853 = vmatprep.subr.bf16.mxu0 %v7625_v56  ;;  %4935 = vmatprep.subr.bf16.mxu1 %v7628_v57  ;;  %v7710_v56 = vld [vmem:[%s10278_s2 + $0x9c8] ss:$16 sps:$4 sm:$0xff]   ;;  %v7715_v57 = vld [vmem:[%s10278_s2 + $0x9e4] ss:$16 sps:$4 sm:$0xff]  }
 0x36e   :  { %3862 = vmatmul.mubr.bf16.vlgmr.msra.gmra.mrb[8].mxu0 %v3146_v60  ;;  %3944 = vmatmul.mubr.bf16.vlgmr.msra.gmra.mrb[8].mxu1 %v3146_v60  ;;  %v7718_v60 = vld [vmem:[%s10278_s2 + $0x9ec] ss:$16 sps:$4 sm:$0xff]  }
 0x36f   :  { %4854 = vmatpush1.bf16.msra.mxu0 %v7623_v58  ;;  %4936 = vmatpush1.bf16.msra.mxu1 %v7626_v59  ;;  %v7713_v58 = vld [vmem:[%s10278_s2 + $0x9e0] ss:$16 sps:$4 sm:$0xff]   ;;  %v7716_v59 = vld [vmem:[%s10278_s2 + $0x9e8] ss:$16 sps:$4 sm:$0xff]  }
 0x370   :  { %4855 = vmatprep.subr.bf16.mxu0 %v7631_v47  ;;  %4937 = vmatprep.subr.bf16.mxu1 %v7634_v61  ;;  %v7721_v47 = vld [vmem:[%s10278_s2 + $0xa04] ss:$16 sps:$4 sm:$0xff]   ;;  %v7724_v61 = vld [vmem:[%s10278_s2 + $0xa0c] ss:$16 sps:$4 sm:$0xff]  }
 0x373   :  { %4856 = vmatpush1.bf16.msra.mxu0 %v7629_v62  ;;  %4938 = vmatpush1.bf16.msra.mxu1 %v7632_v63 }
 0x374   :  { %4857 = vmatprep.subr.bf16.mxu0 %v7637_v0  ;;  %4939 = vmatprep.subr.bf16.mxu1 %v7640_v1 }
 0x377   :  { %4858 = vmatpush1.bf16.msra.mxu0 %v7635_v2  ;;  %4940 = vmatpush1.bf16.msra.mxu1 %v7638_v3 }
 0x378   :  { %4859 = vmatprep.subr.bf16.mxu0 %v7643_v4  ;;  %4941 = vmatprep.subr.bf16.mxu1 %v7646_v5 }
 0x37b   :  { %4860 = vmatpush1.bf16.msra.mxu0 %v7641_v6  ;;  %4942 = vmatpush1.bf16.msra.mxu1 %v7644_v7 }
 0x37c   :  { %4861 = vmatprep.subr.bf16.mxu0 %v7649_v8  ;;  %4943 = vmatprep.subr.bf16.mxu1 %v7652_v9 }
 0x37f   :  { %4862 = vmatpush1.bf16.msra.mxu0 %v7647_v10  ;;  %4944 = vmatpush1.bf16.msra.mxu1 %v7650_v12 }
 0x380   :  { %4863 = vmatprep.subr.bf16.mxu0 %v7655_v13  ;;  %4945 = vmatprep.subr.bf16.mxu1 %v7658_v15 }
 0x383   :  { %4864 = vmatpush1.bf16.msra.mxu0 %v7653_v11  ;;  %4946 = vmatpush1.bf16.msra.mxu1 %v7656_v20 }
 0x384   :  { %4865 = vmatprep.subr.bf16.mxu0 %v7661_v21  ;;  %4947 = vmatprep.subr.bf16.mxu1 %v7664_v23 }
 0x387   :  { %4866 = vmatpush1.bf16.msra.mxu0 %v7659_v25  ;;  %4948 = vmatpush1.bf16.msra.mxu1 %v7662_v26 }
 0x388   :  { %4867 = vmatprep.subr.bf16.mxu0 %v7667_v27  ;;  %4949 = vmatprep.subr.bf16.mxu1 %v7670_v28 }
 0x38b   :  { %4868 = vmatpush1.bf16.msra.mxu0 %v7665_v29  ;;  %4950 = vmatpush1.bf16.msra.mxu1 %v7668_v30 }
 0x38c   :  { %4869 = vmatprep.subr.bf16.mxu0 %v7673_v31  ;;  %4951 = vmatprep.subr.bf16.mxu1 %v7676_v32 }
 0x38f   :  { %4870 = vmatpush1.bf16.msra.mxu0 %v7671_v33  ;;  %4952 = vmatpush1.bf16.msra.mxu1 %v7674_v34 }
 0x390   :  { %4871 = vmatprep.subr.bf16.mxu0 %v7679_v36  ;;  %4953 = vmatprep.subr.bf16.mxu1 %v7682_v41 }
 0x393   :  { %4872 = vmatpush1.bf16.msra.mxu0 %v7677_v42  ;;  %4954 = vmatpush1.bf16.msra.mxu1 %v7680_v43 }
 0x394   :  { %4873 = vmatprep.subr.bf16.mxu0 %v7685_v44  ;;  %4955 = vmatprep.subr.bf16.mxu1 %v7688_v45 }
 0x397   :  { %4874 = vmatpush1.bf16.msra.mxu0 %v7683_v37  ;;  %4956 = vmatpush1.bf16.msra.mxu1 %v7686_v18 }
 0x398   :  { %4875 = vmatprep.subr.bf16.mxu0 %v7691_v46  ;;  %4957 = vmatprep.subr.bf16.mxu1 %v7694_v24 }
 0x39b   :  { %4876 = vmatpush1.bf16.msra.mxu0 %v7689_v38  ;;  %4958 = vmatpush1.bf16.msra.mxu1 %v7692_v48 }
 0x39c   :  { %4877 = vmatprep.subr.bf16.mxu0 %v7697_v35  ;;  %4959 = vmatprep.subr.bf16.mxu1 %v7700_v49 }
 0x39f   :  { %4878 = vmatpush1.bf16.msra.mxu0 %v7695_v50  ;;  %4960 = vmatpush1.bf16.msra.mxu1 %v7698_v51 }
 0x3a0   :  { %4879 = vmatprep.subr.bf16.mxu0 %v7703_v52  ;;  %4961 = vmatprep.subr.bf16.mxu1 %v7706_v19 }
 0x3a3   :  { %4880 = vmatpush1.bf16.msra.mxu0 %v7701_v39  ;;  %4962 = vmatpush1.bf16.msra.mxu1 %v7704_v14 }
 0x3a4   :  { %4881 = vmatprep.subr.bf16.mxu0 %v7709_v40  ;;  %4963 = vmatprep.subr.bf16.mxu1 %v7712_v54 }
 0x3a7   :  { %4882 = vmatpush1.bf16.msra.mxu0 %v7707_v55  ;;  %4964 = vmatpush1.bf16.msra.mxu1 %v7710_v56 }
 0x3a8   :  { %4883 = vmatprep.subr.bf16.mxu0 %v7715_v57  ;;  %4965 = vmatprep.subr.bf16.mxu1 %v7718_v60 }
 0x3ab   :  { %4884 = vmatpush1.bf16.msra.mxu0 %v7713_v58  ;;  %4966 = vmatpush1.bf16.msra.mxu1 %v7716_v59 }
 0x3ac   :  { %4894 = vmatprep.subr.bf16.mxu0 %v7721_v47  ;;  %4976 = vmatprep.subr.bf16.mxu1 %v7724_v61 }
 0x441   :  { %v3863_v62 = vpop.f32.mrb[8].mxu0  ;;  %v3945_v63 = vpop.f32.mrb[8].mxu1 }
 0x442   :  { %v3952_v0 = vmul.f32 %v9393_v53, %v3863_v62  ;;  %v3954_v1 = vmul.f32 %v9393_v53, %v3945_v63  ;;  %v3865_v2 = vpop.f32.mrb[9].mxu0  ;;  %v3947_v3 = vpop.f32.mrb[9].mxu1 }
 0x443   :  { %v3953_v4 = vmul.f32 %v9393_v53, %v3865_v2  ;;  %v3955_v5 = vmul.f32 %v9393_v53, %v3947_v3  ;;  %v3867_v6 = vpop.f32.mrb[10].mxu0  ;;  %v3949_v7 = vpop.f32.mrb[10].mxu1 }
 0x444   :  { %v3956_v8 = vrot.slane %v3952_v0, 4  ;;  %v3968_v9 = vrot.slane %v3954_v1, 4  ;;  %v3868_v10 = vpop.f32.mrb[11].mxu0  ;;  %v3950_v12 = vpop.f32.mrb[11].mxu1 }
 0x445   :  { %v3962_v13 = vrot.slane %v3953_v4, 4  ;;  %v3974_v15 = vrot.slane %v3955_v5, 4 }
 0x446   :  { %v3957_v11 = vadd.f32 %v3956_v8, %v3952_v0  ;;  %v3969_v20 = vadd.f32 %v3968_v9, %v3954_v1 }
 0x447   :  { %v3963_v21 = vadd.f32 %v3962_v13, %v3953_v4  ;;  %v3975_v23 = vadd.f32 %v3974_v15, %v3955_v5 }
 0x448   :  { %v3958_v25 = vrot.slane %v3957_v11, 2  ;;  %v3970_v26 = vrot.slane %v3969_v20, 2 }
 0x449   :  { %v3964_v27 = vrot.slane %v3963_v21, 2  ;;  %v3976_v28 = vrot.slane %v3975_v23, 2 }
 0x44a   :  { %v3959_v29 = vadd.f32 %v3958_v25, %v3957_v11  ;;  %v3971_v30 = vadd.f32 %v3970_v26, %v3969_v20 }
 0x44b   :  { %v3965_v31 = vadd.f32 %v3964_v27, %v3963_v21  ;;  %v3977_v32 = vadd.f32 %v3976_v28, %v3975_v23 }
 0x44c   :  { %v3960_v33 = vrot.slane %v3959_v29, 1  ;;  %v3972_v34 = vrot.slane %v3971_v30, 1 }
 0x44d   :  { %v3966_v36 = vrot.slane %v3965_v31, 1  ;;  %v3978_v41 = vrot.slane %v3977_v32, 1 }
 0x44e   :  { %v3961_v42 = vadd.f32 %v3960_v33, %v3959_v29  ;;  %v3973_v43 = vadd.f32 %v3972_v34, %v3971_v30  ;;  %v4038_v29 = vsub.s32 3, %v8972_v16  ;;  %v4058_v30 = vsub.s32 4, %v8972_v16  ;;  %v7922_v34 = vld [vmem:[%s10279_s5 + $0x10] sm:$0x3f] }
 0x44f   :  { %v3967_v44 = vadd.f32 %v3966_v36, %v3965_v31  ;;  %v3979_v45 = vadd.f32 %v3978_v41, %v3977_v32  ;;  %v7921_v31 = vld [vmem:[%s10279_s5] sm:$0x3f] }
 0x450   :  { %v3980_v37 = vmul.f32 0.5, %v3961_v42  ;;  %v3982_v18 = vmul.f32 0.5, %v3973_v43  ;;  %v4039_v32 = vrot.slane %v7921_v31, %v4038_v29  ;;  %v4047_v36 = vrot.slane %v7922_v34, %v4038_v29 }
 0x451   :  { %v3981_v46 = vmul.f32 0.5, %v3967_v44  ;;  %v3983_v24 = vmul.f32 0.5, %v3979_v45  ;;  %v4059_v43 = vrot.slane %v7921_v31, %v4058_v30  ;;  %v7923_v44 = vld [vmem:[%s10279_s5 + $0x8] sm:$0x3f]  ;;  %v7763_v31 = vld [vmem:[%s10278_s2 + $0xae4] ss:$16 sps:$4 sm:$0xff]  }
 0x452   :  { %v3984_v38 = vsub.f32 %v3863_v62, %v3980_v37  ;;  %v3986_v48 = vsub.f32 %v3945_v63, %v3982_v18  ;;  %v4043_v45 = vrot.slane %v7923_v44, %v4038_v29 }
 0x453   :  { %v9815_v35 = vsub.f32 %v3865_v2, %v3981_v46  ;;  %v9817_v49 = vsub.f32 %v3947_v3, %v3983_v24  ;;  %v4067_v46 = vrot.slane %v7922_v34, %v4058_v30  ;;  %v7924_v24 = vld [vmem:[%s10279_s5 + $0x18] sm:$0x3f] }
 0x454   :  { %v3988_v50 = vmul.f32 %v3984_v38, %v3984_v38  ;;  %v3990_v51 = vmul.f32 %v3986_v48, %v3986_v48  ;;  %v7764_v34 = vld [vmem:[%s10278_s2 + $0xae8] ss:$16 sps:$4 sm:$0xff]  }
 0x455   :  { %v3989_v52 = vmul.f32 %v9815_v35, %v9815_v35  ;;  %v3991_v19 = vmul.f32 %v9817_v49, %v9817_v49 }
 0x456   :  { %v3992_v39 = vmul.f32 %v9393_v53, %v3988_v50  ;;  %v3994_v14 = vmul.f32 %v9393_v53, %v3990_v51  ;;  %v4051_v50 = vrot.slane %v7924_v24, %v4038_v29  ;;  %v7755_v29 = vld [vmem:[%s10278_s2 + $0xac0] ss:$16 sps:$4 sm:$0xff]  }
 0x457   :  { %v3993_v40 = vmul.f32 %v9393_v53, %v3989_v52  ;;  %v3995_v54 = vmul.f32 %v9393_v53, %v3991_v19 }
 0x458   :  { %v3996_v55 = vrot.slane %v3992_v39, 4  ;;  %v4008_v56 = vrot.slane %v3994_v14, 4 }
 0x459   :  { %v4002_v57 = vrot.slane %v3993_v40, 4  ;;  %v4014_v58 = vrot.slane %v3995_v54, 4 }
 0x45a   :  { %v3997_v59 = vadd.f32 %v3996_v55, %v3992_v39  ;;  %v4009_v60 = vadd.f32 %v4008_v56, %v3994_v14  ;;  %v4063_v39 = vrot.slane %v7923_v44, %v4058_v30  ;;  %v7775_v44 = vld [vmem:[%s10278_s2 + $0xb24] ss:$16 sps:$4 sm:$0xff]  }
 0x45b   :  { %v4003_v47 = vadd.f32 %v4002_v57, %v3993_v40  ;;  %v4015_v61 = vadd.f32 %v4014_v58, %v3995_v54  ;;  %v4071_v40 = vrot.slane %v7924_v24, %v4058_v30  ;;  %v7758_v30 = vld [vmem:[%s10278_s2 + $0xac8] ss:$16 sps:$4 sm:$0xff]   ;;  %v7784_v24 = vld [vmem:[%s10278_s2 + $0xb4c] ss:$16 sps:$4 sm:$0xff]  }
 0x45c   :  { %v3998_v62 = vrot.slane %v3997_v59, 2  ;;  %v4010_v63 = vrot.slane %v4009_v60, 2 }
 0x45d   :  { %v4004_v0 = vrot.slane %v4003_v47, 2  ;;  %v4016_v1 = vrot.slane %v4015_v61, 2 }
 0x45e   :  { %v3999_v2 = vadd.f32 %v3998_v62, %v3997_v59  ;;  %v4011_v3 = vadd.f32 %v4010_v63, %v4009_v60  ;;  %v7727_v63 = vld [vmem:[%s10278_s2 + $0xa24] ss:$16 sps:$4 sm:$0xff]  }
 0x45f   :  { %v4005_v4 = vadd.f32 %v4004_v0, %v4003_v47  ;;  %v4017_v5 = vadd.f32 %v4016_v1, %v4015_v61  ;;  %v7730_v0 = vld [vmem:[%s10278_s2 + $0xa2c] ss:$16 sps:$4 sm:$0xff]  }
 0x460   :  { %v4000_v6 = vrot.slane %v3999_v2, 1  ;;  %v4012_v7 = vrot.slane %v4011_v3, 1 }
 0x461   :  { %v4006_v8 = vrot.slane %v4005_v4, 1  ;;  %v4018_v9 = vrot.slane %v4017_v5, 1 }
 0x462   :  { %v4001_v10 = vadd.f32 %v4000_v6, %v3999_v2  ;;  %v4013_v12 = vadd.f32 %v4012_v7, %v4011_v3  ;;  %v7725_v2 = vld [vmem:[%s10278_s2 + $0xa20] ss:$16 sps:$4 sm:$0xff]   ;;  %v7728_v3 = vld [vmem:[%s10278_s2 + $0xa28] ss:$16 sps:$4 sm:$0xff]  }
 0x463   :  { %v4007_v13 = vadd.f32 %v4006_v8, %v4005_v4  ;;  %v4019_v15 = vadd.f32 %v4018_v9, %v4017_v5  ;;  %v7733_v4 = vld [vmem:[%s10278_s2 + $0xa44] ss:$16 sps:$4 sm:$0xff]   ;;  %v7736_v5 = vld [vmem:[%s10278_s2 + $0xa4c] ss:$16 sps:$4 sm:$0xff]   ;;  %v7731_v6 = vld [vmem:[%s10278_s2 + $0xa40] ss:$16 sps:$4 sm:$0xff]  }
 0x464   :  { %v4020_v11 = vmul.f32 0.5, %v4001_v10  ;;  %v4022_v20 = vmul.f32 0.5, %v4013_v12  ;;  %v7734_v7 = vld [vmem:[%s10278_s2 + $0xa48] ss:$16 sps:$4 sm:$0xff]   ;;  %v7739_v8 = vld [vmem:[%s10278_s2 + $0xa64] ss:$16 sps:$4 sm:$0xff]  }
 0x465   :  { %v4021_v21 = vmul.f32 0.5, %v4007_v13  ;;  %v4023_v23 = vmul.f32 0.5, %v4019_v15  ;;  %v7742_v9 = vld [vmem:[%s10278_s2 + $0xa6c] ss:$16 sps:$4 sm:$0xff]   ;;  %v7737_v10 = vld [vmem:[%s10278_s2 + $0xa60] ss:$16 sps:$4 sm:$0xff]  }
 0x466   :  { %v4024_v25 = vadd.f32 1e-05, %v4020_v11  ;;  %v4026_v26 = vadd.f32 1e-05, %v4022_v20  ;;  %v7740_v12 = vld [vmem:[%s10278_s2 + $0xa68] ss:$16 sps:$4 sm:$0xff]  }
 0x467   :  { %v4025_v27 = vadd.f32 1e-05, %v4021_v21  ;;  %v4027_v28 = vadd.f32 1e-05, %v4023_v23  ;;  %v7745_v13 = vld [vmem:[%s10278_s2 + $0xa84] ss:$16 sps:$4 sm:$0xff]  }
 0x468   :  { %7903 = vrsqrt.f32 %v4024_v25  ;;  %v7748_v15 = vld [vmem:[%s10278_s2 + $0xa8c] ss:$16 sps:$4 sm:$0xff]   ;;  %v7743_v11 = vld [vmem:[%s10278_s2 + $0xa80] ss:$16 sps:$4 sm:$0xff]   ;;  %v7746_v20 = vld [vmem:[%s10278_s2 + $0xa88] ss:$16 sps:$4 sm:$0xff]  }
 0x469   :  { %7905 = vrsqrt.f32 %v4026_v26  ;;  %v7751_v21 = vld [vmem:[%s10278_s2 + $0xaa4] ss:$16 sps:$4 sm:$0xff]   ;;  %v7754_v23 = vld [vmem:[%s10278_s2 + $0xaac] ss:$16 sps:$4 sm:$0xff]   ;;  %v7749_v25 = vld [vmem:[%s10278_s2 + $0xaa0] ss:$16 sps:$4 sm:$0xff]  }
 0x46a   :  { %7907 = vrsqrt.f32 %v4025_v27  ;;  %v7752_v26 = vld [vmem:[%s10278_s2 + $0xaa8] ss:$16 sps:$4 sm:$0xff]   ;;  %v7757_v27 = vld [vmem:[%s10278_s2 + $0xac4] ss:$16 sps:$4 sm:$0xff]  }
 0x46b   :  { %7909 = vrsqrt.f32 %v4027_v28  ;;  %v7760_v28 = vld [vmem:[%s10278_s2 + $0xacc] ss:$16 sps:$4 sm:$0xff]  }
 0x472   :  { %v7904_v33 = vpop.eup %7903 }
 0x473   :  { %v7906_v41 = vpop.eup %7905  ;;  %v4032_v42 = vmul.f32 %v7904_v33, %v3984_v38  ;;  %v7761_v33 = vld [vmem:[%s10278_s2 + $0xae0] ss:$16 sps:$4 sm:$0xff]  }
 0x474   :  { %v7908_v37 = vpop.eup %7907  ;;  %v4034_v18 = vmul.f32 %v7906_v41, %v3986_v48  ;;  %v7772_v41 = vld [vmem:[%s10278_s2 + $0xb0c] ss:$16 sps:$4 sm:$0xff]  }
 0x475   :  { %v7910_v51 = vpop.eup %7909  ;;  %v4052_v52 = vmul.f32 %v4039_v32, %v4032_v42  ;;  %v4033_v19 = vmul.f32 %v7908_v37, %v9815_v35  ;;  %v7719_v35 = vld [vmem:[%s10278_s2 + $0xa00] ss:$16 sps:$4 sm:$0xff]   ;;  %v7766_v32 = vld [vmem:[%s10278_s2 + $0xaec] ss:$16 sps:$4 sm:$0xff]  }
 0x476   :  { %v4054_v38 = vmul.f32 %v4047_v36, %v4034_v18  ;;  %v4035_v14 = vmul.f32 %v7910_v51, %v9817_v49  ;;  %v7722_v49 = vld [vmem:[%s10278_s2 + $0xa08] ss:$16 sps:$4 sm:$0xff]   ;;  %v7769_v36 = vld [vmem:[%s10278_s2 + $0xb04] ss:$16 sps:$4 sm:$0xff]   ;;  %v7767_v42 = vld [vmem:[%s10278_s2 + $0xb00] ss:$16 sps:$4 sm:$0xff]  }
 0x477   :  { %v4072_v54 = vadd.f32 %v4059_v43, %v4052_v52  ;;  %v4053_v55 = vmul.f32 %v4043_v45, %v4033_v19  ;;  %v7770_v43 = vld [vmem:[%s10278_s2 + $0xb08] ss:$16 sps:$4 sm:$0xff]   ;;  %v7778_v45 = vld [vmem:[%s10278_s2 + $0xb2c] ss:$16 sps:$4 sm:$0xff]   ;;  %v7773_v37 = vld [vmem:[%s10278_s2 + $0xb20] ss:$16 sps:$4 sm:$0xff]  }
 0x478   :  { %v9843_v56 = vadd.f32 %v4067_v46, %v4054_v38  ;;  %v4055_v48 = vmul.f32 %v4051_v50, %v4035_v14  ;;  %v7776_v18 = vld [vmem:[%s10278_s2 + $0xb28] ss:$16 sps:$4 sm:$0xff]   ;;  %v7781_v46 = vld [vmem:[%s10278_s2 + $0xb44] ss:$16 sps:$4 sm:$0xff]   ;;  %v7779_v50 = vld [vmem:[%s10278_s2 + $0xb40] ss:$16 sps:$4 sm:$0xff]  }
 0x479   :  { %v4073_v57 = vadd.f32 %v4063_v39, %v4053_v55  ;;  %v4076_v58 = vmax.f32 %v4072_v54, 0.0  ;;  %v7782_v51 = vld [vmem:[%s10278_s2 + $0xb48] ss:$16 sps:$4 sm:$0xff]   ;;  %v7787_v52 = vld [vmem:[%s10278_s2 + $0xb64] ss:$16 sps:$4 sm:$0xff]  }
 0x47a   :  { %v4075_v59 = vadd.f32 %v4071_v40, %v4055_v48  ;;  %v7790_v19 = vld [vmem:[%s10278_s2 + $0xb6c] ss:$16 sps:$4 sm:$0xff]   ;;  %v7785_v39 = vld [vmem:[%s10278_s2 + $0xb60] ss:$16 sps:$4 sm:$0xff]   ;;  %v7788_v38 = vld [vmem:[%s10278_s2 + $0xb68] ss:$16 sps:$4 sm:$0xff]  }
 0x47b   :  { %v4077_v60 = vmax.f32 %v4073_v57, 0.0  ;;  %v4209_v62 = vpack.c.bf16 %v4076_v58, %v4076_v58  ;;  %v7793_v14 = vld [vmem:[%s10278_s2 + $0xb84] ss:$16 sps:$4 sm:$0xff]   ;;  %v7796_v40 = vld [vmem:[%s10278_s2 + $0xb8c] ss:$16 sps:$4 sm:$0xff]  }
 0x47c   :  { %v4079_v47 = vmax.f32 %v4075_v59, 0.0  ;;  %v7791_v54 = vld [vmem:[%s10278_s2 + $0xb80] ss:$16 sps:$4 sm:$0xff]   ;;  %v7794_v55 = vld [vmem:[%s10278_s2 + $0xb88] ss:$16 sps:$4 sm:$0xff]  }
 0x47d   :  { %v4210_v61 = vpack.c.bf16 %v4077_v60, %v4077_v60  ;;  %v7799_v48 = vld [vmem:[%s10278_s2 + $0xba4] ss:$16 sps:$4 sm:$0xff]   ;;  %v7802_v57 = vld [vmem:[%s10278_s2 + $0xbac] ss:$16 sps:$4 sm:$0xff]   ;;  %v7797_v58 = vld [vmem:[%s10278_s2 + $0xba0] ss:$16 sps:$4 sm:$0xff]  }
 0x47e   :  { %v4212_v1 = vpack.c.bf16 %v4079_v47, %v4079_v47  ;;  %v7800_v59 = vld [vmem:[%s10278_s2 + $0xba8] ss:$16 sps:$4 sm:$0xff]   ;;  %v7805_v60 = vld [vmem:[%s10278_s2 + $0xbc4] ss:$16 sps:$4 sm:$0xff]   ;;  %v7808_v47 = vld [vmem:[%s10278_s2 + $0xbcc] ss:$16 sps:$4 sm:$0xff]  }
 0x47f   :  { %4885 = vmatprep.mubr.bf16.mxu0 %v4210_v61  ;;  %4967 = vmatprep.mubr.bf16.mxu1 %v4210_v61  ;;  %v7803_v61 = vld [vmem:[%s10278_s2 + $0xbc0] ss:$16 sps:$4 sm:$0xff]  }
 0x480   :  { %4886 = vmatmul.mubr.bf16.vlgmr.msra.gmra.mrb[12].mxu0 %v4209_v62  ;;  %4968 = vmatmul.mubr.bf16.vlgmr.msra.gmra.mrb[12].mxu1 %v4209_v62  ;;  %v7814_v62 = vld [vmem:[%s10278_s2 + $0xbec] ss:$16 sps:$4 sm:$0xff]  }
 0x481   :  { %4895 = vmatpush1.bf16.msra.mxu0 %v7719_v35  ;;  %4977 = vmatpush1.bf16.msra.mxu1 %v7722_v49  ;;  %v7806_v35 = vld [vmem:[%s10278_s2 + $0xbc8] ss:$16 sps:$4 sm:$0xff]   ;;  %v7811_v49 = vld [vmem:[%s10278_s2 + $0xbe4] ss:$16 sps:$4 sm:$0xff]  }
 0x482   :  { %4926 = vmatprep.mubr.bf16.mxu0 %v4212_v1  ;;  %5008 = vmatprep.mubr.bf16.mxu1 %v4212_v1  ;;  %v4078_v1 = vmax.f32 %v9843_v56, 0.0  ;;  %v7818_v56 = vld [vmem:[%s10280_s3 + $0x80] sm:$0xff]  }
 0x483   :  { %4896 = vmatprep.subr.bf16.mxu0 %v7727_v63  ;;  %4978 = vmatprep.subr.bf16.mxu1 %v7730_v0  ;;  %v7809_v63 = vld [vmem:[%s10278_s2 + $0xbe0] ss:$16 sps:$4 sm:$0xff]   ;;  %v7812_v0 = vld [vmem:[%s10278_s2 + $0xbe8] ss:$16 sps:$4 sm:$0xff]  }
 0x485   :  { %4897 = vmatpush1.bf16.msra.mxu0 %v7725_v2  ;;  %4979 = vmatpush1.bf16.msra.mxu1 %v7728_v3  ;;  %v4211_v2 = vpack.c.bf16 %v4078_v1, %v4078_v1  ;;  %v7815_v3 = vld [vmem:[%s10280_s3 + $0x40] sm:$0xff]  }
 0x486   :  { %4898 = vmatprep.subr.bf16.mxu0 %v7733_v4  ;;  %4980 = vmatprep.subr.bf16.mxu1 %v7736_v5  ;;  %v7816_v4 = vld [vmem:[%s10280_s3 + $0xc0] sm:$0xff]  }
 0x487   :  { %v7817_v5 = vld [vmem:[%s10280_s3] sm:$0xff]  }
 0x489   :  { %4899 = vmatpush1.bf16.msra.mxu0 %v7731_v6  ;;  %4981 = vmatpush1.bf16.msra.mxu1 %v7734_v7  ;;  %v7819_v6 = vld [vmem:[%s10280_s3 + $0x48] sm:$0xff]  }
 0x48a   :  { %4900 = vmatprep.subr.bf16.mxu0 %v7739_v8  ;;  %4982 = vmatprep.subr.bf16.mxu1 %v7742_v9  ;;  %v7820_v7 = vld [vmem:[%s10280_s3 + $0xc8] sm:$0xff]  }
 0x48b   :  { %v7821_v8 = vld [vmem:[%s10280_s3 + $0x8] sm:$0xff]  }
 0x48c   :  { %v7822_v9 = vld [vmem:[%s10280_s3 + $0x88] sm:$0xff]  }
 0x48d   :  { %4901 = vmatpush1.bf16.msra.mxu0 %v7737_v10  ;;  %4983 = vmatpush1.bf16.msra.mxu1 %v7740_v12  ;;  %v7823_v10 = vld [vmem:[%s10280_s3 + $0x50] sm:$0xff]  }
 0x48e   :  { %4902 = vmatprep.subr.bf16.mxu0 %v7745_v13  ;;  %4984 = vmatprep.subr.bf16.mxu1 %v7748_v15  ;;  %v7824_v12 = vld [vmem:[%s10280_s3 + $0xd0] sm:$0xff]  }
 0x48f   :  { %v7825_v13 = vld [vmem:[%s10280_s3 + $0x10] sm:$0xff]  }
 0x490   :  { %v7826_v15 = vld [vmem:[%s10280_s3 + $0x90] sm:$0xff]  }
 0x491   :  { %4903 = vmatpush1.bf16.msra.mxu0 %v7743_v11  ;;  %4985 = vmatpush1.bf16.msra.mxu1 %v7746_v20  ;;  %v7827_v11 = vld [vmem:[%s10280_s3 + $0x58] sm:$0xff]  }
 0x492   :  { %4904 = vmatprep.subr.bf16.mxu0 %v7751_v21  ;;  %4986 = vmatprep.subr.bf16.mxu1 %v7754_v23  ;;  %v7828_v20 = vld [vmem:[%s10280_s3 + $0xd8] sm:$0xff]  }
 0x493   :  { %v7829_v21 = vld [vmem:[%s10280_s3 + $0x18] sm:$0xff]  }
 0x494   :  { %v7830_v23 = vld [vmem:[%s10280_s3 + $0x98] sm:$0xff]  }
 0x495   :  { %4905 = vmatpush1.bf16.msra.mxu0 %v7749_v25  ;;  %4987 = vmatpush1.bf16.msra.mxu1 %v7752_v26  ;;  %v7831_v25 = vld [vmem:[%s10280_s3 + $0x60] sm:$0xff]  }
 0x496   :  { %4906 = vmatprep.subr.bf16.mxu0 %v7757_v27  ;;  %4988 = vmatprep.subr.bf16.mxu1 %v7760_v28  ;;  %v7832_v26 = vld [vmem:[%s10280_s3 + $0xe0] sm:$0xff]  }
 0x497   :  { %v7833_v27 = vld [vmem:[%s10280_s3 + $0x20] sm:$0xff]  }
 0x498   :  { %v7834_v28 = vld [vmem:[%s10280_s3 + $0xa0] sm:$0xff]  }
 0x499   :  { %4907 = vmatpush1.bf16.msra.mxu0 %v7755_v29  ;;  %4989 = vmatpush1.bf16.msra.mxu1 %v7758_v30  ;;  %v7835_v29 = vld [vmem:[%s10280_s3 + $0x68] sm:$0xff]  }
 0x49a   :  { %4908 = vmatprep.subr.bf16.mxu0 %v7763_v31  ;;  %4990 = vmatprep.subr.bf16.mxu1 %v7766_v32  ;;  %v7836_v30 = vld [vmem:[%s10280_s3 + $0xe8] sm:$0xff]  }
 0x49b   :  { %v7837_v31 = vld [vmem:[%s10280_s3 + $0x28] sm:$0xff]  }
 0x49c   :  { %v7838_v32 = vld [vmem:[%s10280_s3 + $0xa8] sm:$0xff]  }
 0x49d   :  { %4909 = vmatpush1.bf16.msra.mxu0 %v7761_v33  ;;  %4991 = vmatpush1.bf16.msra.mxu1 %v7764_v34  ;;  %v7839_v33 = vld [vmem:[%s10280_s3 + $0x70] sm:$0xff]  }
 0x49e   :  { %4910 = vmatprep.subr.bf16.mxu0 %v7769_v36  ;;  %4992 = vmatprep.subr.bf16.mxu1 %v7772_v41  ;;  %v7840_v34 = vld [vmem:[%s10280_s3 + $0xf0] sm:$0xff]  }
 0x49f   :  { %v7841_v36 = vld [vmem:[%s10280_s3 + $0x30] sm:$0xff]  }
 0x4a0   :  { %v7842_v41 = vld [vmem:[%s10280_s3 + $0xb0] sm:$0xff]  }
 0x4a1   :  { %4911 = vmatpush1.bf16.msra.mxu0 %v7767_v42  ;;  %4993 = vmatpush1.bf16.msra.mxu1 %v7770_v43  ;;  %v7843_v42 = vld [vmem:[%s10280_s3 + $0x78] sm:$0xff]  }
 0x4a2   :  { %4912 = vmatprep.subr.bf16.mxu0 %v7775_v44  ;;  %4994 = vmatprep.subr.bf16.mxu1 %v7778_v45  ;;  %v7844_v43 = vld [vmem:[%s10280_s3 + $0xf8] sm:$0xff]  }
 0x4a3   :  { %v7845_v44 = vld [vmem:[%s10280_s3 + $0x38] sm:$0xff]  }
 0x4a4   :  { %v7846_v45 = vld [vmem:[%s10280_s3 + $0xb8] sm:$0xff]  }
 0x4a5   :  { %4913 = vmatpush1.bf16.msra.mxu0 %v7773_v37  ;;  %4995 = vmatpush1.bf16.msra.mxu1 %v7776_v18 }
 0x4a6   :  { %4914 = vmatprep.subr.bf16.mxu0 %v7781_v46  ;;  %4996 = vmatprep.subr.bf16.mxu1 %v7784_v24 }
 0x4a9   :  { %4915 = vmatpush1.bf16.msra.mxu0 %v7779_v50  ;;  %4997 = vmatpush1.bf16.msra.mxu1 %v7782_v51 }
 0x4aa   :  { %4916 = vmatprep.subr.bf16.mxu0 %v7787_v52  ;;  %4998 = vmatprep.subr.bf16.mxu1 %v7790_v19 }
 0x4ad   :  { %4917 = vmatpush1.bf16.msra.mxu0 %v7785_v39  ;;  %4999 = vmatpush1.bf16.msra.mxu1 %v7788_v38 }
 0x4ae   :  { %4918 = vmatprep.subr.bf16.mxu0 %v7793_v14  ;;  %5000 = vmatprep.subr.bf16.mxu1 %v7796_v40 }
 0x4b1   :  { %4919 = vmatpush1.bf16.msra.mxu0 %v7791_v54  ;;  %5001 = vmatpush1.bf16.msra.mxu1 %v7794_v55 }
 0x4b2   :  { %4920 = vmatprep.subr.bf16.mxu0 %v7799_v48  ;;  %5002 = vmatprep.subr.bf16.mxu1 %v7802_v57 }
 0x4b5   :  { %4921 = vmatpush1.bf16.msra.mxu0 %v7797_v58  ;;  %5003 = vmatpush1.bf16.msra.mxu1 %v7800_v59 }
 0x4b6   :  { %4922 = vmatprep.subr.bf16.mxu0 %v7805_v60  ;;  %5004 = vmatprep.subr.bf16.mxu1 %v7808_v47 }
 0x4b9   :  { %4923 = vmatpush1.bf16.msra.mxu0 %v7803_v61  ;;  %5005 = vmatpush1.bf16.msra.mxu1 %v7806_v35 }
 0x4ba   :  { %4924 = vmatprep.subr.bf16.mxu0 %v7811_v49  ;;  %5006 = vmatprep.subr.bf16.mxu1 %v7814_v62 }
 0x4bd   :  { %4925 = vmatpush1.bf16.msra.mxu0 %v7809_v63  ;;  %5007 = vmatpush1.bf16.msra.mxu1 %v7812_v0 }
 0x4be   :  { %6749 = vmatprep.subr.bf16.mxu0 %v7815_v3  ;;  %6771 = vmatprep.subr.bf16.mxu1 %v7816_v4 }
 0x4c0   :  { %4927 = vmatmul.mubr.bf16.vlgmr.msra.gmra.mrb[12].mxu0 %v4211_v2  ;;  %5009 = vmatmul.mubr.bf16.vlgmr.msra.gmra.mrb[12].mxu1 %v4211_v2 }
 0x4c1   :  { %6750 = vmatpush3.bf16.msra.mxu0 %v7817_v5  ;;  %6772 = vmatpush3.bf16.msra.mxu1 %v7818_v56 }
 0x4c2   :  { %6751 = vmatprep.subr.bf16.mxu0 %v7819_v6  ;;  %6773 = vmatprep.subr.bf16.mxu1 %v7820_v7 }
 0x4c5   :  { %6752 = vmatpush3.bf16.msra.mxu0 %v7821_v8  ;;  %6774 = vmatpush3.bf16.msra.mxu1 %v7822_v9 }
 0x4c6   :  { %6753 = vmatprep.subr.bf16.mxu0 %v7823_v10  ;;  %6775 = vmatprep.subr.bf16.mxu1 %v7824_v12 }
 0x4c9   :  { %6754 = vmatpush3.bf16.msra.mxu0 %v7825_v13  ;;  %6776 = vmatpush3.bf16.msra.mxu1 %v7826_v15 }
 0x4ca   :  { %6755 = vmatprep.subr.bf16.mxu0 %v7827_v11  ;;  %6777 = vmatprep.subr.bf16.mxu1 %v7828_v20 }
 0x4cd   :  { %6756 = vmatpush3.bf16.msra.mxu0 %v7829_v21  ;;  %6778 = vmatpush3.bf16.msra.mxu1 %v7830_v23 }
 0x4ce   :  { %6757 = vmatprep.subr.bf16.mxu0 %v7831_v25  ;;  %6779 = vmatprep.subr.bf16.mxu1 %v7832_v26 }
 0x4d1   :  { %6758 = vmatpush3.bf16.msra.mxu0 %v7833_v27  ;;  %6780 = vmatpush3.bf16.msra.mxu1 %v7834_v28 }
 0x4d2   :  { %6759 = vmatprep.subr.bf16.mxu0 %v7835_v29  ;;  %6781 = vmatprep.subr.bf16.mxu1 %v7836_v30 }
 0x4d5   :  { %6760 = vmatpush3.bf16.msra.mxu0 %v7837_v31  ;;  %6782 = vmatpush3.bf16.msra.mxu1 %v7838_v32 }
 0x4d6   :  { %6761 = vmatprep.subr.bf16.mxu0 %v7839_v33  ;;  %6783 = vmatprep.subr.bf16.mxu1 %v7840_v34 }
 0x4d9   :  { %6762 = vmatpush3.bf16.msra.mxu0 %v7841_v36  ;;  %6784 = vmatpush3.bf16.msra.mxu1 %v7842_v41 }
 0x4da   :  { %6763 = vmatprep.subr.bf16.mxu0 %v7843_v42  ;;  %6785 = vmatprep.subr.bf16.mxu1 %v7844_v43 }
 0x4dd   :  { %6764 = vmatpush3.bf16.msra.mxu0 %v7845_v44  ;;  %6786 = vmatpush3.bf16.msra.mxu1 %v7846_v45 }
 0x593   :  { %v4928_v37 = vpop.f32.mrb[12].mxu0  ;;  %v5010_v18 = vpop.f32.mrb[12].mxu1 }
 0x594   :  { %v5017_v46 = vmul.f32 %v9393_v53, %v4928_v37  ;;  %v5019_v24 = vmul.f32 %v9393_v53, %v5010_v18  ;;  %v4930_v50 = vpop.f32.mrb[13].mxu0  ;;  %v5012_v51 = vpop.f32.mrb[13].mxu1 }
 0x595   :  { %v5018_v52 = vmul.f32 %v9393_v53, %v4930_v50  ;;  %v5020_v19 = vmul.f32 %v9393_v53, %v5012_v51  ;;  %v4932_v39 = vpop.f32.mrb[14].mxu0  ;;  %v5014_v38 = vpop.f32.mrb[14].mxu1 }
 0x596   :  { %v5021_v14 = vrot.slane %v5017_v46, 4  ;;  %v5033_v40 = vrot.slane %v5019_v24, 4  ;;  %v4933_v54 = vpop.f32.mrb[15].mxu0  ;;  %v5015_v55 = vpop.f32.mrb[15].mxu1 }
 0x597   :  { %v5027_v48 = vrot.slane %v5018_v52, 4  ;;  %v5039_v57 = vrot.slane %v5020_v19, 4 }
 0x598   :  { %v5022_v58 = vadd.f32 %v5021_v14, %v5017_v46  ;;  %v5034_v59 = vadd.f32 %v5033_v40, %v5019_v24 }
 0x599   :  { %v5028_v60 = vadd.f32 %v5027_v48, %v5018_v52  ;;  %v5040_v47 = vadd.f32 %v5039_v57, %v5020_v19 }
 0x59a   :  { %v5023_v61 = vrot.slane %v5022_v58, 2  ;;  %v5035_v35 = vrot.slane %v5034_v59, 2 }
 0x59b   :  { %v5029_v49 = vrot.slane %v5028_v60, 2  ;;  %v5041_v62 = vrot.slane %v5040_v47, 2 }
 0x59c   :  { %v5024_v63 = vadd.f32 %v5023_v61, %v5022_v58  ;;  %v5036_v0 = vadd.f32 %v5035_v35, %v5034_v59 }
 0x59d   :  { %v5030_v1 = vadd.f32 %v5029_v49, %v5028_v60  ;;  %v5042_v2 = vadd.f32 %v5041_v62, %v5040_v47 }
 0x59e   :  { %v5025_v3 = vrot.slane %v5024_v63, 1  ;;  %v5037_v4 = vrot.slane %v5036_v0, 1 }
 0x59f   :  { %v5031_v5 = vrot.slane %v5030_v1, 1  ;;  %v5043_v56 = vrot.slane %v5042_v2, 1 }
 0x5a0   :  { %v5026_v6 = vadd.f32 %v5025_v3, %v5024_v63  ;;  %v5038_v7 = vadd.f32 %v5037_v4, %v5036_v0 }
 0x5a1   :  { %v5032_v8 = vadd.f32 %v5031_v5, %v5030_v1  ;;  %v5044_v9 = vadd.f32 %v5043_v56, %v5042_v2 }
 0x5a2   :  { %v5045_v10 = vmul.f32 0.5, %v5026_v6  ;;  %v5047_v12 = vmul.f32 0.5, %v5038_v7 }
 0x5a3   :  { %v5046_v13 = vmul.f32 0.5, %v5032_v8  ;;  %v5048_v15 = vmul.f32 0.5, %v5044_v9 }
 0x5a4   :  { %v5049_v11 = vsub.f32 %v4928_v37, %v5045_v10  ;;  %v5051_v20 = vsub.f32 %v5010_v18, %v5047_v12  ;;  %v7849_v10 = vld [vmem:[%s10282_s4 + $0x4] ss:$16 sps:$4 sm:$0xff]   ;;  %v7847_v12 = vld [vmem:[%s10282_s4] ss:$16 sps:$4 sm:$0xff]  }
 0x5a5   :  { %v5050_v21 = vsub.f32 %v4930_v50, %v5046_v13  ;;  %v5052_v23 = vsub.f32 %v5012_v51, %v5048_v15  ;;  %5682 = vmatprep.subr.bf16.mxu0 %v7849_v10  ;;  %v7850_v13 = vld [vmem:[%s10282_s4 + $0x8] ss:$16 sps:$4 sm:$0xff]   ;;  %v7852_v15 = vld [vmem:[%s10282_s4 + $0xc] ss:$16 sps:$4 sm:$0xff]  }
 0x5a6   :  { %v5053_v25 = vmul.f32 %v5049_v11, %v5049_v11  ;;  %v5055_v26 = vmul.f32 %v5051_v20, %v5051_v20  ;;  %5723 = vmatprep.subr.bf16.mxu1 %v7852_v15  ;;  %v33_v15 = vld [vmem:[%s10283_s6] sm:$0x3] }
 0x5a7   :  { %v5054_v27 = vmul.f32 %v5050_v21, %v5050_v21  ;;  %v5056_v28 = vmul.f32 %v5052_v23, %v5052_v23 }
 0x5a8   :  { %v5057_v29 = vmul.f32 %v9393_v53, %v5053_v25  ;;  %v5059_v30 = vmul.f32 %v9393_v53, %v5055_v26  ;;  %v7861_v25 = vld [vmem:[%s10282_s4 + $0x44] ss:$16 sps:$4 sm:$0xff]   ;;  %v7864_v26 = vld [vmem:[%s10282_s4 + $0x4c] ss:$16 sps:$4 sm:$0xff]  }
 0x5a9   :  { %v5058_v31 = vmul.f32 %v9393_v53, %v5054_v27  ;;  %v5060_v32 = vmul.f32 %v9393_v53, %v5056_v28  ;;  %v7859_v27 = vld [vmem:[%s10282_s4 + $0x40] ss:$16 sps:$4 sm:$0xff]   ;;  %v7862_v28 = vld [vmem:[%s10282_s4 + $0x48] ss:$16 sps:$4 sm:$0xff]  }
 0x5aa   :  { %v5061_v33 = vrot.slane %v5057_v29, 4  ;;  %v5073_v34 = vrot.slane %v5059_v30, 4 }
 0x5ab   :  { %v5067_v36 = vrot.slane %v5058_v31, 4  ;;  %v5079_v41 = vrot.slane %v5060_v32, 4 }
 0x5ac   :  { %v5062_v42 = vadd.f32 %v5061_v33, %v5057_v29  ;;  %v5074_v43 = vadd.f32 %v5073_v34, %v5059_v30  ;;  %v7867_v29 = vld [vmem:[%s10282_s4 + $0x64] ss:$16 sps:$4 sm:$0xff]   ;;  %v7870_v30 = vld [vmem:[%s10282_s4 + $0x6c] ss:$16 sps:$4 sm:$0xff]  }
 0x5ad   :  { %v5068_v44 = vadd.f32 %v5067_v36, %v5058_v31  ;;  %v5080_v45 = vadd.f32 %v5079_v41, %v5060_v32  ;;  %v7865_v31 = vld [vmem:[%s10282_s4 + $0x60] ss:$16 sps:$4 sm:$0xff]   ;;  %v7868_v32 = vld [vmem:[%s10282_s4 + $0x68] ss:$16 sps:$4 sm:$0xff]   ;;  %v7873_v33 = vld [vmem:[%s10282_s4 + $0x84] ss:$16 sps:$4 sm:$0xff]  }
 0x5ae   :  { %v5063_v37 = vrot.slane %v5062_v42, 2  ;;  %v5075_v18 = vrot.slane %v5074_v43, 2  ;;  %v7876_v34 = vld [vmem:[%s10282_s4 + $0x8c] ss:$16 sps:$4 sm:$0xff]   ;;  %v7871_v36 = vld [vmem:[%s10282_s4 + $0x80] ss:$16 sps:$4 sm:$0xff]  }
 0x5af   :  { %v5069_v46 = vrot.slane %v5068_v44, 2  ;;  %v5081_v24 = vrot.slane %v5080_v45, 2  ;;  %v7874_v41 = vld [vmem:[%s10282_s4 + $0x88] ss:$16 sps:$4 sm:$0xff]  }
 0x5b0   :  { %v5064_v50 = vadd.f32 %v5063_v37, %v5062_v42  ;;  %v5076_v51 = vadd.f32 %v5075_v18, %v5074_v43  ;;  %v7879_v42 = vld [vmem:[%s10282_s4 + $0xa4] ss:$16 sps:$4 sm:$0xff]   ;;  %v7882_v43 = vld [vmem:[%s10282_s4 + $0xac] ss:$16 sps:$4 sm:$0xff]  }
 0x5b1   :  { %v5070_v52 = vadd.f32 %v5069_v46, %v5068_v44  ;;  %v5082_v19 = vadd.f32 %v5081_v24, %v5080_v45  ;;  %v7877_v44 = vld [vmem:[%s10282_s4 + $0xa0] ss:$16 sps:$4 sm:$0xff]   ;;  %v7880_v45 = vld [vmem:[%s10282_s4 + $0xa8] ss:$16 sps:$4 sm:$0xff]   ;;  %v7885_v37 = vld [vmem:[%s10282_s4 + $0xc4] ss:$16 sps:$4 sm:$0xff]  }
 0x5b2   :  { %v5065_v39 = vrot.slane %v5064_v50, 1  ;;  %v5077_v38 = vrot.slane %v5076_v51, 1  ;;  %v7888_v18 = vld [vmem:[%s10282_s4 + $0xcc] ss:$16 sps:$4 sm:$0xff]   ;;  %v7883_v46 = vld [vmem:[%s10282_s4 + $0xc0] ss:$16 sps:$4 sm:$0xff]  }
 0x5b3   :  { %v5071_v14 = vrot.slane %v5070_v52, 1  ;;  %v5083_v40 = vrot.slane %v5082_v19, 1  ;;  %v7886_v24 = vld [vmem:[%s10282_s4 + $0xc8] ss:$16 sps:$4 sm:$0xff]  }
 0x5b4   :  { %v5066_v54 = vadd.f32 %v5065_v39, %v5064_v50  ;;  %v5078_v55 = vadd.f32 %v5077_v38, %v5076_v51  ;;  %v7891_v50 = vld [vmem:[%s10282_s4 + $0xe4] ss:$16 sps:$4 sm:$0xff]   ;;  %v7889_v51 = vld [vmem:[%s10282_s4 + $0xe0] ss:$16 sps:$4 sm:$0xff]   ;;  %v7892_v39 = vld [vmem:[%s10282_s4 + $0xe8] ss:$16 sps:$4 sm:$0xff]  }
 0x5b5   :  { %v5072_v48 = vadd.f32 %v5071_v14, %v5070_v52  ;;  %v5084_v57 = vadd.f32 %v5083_v40, %v5082_v19  ;;  %v7894_v52 = vld [vmem:[%s10282_s4 + $0xec] ss:$16 sps:$4 sm:$0xff]   ;;  %v7930_v19 = vmov 0  }
 0x5b6   :  { %v5085_v58 = vmul.f32 0.5, %v5066_v54  ;;  %v5087_v59 = vmul.f32 0.5, %v5078_v55 }
 0x5b7   :  { %v5086_v60 = vmul.f32 0.5, %v5072_v48  ;;  %v5088_v47 = vmul.f32 0.5, %v5084_v57 }
 0x5b8   :  { %v5089_v61 = vadd.f32 1e-05, %v5085_v58  ;;  %v5091_v35 = vadd.f32 1e-05, %v5087_v59 }
 0x5b9   :  { %v5090_v49 = vadd.f32 1e-05, %v5086_v60  ;;  %v5092_v62 = vadd.f32 1e-05, %v5088_v47 }
 0x5ba   :  { %7911 = vrsqrt.f32 %v5089_v61 }
 0x5bb   :  { %7913 = vrsqrt.f32 %v5091_v35 }
 0x5bc   :  { %7915 = vrsqrt.f32 %v5090_v49 }
 0x5bd   :  { %7917 = vrsqrt.f32 %v5092_v62 }
 0x5c4   :  { %v7912_v63 = vpop.eup %7911 }
 0x5c5   :  { %v7914_v0 = vpop.eup %7913  ;;  %v5097_v1 = vmul.f32 %v7912_v63, %v5049_v11  ;;  %v7855_v11 = vld [vmem:[%s10282_s4 + $0x24] ss:$16 sps:$4 sm:$0xff]  }
 0x5c6   :  { %v7916_v2 = vpop.eup %7915  ;;  %v5099_v3 = vmul.f32 %v7914_v0, %v5051_v20  ;;  %v7858_v20 = vld [vmem:[%s10282_s4 + $0x2c] ss:$16 sps:$4 sm:$0xff]  }
 0x5c7   :  { %v7918_v4 = vpop.eup %7917  ;;  %5764 = vst [vmem:[%s10281_s7] sm:$0xff] %v5097_v1  ;;  %v5098_v5 = vmul.f32 %v7916_v2, %v5050_v21  ;;  %v5165_v7 = vpack.c.bf16 %v5097_v1, %v5097_v1  ;;  %v7853_v21 = vld [vmem:[%s10282_s4 + $0x20] ss:$16 sps:$4 sm:$0xff]  }
 0x5c8   :  { %5766 = vst [vmem:[%s10281_s7 + $0x10] sm:$0xff] %v5099_v3  ;;  %v5100_v56 = vmul.f32 %v7918_v4, %v5052_v23  ;;  %v5167_v9 = vpack.c.bf16 %v5099_v3, %v5099_v3  ;;  %v7856_v23 = vld [vmem:[%s10282_s4 + $0x28] ss:$16 sps:$4 sm:$0xff]  }
 0x5c9   :  { %5765 = vst [vmem:[%s10281_s7 + $0x8] sm:$0xff] %v5098_v5  ;;  %v5166_v6 = vpack.c.bf16 %v5098_v5, %v5098_v5 }
 0x5ca   :  { %5767 = vst [vmem:[%s10281_s7 + $0x18] sm:$0xff] %v5100_v56  ;;  %v5168_v8 = vpack.c.bf16 %v5100_v56, %v5100_v56 }
 0x5cb   :  { %5393 = vmatprep.mubr.bf16.mxu0 %v5166_v6 }
 0x5cc   :  { %5433 = vmatprep.mubr.bf16.mxu1 %v5168_v8  ;;  %5394 = vmatmul.mubr.bf16.vlgmr.msra.gmra.mrb[16].mxu0 %v5165_v7 }
 0x5cd   :  { %5434 = vmatmul.mubr.bf16.vlgmr.msra.gmra.mrb[16].mxu1 %v5167_v9  ;;  %5683 = vmatpush1.bf16.msra.mxu0 %v7847_v12 }
 0x5ce   :  { %5724 = vmatpush1.bf16.msra.mxu1 %v7850_v13  ;;  %5684 = vmatprep.subr.bf16.mxu0 %v7855_v11  ;;  %v5465_v11 = vrot.slane %v33_v15, %v8975_v17  ;;  %v7926_v17 = vld [vmem:[%s10279_s5 + $0x10] sm:$0x3f] }
 0x5cf   :  { %5725 = vmatprep.subr.bf16.mxu1 %v7858_v20  ;;  %5714 = vmatprep.mubr.bf16.mxu0 %v7930_v19 }
 0x5d0   :  { %5755 = vmatprep.mubr.bf16.mxu1 %v7930_v19 }
 0x5d1   :  { %5685 = vmatpush1.bf16.msra.mxu0 %v7853_v21 }
 0x5d2   :  { %5726 = vmatpush1.bf16.msra.mxu1 %v7856_v23  ;;  %5686 = vmatprep.subr.bf16.mxu0 %v7861_v25  ;;  %v5470_v23 = vrot.slane %v33_v15, %v9408_v22  ;;  %v7927_v22 = vld [vmem:[%s10279_s5 + $0x8] sm:$0x3f] }
 0x5d3   :  { %5727 = vmatprep.subr.bf16.mxu1 %v7864_v26 }
 0x5d5   :  { %5687 = vmatpush1.bf16.msra.mxu0 %v7859_v27 }
 0x5d6   :  { %5728 = vmatpush1.bf16.msra.mxu1 %v7862_v28  ;;  %5688 = vmatprep.subr.bf16.mxu0 %v7867_v29  ;;  %v5508_v28 = vsub.s32 5, %v8972_v16  ;;  %v7925_v29 = vld [vmem:[%s10279_s5] sm:$0x3f] }
 0x5d7   :  { %5729 = vmatprep.subr.bf16.mxu1 %v7870_v30 }
 0x5d8   :  { %v5509_v30 = vrot.slane %v7925_v29, %v5508_v28 }
 0x5d9   :  { %5689 = vmatpush1.bf16.msra.mxu0 %v7865_v31  ;;  %v5517_v31 = vrot.slane %v7926_v17, %v5508_v28 }
 0x5da   :  { %5730 = vmatpush1.bf16.msra.mxu1 %v7868_v32  ;;  %5690 = vmatprep.subr.bf16.mxu0 %v7873_v33  ;;  %v5513_v32 = vrot.slane %v7927_v22, %v5508_v28  ;;  %v7928_v33 = vld [vmem:[%s10279_s5 + $0x18] sm:$0x3f] }
 0x5db   :  { %5731 = vmatprep.subr.bf16.mxu1 %v7876_v34  ;;  %v5521_v16 = vrot.slane %v7928_v33, %v5508_v28 }
 0x5dd   :  { %5691 = vmatpush1.bf16.msra.mxu0 %v7871_v36 }
 0x5de   :  { %5732 = vmatpush1.bf16.msra.mxu1 %v7874_v41  ;;  %5692 = vmatprep.subr.bf16.mxu0 %v7879_v42 }
 0x5df   :  { %5733 = vmatprep.subr.bf16.mxu1 %v7882_v43 }
 0x5e1   :  { %5693 = vmatpush1.bf16.msra.mxu0 %v7877_v44 }
 0x5e2   :  { %5734 = vmatpush1.bf16.msra.mxu1 %v7880_v45  ;;  %5694 = vmatprep.subr.bf16.mxu0 %v7885_v37 }
 0x5e3   :  { %5735 = vmatprep.subr.bf16.mxu1 %v7888_v18 }
 0x5e5   :  { %5695 = vmatpush1.bf16.msra.mxu0 %v7883_v46 }
 0x5e6   :  { %5696 = vmatprep.subr.bf16.mxu0 %v7891_v50  ;;  %5736 = vmatpush1.bf16.msra.mxu1 %v7886_v24 }
 0x5e7   :  { %5737 = vmatprep.subr.bf16.mxu1 %v7894_v52 }
 0x5e9   :  { %5697 = vmatpush1.bf16.msra.mxu0 %v7889_v51 }
 0x5ea   :  { %5738 = vmatpush1.bf16.msra.mxu1 %v7892_v39 }
 0x69f   :  { %v6765_v38 = vpop.f32.mrb[16].mxu0 }
 0x6a0   :  { %v6787_v14 = vpop.f32.mrb[16].mxu1  ;;  %v6766_v40 = vpop.f32.mrb[17].mxu0 }
 0x6a1   :  { %v6767_v54 = vadd.f32 %v6766_v40, %v6765_v38  ;;  %v6788_v55 = vpop.f32.mrb[17].mxu1  ;;  %v6768_v48 = vpop.f32.mrb[18].mxu0 }
 0x6a2   :  { %v6789_v57 = vadd.f32 %v6788_v55, %v6787_v14  ;;  %v6790_v58 = vpop.f32.mrb[18].mxu1  ;;  %v6769_v59 = vpop.f32.mrb[19].mxu0 }
 0x6a3   :  { %v6791_v60 = vpop.f32.mrb[19].mxu1 }
 0x6a4   :  { %v5436_v47 = vadd.f32 %v6789_v57, %v6767_v54 }
 0x6a6   :  { %v5441_v61 = vmul.f32 %v9393_v53, %v5436_v47 }
 0x6a8   :  { %v5442_v35 = vrot.slane %v5441_v61, 4 }
 0x6aa   :  { %v5443_v49 = vadd.f32 %v5442_v35, %v5441_v61 }
 0x6ac   :  { %v5444_v62 = vrot.slane %v5443_v49, 2 }
 0x6ae   :  { %v5445_v63 = vadd.f32 %v5444_v62, %v5443_v49 }
 0x6b0   :  { %v5446_v0 = vrot.slane %v5445_v63, 1 }
 0x6b2   :  { %v5447_v1 = vadd.f32 %v5446_v0, %v5445_v63 }
 0x6b4   :  { %v5448_v2 = vmul.f32 0.5, %v5447_v1 }
 0x6b6   :  { %v5449_v3 = vsub.f32 %v5436_v47, %v5448_v2 }
 0x6b8   :  { %v5450_v4 = vmul.f32 %v5449_v3, %v5449_v3 }
 0x6ba   :  { %v5451_v5 = vmul.f32 %v9393_v53, %v5450_v4 }
 0x6bc   :  { %v5452_v56 = vrot.slane %v5451_v5, 4 }
 0x6be   :  { %v5453_v6 = vadd.f32 %v5452_v56, %v5451_v5 }
 0x6c0   :  { %v5454_v7 = vrot.slane %v5453_v6, 2 }
 0x6c2   :  { %v5455_v8 = vadd.f32 %v5454_v7, %v5453_v6 }
 0x6c4   :  { %v5456_v9 = vrot.slane %v5455_v8, 1 }
 0x6c6   :  { %v5457_v10 = vadd.f32 %v5456_v9, %v5455_v8 }
 0x6c8   :  { %v5458_v12 = vmul.f32 0.5, %v5457_v10 }
 0x6ca   :  { %v5459_v13 = vadd.f32 1e-05, %v5458_v12 }
 0x6cc   :  { %7919 = vrsqrt.f32 %v5459_v13 }
 0x6d6   :  { %v7920_v20 = vpop.eup %7919 }
 0x6d7   :  { %v5461_v21 = vmul.f32 %v7920_v20, %v5449_v3 }
 0x6d9   :  { %v5466_v53 = vmul.f32 %v5465_v11, %v5461_v21 }
 0x6db   :  { %v5471_v25 = vadd.f32 %v5470_v23, %v5466_v53 }
 0x6dd   :  { %v5472_v26 = vmax.f32 %v5471_v25, 0.0 }
 0x6df   :  { %v5505_v27 = vpack.c.bf16 %v5472_v26, %v5472_v26 }
 0x6e1   :  { %5715 = vmatmul.mubr.bf16.vlgmr.msra.gmra.mrb[20].mxu0 %v5505_v27  ;;  %5756 = vmatmul.mubr.bf16.vlgmr.msra.gmra.mrb[20].mxu1 %v5505_v27 }
 0x7b4   :  { %v5716_v34 = vpop.f32.mrb[20].mxu0  ;;  %v5757_v36 = vpop.f32.mrb[20].mxu1 }
 0x7b5   :  { %v5717_v41 = vadd.f32 %v5716_v34, %v5509_v30  ;;  %v5758_v42 = vadd.f32 %v5757_v36, %v5517_v31  ;;  %v5718_v43 = vpop.f32.mrb[21].mxu0  ;;  %v5759_v44 = vpop.f32.mrb[21].mxu1 }
 0x7b6   :  { %v5719_v45 = vadd.f32 %v5718_v43, %v5513_v32  ;;  %v5760_v37 = vadd.f32 %v5759_v44, %v5521_v16  ;;  %v5720_v18 = vpop.f32.mrb[22].mxu0  ;;  %v5761_v46 = vpop.f32.mrb[22].mxu1 }
 0x7b7   :  { %5768 = vst [vmem:[%s10284_s8] sm:$0xff] %v5717_v41  ;;  %5770 = vst [vmem:[%s10284_s8 + $0x10] sm:$0xff] %v5758_v42  ;;  %v5721_v24 = vpop.f32.mrb[23].mxu0  ;;  %v5762_v50 = vpop.f32.mrb[23].mxu1 }
 0x7b8   :  { %5769 = vst [vmem:[%s10284_s8 + $0x8] sm:$0xff] %v5719_v45  ;;  %5771 = vst [vmem:[%s10284_s8 + $0x18] sm:$0xff] %v5760_v37 }

</bundles_post_ra>
